<compile_context>
chip_gen: v7x
topology: tpu7x:2x2x1
jax: 0.10.0
libtpu: 0.0.40
codegen_flags: <defaults>
</compile_context>

<pallas_src>
import numpy as np
import jax
import jax.numpy as jnp
from jax.experimental import pallas as pl
from jax.experimental.pallas import tpu as pltpu  # noqa: F401  (TPU backend)

BN_EPS = 1e-5


# ---------------------------------------------------------------------------
# Fused whole-model kernel
# ---------------------------------------------------------------------------
def _conv_bn_relu_block(h, a_ref, p_ref, pt_ref, g_ref, be_ref):
    """One conv -> BatchNorm1d(training stats) -> ReLU block, lane-dense.

    h:      (B, C_in*L_in)            activations, channel-major columns
    a_ref:  (C_in*L_in, C_out*L_out)  dense conv (Toeplitz) matrix
    p_ref:  (C_out*L_out, C_out)      per-channel pooling matrix
    pt_ref: (C_out, C_out*L_out)      transpose (broadcast back over columns)
    g_ref / be_ref: (1, C_out)        BatchNorm affine gamma / beta
    """
    z = jnp.dot(h, a_ref[...], preferred_element_type=jnp.float32)
    c = p_ref.shape[1]
    n = z.shape[0] * (z.shape[1] // c)            # B * L_out  (static)
    inv_n = 1.0 / float(n)
    row_sum = jnp.sum(z, axis=0, keepdims=True)
    row_sq = jnp.sum(z * z, axis=0, keepdims=True)
    mean = jnp.dot(row_sum, p_ref[...], preferred_element_type=jnp.float32) * inv_n
    ex2 = jnp.dot(row_sq, p_ref[...], preferred_element_type=jnp.float32) * inv_n
    var = ex2 - mean * mean                       # biased variance (torch training)
    scale = g_ref[...] * jax.lax.rsqrt(var + BN_EPS)
    shift = be_ref[...] - scale * mean
    scale_cols = jnp.dot(scale, pt_ref[...], preferred_element_type=jnp.float32)
    shift_cols = jnp.dot(shift, pt_ref[...], preferred_element_type=jnp.float32)
    return jnp.maximum(z * scale_cols + shift_cols, 0.0)   # conv_activation=ReLU


def _make_fused_kernel(n_conv, n_fc):
    def kernel(*refs):
        x_ref, o_ref = refs[0], refs[-1]
        h = x_ref[...]
        idx = 1
        for _ in range(n_conv):
            a_ref, p_ref, pt_ref, g_ref, be_ref = refs[idx:idx + 5]
            idx += 5
            h = _conv_bn_relu_block(h, a_ref, p_ref, pt_ref, g_ref, be_ref)
        # h is already in torch flatten(start_dim=1) order: (B, C*L)
        for i in range(n_fc):
            w_ref, b_ref = refs[idx:idx + 2]
            idx += 2
            h = jnp.dot(h, w_ref[...], preferred_element_type=jnp.float32) + b_ref[...]
            if i < n_fc - 1:
                h = jnp.maximum(h, 0.0)           # fc_activation = ReLU
        o_ref[...] = h
    return kernel


def forward(operands, x, *, n_conv, n_fc, n_outputs):
    """x: (B, C_in, L) NCW like PyTorch -> (B, n_outputs); single pallas_call."""
    B = x.shape[0]
    x2 = x.reshape(B, -1).astype(jnp.float32)     # channel-major flatten
    return pl.pallas_call(
        _make_fused_kernel(n_conv, n_fc),
        out_shape=jax.ShapeDtypeStruct((B, n_outputs), jnp.float32),
    )(x2, *operands)


# ---------------------------------------------------------------------------
# Parameter init (deterministic, torch-like ranges) + operand preparation
# ---------------------------------------------------------------------------
def init_params(key, conv_layers, fc_layers, kernel_size, stride, padding,
                first_layer_channels, n_outputs=16, length=380):
    params = {"convs": [], "bns": [], "fcs": []}
    ch = first_layer_channels
    L = length
    keys = jax.random.split(key, conv_layers + fc_layers)
    for i in range(conv_layers):
        in_ch = 1 if i == 0 else ch
        kw, kb = jax.random.split(keys[i])
        bound = 1.0 / np.sqrt(in_ch * kernel_size)
        w = jax.random.uniform(kw, (ch, in_ch, kernel_size), jnp.float32,
                               -bound, bound)
        b = jax.random.uniform(kb, (ch,), jnp.float32, -bound, bound)
        params["convs"].append((w, b))
        # BatchNorm1d default affine init: gamma=1, beta=0.
        params["bns"].append((jnp.ones((ch,), jnp.float32),
                              jnp.zeros((ch,), jnp.float32)))
        L = int((L + 2 * padding - kernel_size) / stride + 1)
    flat_dim = L * ch
    if flat_dim <= 1:
        raise ValueError(f"flat_dim={flat_dim} must be > 1")
    powers = np.linspace(int(np.floor(np.log2(flat_dim - 1))),
                         int(np.ceil(np.log2(n_outputs + 1))),
                         fc_layers - 1)
    dims = [flat_dim] + [int(2 ** p) for p in powers] + [n_outputs]
    for i in range(fc_layers):
        kw, kb = jax.random.split(keys[conv_layers + i])
        bound = 1.0 / np.sqrt(dims[i])
        w = jax.random.uniform(kw, (dims[i], dims[i + 1]), jnp.float32,
                               -bound, bound)
        b = jax.random.uniform(kb, (dims[i + 1],), jnp.float32, -bound, bound)
        params["fcs"].append((w, b))
    return params, dims


def build_operands(params, *, stride, padding, length=380):
    """One-time weight transform: conv weights -> dense Toeplitz matrices A,
    per-channel pooling matrices P / P^T, BN affine rows, FC weights/biases.
    (Conv bias is dropped: cancelled exactly by training-mode BN.)"""
    ops = []
    L = length
    for (w, _b), (g, be) in zip(params["convs"], params["bns"]):
        w_np = np.asarray(w, dtype=np.float32)
        C_out, C_in, K = w_np.shape
        L_out = (L + 2 * padding - K) // stride + 1
        A = np.zeros((C_in, L, C_out, L_out), np.float32)
        p = np.arange(L_out)
        for k in range(K):
            q = p * stride - padding + k
            m = (q >= 0) & (q < L)
            # A[ci, q, c, p] = w[c, ci, k]
            A[:, q[m], :, p[m]] += w_np[:, :, k].T[None, :, :]
        A = A.reshape(C_in * L, C_out * L_out)
        P = np.kron(np.eye(C_out, dtype=np.float32),
                    np.ones((L_out, 1), np.float32))        # (C_out*L_out, C_out)
        ops += [jnp.asarray(A), jnp.asarray(P), jnp.asarray(P.T),
                g.reshape(1, C_out), be.reshape(1, C_out)]
        L = L_out
    for (w, b) in params["fcs"]:
        ops += [w, b.reshape(1, -1)]
    return ops


# ---------------------------------------------------------------------------
# Pure-JAX reference (independent path: lax conv + standard BN) for checking
# ---------------------------------------------------------------------------
def reference_forward(params, x, *, stride, padding):
    h = x
    for (w, b), (g, be) in zip(params["convs"], params["bns"]):
        y = jax.lax.conv_general_dilated(
            h, w, window_strides=(stride,), padding=[(padding, padding)],
            dimension_numbers=("NCH", "OIH", "NCH"))
        y = y + b[None, :, None]
        mean = jnp.mean(y, axis=(0, 2), keepdims=True)
        var = jnp.mean((y - mean) ** 2, axis=(0, 2), keepdims=True)
        y = (y - mean) * jax.lax.rsqrt(var + BN_EPS)
        y = y * g[None, :, None] + be[None, :, None]
        h = jnp.maximum(y, 0.0)
    h = h.reshape(h.shape[0], -1)
    for w, b in params["fcs"][:-1]:
        h = jnp.maximum(h @ w + b, 0.0)
    w, b = params["fcs"][-1]
    return h @ w + b


if __name__ == "__main__":
    # Config consistent with the module: Conv1d expects (B, 1, 380).
    conv_layers, fc_layers = 2, 3
    kernel_size, stride, padding = 5, 2, 2
    first_layer_channels = 4
    n_outputs = 16

    key = jax.random.PRNGKey(0)
    kp, kx = jax.random.split(key)
    params, dims = init_params(kp, conv_layers, fc_layers, kernel_size, stride,
                               padding, first_layer_channels, n_outputs)
    # dims == [380, 256, 32, 16] for this config
    operands = build_operands(params, stride=stride, padding=padding)
    x = jax.random.normal(kx, (2, 1, 380), jnp.float32)   # NCW like PyTorch

    out = jax.block_until_ready(
        forward(operands, x, n_conv=conv_layers, n_fc=fc_layers,
                n_outputs=n_outputs))
    assert out.shape == (2, n_outputs), out.shape
    assert jnp.all(jnp.isfinite(out))

    # Loose-tolerance sanity check against an independent pure-JAX path
    # (tolerance generous to absorb MXU default-precision noise).
    ref = jax.block_until_ready(
        reference_forward(params, x, stride=stride, padding=padding))
    assert jnp.allclose(out, ref, rtol=5e-2, atol=5e-2), \
        float(jnp.max(jnp.abs(out - ref)))

    print("KERNEL_OK")
</pallas_src>

<mosaic_0001>
module attributes {stable_mosaic.version = 11 : i64} {
  func.func @kernel(%arg0: memref<2x380xf32, #tpu.memory_space<vmem>>, %arg1: memref<380x760xf32, #tpu.memory_space<vmem>>, %arg2: memref<760x4xf32, #tpu.memory_space<vmem>>, %arg3: memref<4x760xf32, #tpu.memory_space<vmem>>, %arg4: memref<1x4xf32, #tpu.memory_space<vmem>>, %arg5: memref<1x4xf32, #tpu.memory_space<vmem>>, %arg6: memref<760x380xf32, #tpu.memory_space<vmem>>, %arg7: memref<380x4xf32, #tpu.memory_space<vmem>>, %arg8: memref<4x380xf32, #tpu.memory_space<vmem>>, %arg9: memref<1x4xf32, #tpu.memory_space<vmem>>, %arg10: memref<1x4xf32, #tpu.memory_space<vmem>>, %arg11: memref<380x256xf32, #tpu.memory_space<vmem>>, %arg12: memref<1x256xf32, #tpu.memory_space<vmem>>, %arg13: memref<256x32xf32, #tpu.memory_space<vmem>>, %arg14: memref<1x32xf32, #tpu.memory_space<vmem>>, %arg15: memref<32x16xf32, #tpu.memory_space<vmem>>, %arg16: memref<1x16xf32, #tpu.memory_space<vmem>>, %arg17: memref<2x16xf32, #tpu.memory_space<vmem>>) attributes {dimension_semantics = [], scalar_prefetch = 0 : i64, scratch_operands = 0 : i64, tpu.core_type = #tpu.core_type<tc>} {
    %c0 = arith.constant 0 : index
    %c0_0 = arith.constant 0 : index
    %0 = vector.load %arg0[%c0, %c0_0] : memref<2x380xf32, #tpu.memory_space<vmem>>, vector<2x380xf32>
    %c0_1 = arith.constant 0 : index
    %c0_2 = arith.constant 0 : index
    %1 = vector.load %arg1[%c0_1, %c0_2] : memref<380x760xf32, #tpu.memory_space<vmem>>, vector<380x760xf32>
    %cst = arith.constant dense<0.000000e+00> : vector<2x760xf32>
    %2 = tpu.matmul %0, %1, %cst {dimension_numbers = #tpu.dot_dimension_numbers<[1], [0], [0], [1], [0, 0, 1, 1], [], []>} : vector<2x380xf32>, vector<380x760xf32>, vector<2x760xf32> -> vector<2x760xf32>
    %cst_3 = arith.constant dense<0.000000e+00> : vector<760xf32>
    %3 = vector.multi_reduction <add>, %2, %cst_3 [0] : vector<2x760xf32> to vector<760xf32>
    %4 = vector.shape_cast %3 : vector<760xf32> to vector<1x760xf32>
    %5 = arith.mulf %2, %2 : vector<2x760xf32>
    %cst_4 = arith.constant dense<0.000000e+00> : vector<760xf32>
    %6 = vector.multi_reduction <add>, %5, %cst_4 [0] : vector<2x760xf32> to vector<760xf32>
    %7 = vector.shape_cast %6 : vector<760xf32> to vector<1x760xf32>
    %c0_5 = arith.constant 0 : index
    %c0_6 = arith.constant 0 : index
    %8 = vector.load %arg2[%c0_5, %c0_6] : memref<760x4xf32, #tpu.memory_space<vmem>>, vector<760x4xf32>
    %cst_7 = arith.constant dense<0.000000e+00> : vector<1x4xf32>
    %9 = tpu.matmul %4, %8, %cst_7 {dimension_numbers = #tpu.dot_dimension_numbers<[1], [0], [0], [1], [0, 0, 1, 1], [], []>} : vector<1x760xf32>, vector<760x4xf32>, vector<1x4xf32> -> vector<1x4xf32>
    %cst_8 = arith.constant 0.00263157906 : f32
    %10 = vector.broadcast %cst_8 : f32 to vector<1x4xf32>
    %11 = arith.mulf %9, %10 : vector<1x4xf32>
    %c0_9 = arith.constant 0 : index
    %c0_10 = arith.constant 0 : index
    %12 = vector.load %arg2[%c0_9, %c0_10] : memref<760x4xf32, #tpu.memory_space<vmem>>, vector<760x4xf32>
    %cst_11 = arith.constant dense<0.000000e+00> : vector<1x4xf32>
    %13 = tpu.matmul %7, %12, %cst_11 {dimension_numbers = #tpu.dot_dimension_numbers<[1], [0], [0], [1], [0, 0, 1, 1], [], []>} : vector<1x760xf32>, vector<760x4xf32>, vector<1x4xf32> -> vector<1x4xf32>
    %cst_12 = arith.constant 0.00263157906 : f32
    %14 = vector.broadcast %cst_12 : f32 to vector<1x4xf32>
    %15 = arith.mulf %13, %14 : vector<1x4xf32>
    %16 = arith.mulf %11, %11 : vector<1x4xf32>
    %17 = arith.subf %15, %16 : vector<1x4xf32>
    %c0_13 = arith.constant 0 : index
    %c0_14 = arith.constant 0 : index
    %18 = vector.load %arg4[%c0_13, %c0_14] : memref<1x4xf32, #tpu.memory_space<vmem>>, vector<1x4xf32>
    %cst_15 = arith.constant 9.99999974E-6 : f32
    %19 = vector.broadcast %cst_15 : f32 to vector<1x4xf32>
    %20 = arith.addf %17, %19 : vector<1x4xf32>
    %21 = math.rsqrt %20 : vector<1x4xf32>
    %22 = arith.mulf %18, %21 : vector<1x4xf32>
    %c0_16 = arith.constant 0 : index
    %c0_17 = arith.constant 0 : index
    %23 = vector.load %arg5[%c0_16, %c0_17] : memref<1x4xf32, #tpu.memory_space<vmem>>, vector<1x4xf32>
    %24 = arith.mulf %22, %11 : vector<1x4xf32>
    %25 = arith.subf %23, %24 : vector<1x4xf32>
    %c0_18 = arith.constant 0 : index
    %c0_19 = arith.constant 0 : index
    %26 = vector.load %arg3[%c0_18, %c0_19] : memref<4x760xf32, #tpu.memory_space<vmem>>, vector<4x760xf32>
    %cst_20 = arith.constant dense<0.000000e+00> : vector<1x760xf32>
    %27 = tpu.matmul %22, %26, %cst_20 {dimension_numbers = #tpu.dot_dimension_numbers<[1], [0], [0], [1], [0, 0, 1, 1], [], []>} : vector<1x4xf32>, vector<4x760xf32>, vector<1x760xf32> -> vector<1x760xf32>
    %c0_21 = arith.constant 0 : index
    %c0_22 = arith.constant 0 : index
    %28 = vector.load %arg3[%c0_21, %c0_22] : memref<4x760xf32, #tpu.memory_space<vmem>>, vector<4x760xf32>
    %cst_23 = arith.constant dense<0.000000e+00> : vector<1x760xf32>
    %29 = tpu.matmul %25, %28, %cst_23 {dimension_numbers = #tpu.dot_dimension_numbers<[1], [0], [0], [1], [0, 0, 1, 1], [], []>} : vector<1x4xf32>, vector<4x760xf32>, vector<1x760xf32> -> vector<1x760xf32>
    %30 = vector.broadcast %27 : vector<1x760xf32> to vector<2x760xf32>
    %31 = arith.mulf %2, %30 : vector<2x760xf32>
    %32 = vector.broadcast %29 : vector<1x760xf32> to vector<2x760xf32>
    %33 = arith.addf %31, %32 : vector<2x760xf32>
    %cst_24 = arith.constant 0.000000e+00 : f32
    %34 = vector.broadcast %cst_24 : f32 to vector<2x760xf32>
    %35 = arith.maximumf %33, %34 : vector<2x760xf32>
    %c0_25 = arith.constant 0 : index
    %c0_26 = arith.constant 0 : index
    %36 = vector.load %arg6[%c0_25, %c0_26] : memref<760x380xf32, #tpu.memory_space<vmem>>, vector<760x380xf32>
    %cst_27 = arith.constant dense<0.000000e+00> : vector<2x380xf32>
    %37 = tpu.matmul %35, %36, %cst_27 {dimension_numbers = #tpu.dot_dimension_numbers<[1], [0], [0], [1], [0, 0, 1, 1], [], []>} : vector<2x760xf32>, vector<760x380xf32>, vector<2x380xf32> -> vector<2x380xf32>
    %cst_28 = arith.constant dense<0.000000e+00> : vector<380xf32>
    %38 = vector.multi_reduction <add>, %37, %cst_28 [0] : vector<2x380xf32> to vector<380xf32>
    %39 = vector.shape_cast %38 : vector<380xf32> to vector<1x380xf32>
    %40 = arith.mulf %37, %37 : vector<2x380xf32>
    %cst_29 = arith.constant dense<0.000000e+00> : vector<380xf32>
    %41 = vector.multi_reduction <add>, %40, %cst_29 [0] : vector<2x380xf32> to vector<380xf32>
    %42 = vector.shape_cast %41 : vector<380xf32> to vector<1x380xf32>
    %c0_30 = arith.constant 0 : index
    %c0_31 = arith.constant 0 : index
    %43 = vector.load %arg7[%c0_30, %c0_31] : memref<380x4xf32, #tpu.memory_space<vmem>>, vector<380x4xf32>
    %cst_32 = arith.constant dense<0.000000e+00> : vector<1x4xf32>
    %44 = tpu.matmul %39, %43, %cst_32 {dimension_numbers = #tpu.dot_dimension_numbers<[1], [0], [0], [1], [0, 0, 1, 1], [], []>} : vector<1x380xf32>, vector<380x4xf32>, vector<1x4xf32> -> vector<1x4xf32>
    %cst_33 = arith.constant 0.00526315812 : f32
    %45 = vector.broadcast %cst_33 : f32 to vector<1x4xf32>
    %46 = arith.mulf %44, %45 : vector<1x4xf32>
    %c0_34 = arith.constant 0 : index
    %c0_35 = arith.constant 0 : index
    %47 = vector.load %arg7[%c0_34, %c0_35] : memref<380x4xf32, #tpu.memory_space<vmem>>, vector<380x4xf32>
    %cst_36 = arith.constant dense<0.000000e+00> : vector<1x4xf32>
    %48 = tpu.matmul %42, %47, %cst_36 {dimension_numbers = #tpu.dot_dimension_numbers<[1], [0], [0], [1], [0, 0, 1, 1], [], []>} : vector<1x380xf32>, vector<380x4xf32>, vector<1x4xf32> -> vector<1x4xf32>
    %cst_37 = arith.constant 0.00526315812 : f32
    %49 = vector.broadcast %cst_37 : f32 to vector<1x4xf32>
    %50 = arith.mulf %48, %49 : vector<1x4xf32>
    %51 = arith.mulf %46, %46 : vector<1x4xf32>
    %52 = arith.subf %50, %51 : vector<1x4xf32>
    %c0_38 = arith.constant 0 : index
    %c0_39 = arith.constant 0 : index
    %53 = vector.load %arg9[%c0_38, %c0_39] : memref<1x4xf32, #tpu.memory_space<vmem>>, vector<1x4xf32>
    %cst_40 = arith.constant 9.99999974E-6 : f32
    %54 = vector.broadcast %cst_40 : f32 to vector<1x4xf32>
    %55 = arith.addf %52, %54 : vector<1x4xf32>
    %56 = math.rsqrt %55 : vector<1x4xf32>
    %57 = arith.mulf %53, %56 : vector<1x4xf32>
    %c0_41 = arith.constant 0 : index
    %c0_42 = arith.constant 0 : index
    %58 = vector.load %arg10[%c0_41, %c0_42] : memref<1x4xf32, #tpu.memory_space<vmem>>, vector<1x4xf32>
    %59 = arith.mulf %57, %46 : vector<1x4xf32>
    %60 = arith.subf %58, %59 : vector<1x4xf32>
    %c0_43 = arith.constant 0 : index
    %c0_44 = arith.constant 0 : index
    %61 = vector.load %arg8[%c0_43, %c0_44] : memref<4x380xf32, #tpu.memory_space<vmem>>, vector<4x380xf32>
    %cst_45 = arith.constant dense<0.000000e+00> : vector<1x380xf32>
    %62 = tpu.matmul %57, %61, %cst_45 {dimension_numbers = #tpu.dot_dimension_numbers<[1], [0], [0], [1], [0, 0, 1, 1], [], []>} : vector<1x4xf32>, vector<4x380xf32>, vector<1x380xf32> -> vector<1x380xf32>
    %c0_46 = arith.constant 0 : index
    %c0_47 = arith.constant 0 : index
    %63 = vector.load %arg8[%c0_46, %c0_47] : memref<4x380xf32, #tpu.memory_space<vmem>>, vector<4x380xf32>
    %cst_48 = arith.constant dense<0.000000e+00> : vector<1x380xf32>
    %64 = tpu.matmul %60, %63, %cst_48 {dimension_numbers = #tpu.dot_dimension_numbers<[1], [0], [0], [1], [0, 0, 1, 1], [], []>} : vector<1x4xf32>, vector<4x380xf32>, vector<1x380xf32> -> vector<1x380xf32>
    %65 = vector.broadcast %62 : vector<1x380xf32> to vector<2x380xf32>
    %66 = arith.mulf %37, %65 : vector<2x380xf32>
    %67 = vector.broadcast %64 : vector<1x380xf32> to vector<2x380xf32>
    %68 = arith.addf %66, %67 : vector<2x380xf32>
    %cst_49 = arith.constant 0.000000e+00 : f32
    %69 = vector.broadcast %cst_49 : f32 to vector<2x380xf32>
    %70 = arith.maximumf %68, %69 : vector<2x380xf32>
    %c0_50 = arith.constant 0 : index
    %c0_51 = arith.constant 0 : index
    %71 = vector.load %arg11[%c0_50, %c0_51] : memref<380x256xf32, #tpu.memory_space<vmem>>, vector<380x256xf32>
    %cst_52 = arith.constant dense<0.000000e+00> : vector<2x256xf32>
    %72 = tpu.matmul %70, %71, %cst_52 {dimension_numbers = #tpu.dot_dimension_numbers<[1], [0], [0], [1], [0, 0, 1, 1], [], []>} : vector<2x380xf32>, vector<380x256xf32>, vector<2x256xf32> -> vector<2x256xf32>
    %c0_53 = arith.constant 0 : index
    %c0_54 = arith.constant 0 : index
    %73 = vector.load %arg12[%c0_53, %c0_54] : memref<1x256xf32, #tpu.memory_space<vmem>>, vector<1x256xf32>
    %74 = vector.broadcast %73 : vector<1x256xf32> to vector<2x256xf32>
    %75 = arith.addf %72, %74 : vector<2x256xf32>
    %cst_55 = arith.constant 0.000000e+00 : f32
    %76 = vector.broadcast %cst_55 : f32 to vector<2x256xf32>
    %77 = arith.maximumf %75, %76 : vector<2x256xf32>
    %c0_56 = arith.constant 0 : index
    %c0_57 = arith.constant 0 : index
    %78 = vector.load %arg13[%c0_56, %c0_57] : memref<256x32xf32, #tpu.memory_space<vmem>>, vector<256x32xf32>
    %cst_58 = arith.constant dense<0.000000e+00> : vector<2x32xf32>
    %79 = tpu.matmul %77, %78, %cst_58 {dimension_numbers = #tpu.dot_dimension_numbers<[1], [0], [0], [1], [0, 0, 1, 1], [], []>} : vector<2x256xf32>, vector<256x32xf32>, vector<2x32xf32> -> vector<2x32xf32>
    %c0_59 = arith.constant 0 : index
    %c0_60 = arith.constant 0 : index
    %80 = vector.load %arg14[%c0_59, %c0_60] : memref<1x32xf32, #tpu.memory_space<vmem>>, vector<1x32xf32>
    %81 = vector.broadcast %80 : vector<1x32xf32> to vector<2x32xf32>
    %82 = arith.addf %79, %81 : vector<2x32xf32>
    %cst_61 = arith.constant 0.000000e+00 : f32
    %83 = vector.broadcast %cst_61 : f32 to vector<2x32xf32>
    %84 = arith.maximumf %82, %83 : vector<2x32xf32>
    %c0_62 = arith.constant 0 : index
    %c0_63 = arith.constant 0 : index
    %85 = vector.load %arg15[%c0_62, %c0_63] : memref<32x16xf32, #tpu.memory_space<vmem>>, vector<32x16xf32>
    %cst_64 = arith.constant dense<0.000000e+00> : vector<2x16xf32>
    %86 = tpu.matmul %84, %85, %cst_64 {dimension_numbers = #tpu.dot_dimension_numbers<[1], [0], [0], [1], [0, 0, 1, 1], [], []>} : vector<2x32xf32>, vector<32x16xf32>, vector<2x16xf32> -> vector<2x16xf32>
    %c0_65 = arith.constant 0 : index
    %c0_66 = arith.constant 0 : index
    %87 = vector.load %arg16[%c0_65, %c0_66] : memref<1x16xf32, #tpu.memory_space<vmem>>, vector<1x16xf32>
    %88 = vector.broadcast %87 : vector<1x16xf32> to vector<2x16xf32>
    %89 = arith.addf %86, %88 : vector<2x16xf32>
    %c0_67 = arith.constant 0 : index
    %c0_68 = arith.constant 0 : index
    %90 = vector.load %arg17[%c0_67, %c0_68] : memref<2x16xf32, #tpu.memory_space<vmem>>, vector<2x16xf32>
    tpu.vector_store %arg17[%c0_67, %c0_68], %89 {strides = array<i32>} : memref<2x16xf32, #tpu.memory_space<vmem>>, vector<2x16xf32>,
    return
  }
}

</mosaic_0001>

<bundles_post_ra>
// kernel: tpu_custom_call.1
= control target key start
LH: loop header
LB: loop body
LE: loop exit
PB: predicated region body
PF: predicated region fallthrough
CT: control target
= control target key end

     0   :  { %s8639_s0 = inlined_call_operand.vmem [shape: f32[2,380], index: 0, kind: input, shape index: {}]   ;;  %s8640_s1 = inlined_call_operand.vmem [shape: f32[380,760], index: 1, kind: input, shape index: {}]   ;;  %s8641_s2 = inlined_call_operand.vmem [shape: f32[760,4], index: 2, kind: input, shape index: {}]   ;;  %s8642_s3 = inlined_call_operand.vmem [shape: f32[4,760], index: 3, kind: input, shape index: {}]   ;;  %s8643_s4 = inlined_call_operand.vmem [shape: f32[1,4], index: 4, kind: input, shape index: {}]   ;;  %s8644_s5 = inlined_call_operand.vmem [shape: f32[1,4], index: 5, kind: input, shape index: {}]   ;;  %s8645_s6 = inlined_call_operand.vmem [shape: f32[760,380], index: 6, kind: input, shape index: {}]   ;;  %s8646_s7 = inlined_call_operand.vmem [shape: f32[380,4], index: 7, kind: input, shape index: {}]   ;;  %s8647_s8 = inlined_call_operand.vmem [shape: f32[4,380], index: 8, kind: input, shape index: {}]   ;;  %s8648_s9 = inlined_call_operand.vmem [shape: f32[1,4], index: 9, kind: input, shape index: {}]   ;;  %s8649_s10 = inlined_call_operand.vmem [shape: f32[1,4], index: 10, kind: input, shape index: {}]   ;;  %s8650_s11 = inlined_call_operand.vmem [shape: f32[380,256], index: 11, kind: input, shape index: {}]   ;;  %s8651_s12 = inlined_call_operand.vmem [shape: f32[1,256], index: 12, kind: input, shape index: {}]   ;;  %s8652_s13 = inlined_call_operand.vmem [shape: f32[256,32], index: 13, kind: input, shape index: {}]   ;;  %s8653_s14 = inlined_call_operand.vmem [shape: f32[1,32], index: 14, kind: input, shape index: {}]   ;;  %s8654_s15 = inlined_call_operand.vmem [shape: f32[32,16], index: 15, kind: input, shape index: {}]   ;;  %s8655_s16 = inlined_call_operand.vmem [shape: f32[1,16], index: 16, kind: input, shape index: {}]   ;;  %s8656_s17 = inlined_call_operand.hbm [shape: f32[2,16], index: 17, kind: output, shape index: {}]  }
   0x1   :  { %8658 = sst [smem:[#allocation5_spill]] %s8639_s0 }
   0x2   :  { %8659 = sst [smem:[#allocation6_spill]] %s8640_s1 }
   0x3   :  { %s8660_s26 = sld [smem:[#allocation6_spill]]  ;;  %v5479_v7 = vmov 0.0   ;;  %v5480_v57 = vmov 1983009808   ;;  %v351_v59 = vlaneseq  ;;  %s8661_s30 = sld [smem:[#allocation5_spill]]  ;;  %vm368_vm0 = vcmask 1043456  }
   0x4   :  { %522 = vmatprep.mubr.f32.mxu1 %v5479_v7  ;;  %v349_v58 = vunpack.c.l.s4 %v5480_v57  ;;  %vm5481_vm1 = vmmov 1   ;;  %vm365_vm3 = vcmask 1014784  }
   0x5   :  { %vm5787_vm2 = vmpackc.low %vm368_vm0, %vm5481_vm1 }
   0x9   :  { %v59_v0 = vld [vmem:[%s8660_s26 + $0x8] sm:$0xff]  ;;  %v65_v1 = vld [vmem:[%s8660_s26 + $0x38] sm:$0xff]  ;;  %v58_v5 = vld [vmem:[%s8660_s26] sm:$0xff] }
   0xa   :  { %v251_v2 = vld [vmem:[%s8660_s26 + $0x608] sm:$0xff]  ;;  %v4367_v3 = vpack.c.bf16 %v65_v1, %v59_v0  ;;  %v257_v4 = vld [vmem:[%s8660_s26 + $0x638] sm:$0xff]  ;;  %v64_v6 = vld [vmem:[%s8660_s26 + $0x30] sm:$0xff] }
   0xb   :  { %v4431_v8 = vpack.c.bf16 %v257_v4, %v251_v2  ;;  %v4369_v9 = vpack.c.bf16 %v64_v6, %v58_v5  ;;  %v250_v10 = vld [vmem:[%s8660_s26 + $0x600] sm:$0xff]  ;;  %v256_v11 = vld [vmem:[%s8660_s26 + $0x630] sm:$0xff]  ;;  %v71_v12 = vld [vmem:[%s8660_s26 + $0x68] sm:$0xff] }
   0xc   :  { %4368 = vmatprep.subr.bf16.mxu0 %v4367_v3  ;;  %v4433_v13 = vpack.c.bf16 %v256_v11, %v250_v10  ;;  %v77_v14 = vld [vmem:[%s8660_s26 + $0x98] sm:$0xff]  ;;  %v263_v15 = vld [vmem:[%s8660_s26 + $0x668] sm:$0xff]  ;;  %v70_v19 = vld [vmem:[%s8660_s26 + $0x60] sm:$0xff]  ;;  %v5717_v10 = vshrl.u32 %v351_v59, 7 }
   0xd   :  { %v269_v16 = vld [vmem:[%s8660_s26 + $0x698] sm:$0xff]  ;;  %4432 = vmatprep.subr.bf16.mxu1 %v4431_v8  ;;  %4370 = vmatpush1.bf16.msra.mxu0 %v4369_v9  ;;  %v4371_v17 = vpack.c.bf16 %v77_v14, %v71_v12  ;;  %v76_v20 = vld [vmem:[%s8660_s26 + $0x90] sm:$0xff]  ;;  %v262_v21 = vld [vmem:[%s8660_s26 + $0x660] sm:$0xff]  ;;  %v350_v9 = vunpack.c.0.s8 %v349_v58 }
   0xe   :  { %v4435_v18 = vpack.c.bf16 %v269_v16, %v263_v15  ;;  %4434 = vmatpush1.bf16.msra.mxu1 %v4433_v13  ;;  %v4373_v22 = vpack.c.bf16 %v76_v20, %v70_v19  ;;  %v268_v23 = vld [vmem:[%s8660_s26 + $0x690] sm:$0xff]  ;;  %v83_v24 = vld [vmem:[%s8660_s26 + $0xc8] sm:$0xff]  ;;  %v89_v25 = vld [vmem:[%s8660_s26 + $0xf8] sm:$0xff] }
   0xf   :  { %4372 = vmatprep.subr.bf16.mxu0 %v4371_v17  ;;  %v4437_v26 = vpack.c.bf16 %v268_v23, %v262_v21  ;;  %v4375_v27 = vpack.c.bf16 %v89_v25, %v83_v24  ;;  %v275_v28 = vld [vmem:[%s8660_s26 + $0x6c8] sm:$0xff]  ;;  %v281_v29 = vld [vmem:[%s8660_s26 + $0x6f8] sm:$0xff]  ;;  %v82_v30 = vld [vmem:[%s8660_s26 + $0xc0] sm:$0xff]  ;;  %v353_v24 = vsub.s32 %v350_v9, %v5717_v10 }
  0x10   :  { %4436 = vmatprep.subr.bf16.mxu1 %v4435_v18  ;;  %v4439_v31 = vpack.c.bf16 %v281_v29, %v275_v28  ;;  %v88_v32 = vld [vmem:[%s8660_s26 + $0xf0] sm:$0xff]  ;;  %v274_v33 = vld [vmem:[%s8660_s26 + $0x6c0] sm:$0xff]  ;;  %v95_v36 = vld [vmem:[%s8660_s26 + $0x128] sm:$0xff] }
  0x11   :  { %v280_v34 = vld [vmem:[%s8660_s26 + $0x6f0] sm:$0xff]  ;;  %4374 = vmatpush1.bf16.msra.mxu0 %v4373_v22  ;;  %v4377_v35 = vpack.c.bf16 %v88_v32, %v82_v30  ;;  %v101_v37 = vld [vmem:[%s8660_s26 + $0x158] sm:$0xff]  ;;  %v287_v38 = vld [vmem:[%s8660_s26 + $0x728] sm:$0xff] }
  0x12   :  { %4438 = vmatpush1.bf16.msra.mxu1 %v4437_v26  ;;  %4376 = vmatprep.subr.bf16.mxu0 %v4375_v27  ;;  %v4441_v39 = vpack.c.bf16 %v280_v34, %v274_v33  ;;  %v4379_v40 = vpack.c.bf16 %v101_v37, %v95_v36  ;;  %v293_v41 = vld [vmem:[%s8660_s26 + $0x758] sm:$0xff]  ;;  %v94_v42 = vld [vmem:[%s8660_s26 + $0x120] sm:$0xff]  ;;  %v100_v43 = vld [vmem:[%s8660_s26 + $0x150] sm:$0xff] }
  0x13   :  { %4440 = vmatprep.subr.bf16.mxu1 %v4439_v31  ;;  %v4443_v44 = vpack.c.bf16 %v293_v41, %v287_v38  ;;  %v286_v45 = vld [vmem:[%s8660_s26 + $0x720] sm:$0xff]  ;;  %v292_v46 = vld [vmem:[%s8660_s26 + $0x750] sm:$0xff]  ;;  %v107_v47 = vld [vmem:[%s8660_s26 + $0x188] sm:$0xff]  ;;  %v4381_v51 = vpack.c.bf16 %v100_v43, %v94_v42 }
  0x14   :  { %v113_v48 = vld [vmem:[%s8660_s26 + $0x1b8] sm:$0xff]  ;;  %v299_v49 = vld [vmem:[%s8660_s26 + $0x788] sm:$0xff]  ;;  %v4445_v52 = vpack.c.bf16 %v292_v46, %v286_v45  ;;  %v106_v54 = vld [vmem:[%s8660_s26 + $0x180] sm:$0xff] }
  0x15   :  { %v305_v50 = vld [vmem:[%s8660_s26 + $0x7b8] sm:$0xff]  ;;  %4378 = vmatpush1.bf16.msra.mxu0 %v4377_v35  ;;  %v4383_v53 = vpack.c.bf16 %v113_v48, %v107_v47  ;;  %v112_v55 = vld [vmem:[%s8660_s26 + $0x1b0] sm:$0xff]  ;;  %v298_v56 = vld [vmem:[%s8660_s26 + $0x780] sm:$0xff] }
  0x16   :  { %4442 = vmatpush1.bf16.msra.mxu1 %v4441_v39  ;;  %4380 = vmatprep.subr.bf16.mxu0 %v4379_v40  ;;  %v4447_v60 = vpack.c.bf16 %v305_v50, %v299_v49  ;;  %v304_v61 = vld [vmem:[%s8660_s26 + $0x7b0] sm:$0xff]  ;;  %v119_v62 = vld [vmem:[%s8660_s26 + $0x1e8] sm:$0xff]  ;;  %v125_v63 = vld [vmem:[%s8660_s26 + $0x218] sm:$0xff]  ;;  %v4385_v2 = vpack.c.bf16 %v112_v55, %v106_v54 }
  0x17   :  { %4444 = vmatprep.subr.bf16.mxu1 %v4443_v44  ;;  %v311_v0 = vld [vmem:[%s8660_s26 + $0x7e8] sm:$0xff]  ;;  %v317_v1 = vld [vmem:[%s8660_s26 + $0x818] sm:$0xff]  ;;  %v4449_v3 = vpack.c.bf16 %v304_v61, %v298_v56  ;;  %v4387_v4 = vpack.c.bf16 %v125_v63, %v119_v62  ;;  %v118_v5 = vld [vmem:[%s8660_s26 + $0x1e0] sm:$0xff] }
  0x18   :  { %v124_v6 = vld [vmem:[%s8660_s26 + $0x210] sm:$0xff]  ;;  %v310_v8 = vld [vmem:[%s8660_s26 + $0x7e0] sm:$0xff]  ;;  %v4451_v11 = vpack.c.bf16 %v317_v1, %v311_v0  ;;  %v131_v13 = vld [vmem:[%s8660_s26 + $0x248] sm:$0xff] }
  0x19   :  { %4382 = vmatpush1.bf16.msra.mxu0 %v4381_v51  ;;  %v316_v12 = vld [vmem:[%s8660_s26 + $0x810] sm:$0xff]  ;;  %v137_v14 = vld [vmem:[%s8660_s26 + $0x278] sm:$0xff]  ;;  %v323_v15 = vld [vmem:[%s8660_s26 + $0x848] sm:$0xff]  ;;  %v4389_v17 = vpack.c.bf16 %v124_v6, %v118_v5 }
  0x1a   :  { %4446 = vmatpush1.bf16.msra.mxu1 %v4445_v52  ;;  %4384 = vmatprep.subr.bf16.mxu0 %v4383_v53  ;;  %v329_v16 = vld [vmem:[%s8660_s26 + $0x878] sm:$0xff]  ;;  %v130_v18 = vld [vmem:[%s8660_s26 + $0x240] sm:$0xff]  ;;  %v4453_v19 = vpack.c.bf16 %v316_v12, %v310_v8  ;;  %v4391_v20 = vpack.c.bf16 %v137_v14, %v131_v13  ;;  %v136_v21 = vld [vmem:[%s8660_s26 + $0x270] sm:$0xff] }
  0x1b   :  { %4448 = vmatprep.subr.bf16.mxu1 %v4447_v60  ;;  %v322_v22 = vld [vmem:[%s8660_s26 + $0x840] sm:$0xff]  ;;  %v328_v23 = vld [vmem:[%s8660_s26 + $0x870] sm:$0xff]  ;;  %v4455_v25 = vpack.c.bf16 %v329_v16, %v323_v15  ;;  %v143_v26 = vld [vmem:[%s8660_s26 + $0x2a8] sm:$0xff]  ;;  %v4393_v32 = vpack.c.bf16 %v136_v21, %v130_v18 }
  0x1c   :  { %v149_v27 = vld [vmem:[%s8660_s26 + $0x2d8] sm:$0xff]  ;;  %v57_v28 = vld [vmem:[%s8661_s30] sm:$0x3f]  ;;  %v335_v29 = vld [vmem:[%s8660_s26 + $0x8a8] sm:$0xff]  ;;  %v4457_v33 = vpack.c.bf16 %v328_v23, %v322_v22 }
  0x1d   :  { %4386 = vmatpush1.bf16.msra.mxu0 %v4385_v2  ;;  %v341_v30 = vld [vmem:[%s8660_s26 + $0x8d8] sm:$0xf]  ;;  %v5762_v31 = vrot.slane %v57_v28, %v353_v24  ;;  %v4395_v34 = vpack.c.bf16 %v149_v27, %v143_v26  ;;  %v142_v35 = vld [vmem:[%s8660_s26 + $0x2a0] sm:$0xff]  ;;  %v148_v36 = vld [vmem:[%s8660_s26 + $0x2d0] sm:$0xff]  ;;  %v347_v47 = vcombine.high %v57_v28, %v57_v28 }
  0x1e   :  { %4450 = vmatpush1.bf16.msra.mxu1 %v4449_v3  ;;  %4388 = vmatprep.subr.bf16.mxu0 %v4387_v4  ;;  %v334_v37 = vld [vmem:[%s8660_s26 + $0x8a0] sm:$0xff]  ;;  %v4459_v39 = vpack.c.bf16 %v341_v30, %v335_v29  ;;  %v340_v40 = vld [vmem:[%s8660_s26 + $0x8d0] sm:$0xf]  ;;  %v155_v41 = vld [vmem:[%s8660_s26 + $0x308] sm:$0xff]  ;;  %v4397_v46 = vpack.c.bf16 %v148_v36, %v142_v35 }
  0x1f   :  { %4452 = vmatprep.subr.bf16.mxu1 %v4451_v11  ;;  %v5775_v38 = vcombine.high %v5762_v31, %v5762_v31  ;;  %v161_v42 = vld [vmem:[%s8660_s26 + $0x338] sm:$0xff]  ;;  %v67_v45 = vld [vmem:[%s8660_s26 + $0x48] sm:$0xff]  ;;  %v4462_v48 = vpack.c.bf16 %v340_v40, %v334_v37  ;;  %v154_v50 = vld [vmem:[%s8660_s26 + $0x300] sm:$0xff]  ;;  %v5824_v59 = vrot.slane %v347_v47, %v353_v24 }
  0x20   :  { %v61_v44 = vld [vmem:[%s8660_s26 + $0x18] sm:$0xff]  ;;  %v4399_v49 = vpack.c.bf16 %v161_v42, %v155_v41  ;;  %v160_v51 = vld [vmem:[%s8660_s26 + $0x330] sm:$0xff]  ;;  %v66_v54 = vld [vmem:[%s8660_s26 + $0x40] sm:$0xff] }
  0x21   :  { %4390 = vmatpush1.bf16.msra.mxu0 %v4389_v17  ;;  %451 = vmatprep.mubr.f32.mxu0 %v5775_v38  ;;  %v60_v52 = vld [vmem:[%s8660_s26 + $0x10] sm:$0xff]  ;;  %v4465_v53 = vpack.c.bf16 %v67_v45, %v61_v44  ;;  %v167_v55 = vld [vmem:[%s8660_s26 + $0x368] sm:$0xff]  ;;  %v173_v56 = vld [vmem:[%s8660_s26 + $0x398] sm:$0xff]  ;;  %v4401_v60 = vpack.c.bf16 %v160_v51, %v154_v50 }
  0x22   :  { %4454 = vmatpush1.bf16.msra.mxu1 %v4453_v19  ;;  %4392 = vmatprep.subr.bf16.mxu0 %v4391_v20  ;;  %v73_v57 = vld [vmem:[%s8660_s26 + $0x78] sm:$0xff]  ;;  %v79_v58 = vld [vmem:[%s8660_s26 + $0xa8] sm:$0xff]  ;;  %v4467_v61 = vpack.c.bf16 %v66_v54, %v60_v52  ;;  %v4403_v62 = vpack.c.bf16 %v173_v56, %v167_v55  ;;  %v166_v63 = vld [vmem:[%s8660_s26 + $0x360] sm:$0xff] }
  0x23   :  { %4456 = vmatprep.subr.bf16.mxu1 %v4455_v25  ;;  %v172_v0 = vld [vmem:[%s8660_s26 + $0x390] sm:$0xff]  ;;  %v4469_v2 = vpack.c.bf16 %v79_v58, %v73_v57  ;;  %v78_v3 = vld [vmem:[%s8660_s26 + $0xa0] sm:$0xff]  ;;  %v179_v4 = vld [vmem:[%s8660_s26 + $0x3c8] sm:$0xff] }
  0x24   :  { %v72_v1 = vld [vmem:[%s8660_s26 + $0x70] sm:$0xff]  ;;  %v185_v5 = vld [vmem:[%s8660_s26 + $0x3f8] sm:$0xff]  ;;  %v91_v8 = vld [vmem:[%s8660_s26 + $0x108] sm:$0xff]  ;;  %v4405_v9 = vpack.c.bf16 %v172_v0, %v166_v63 }
  0x25   :  { %4394 = vmatpush1.bf16.msra.mxu0 %v4393_v32  ;;  %v85_v6 = vld [vmem:[%s8660_s26 + $0xd8] sm:$0xff]  ;;  %v4471_v11 = vpack.c.bf16 %v78_v3, %v72_v1  ;;  %v4407_v12 = vpack.c.bf16 %v185_v5, %v179_v4  ;;  %v178_v13 = vld [vmem:[%s8660_s26 + $0x3c0] sm:$0xff]  ;;  %v184_v14 = vld [vmem:[%s8660_s26 + $0x3f0] sm:$0xff] }
  0x26   :  { %4458 = vmatpush1.bf16.msra.mxu1 %v4457_v33  ;;  %4396 = vmatprep.subr.bf16.mxu0 %v4395_v34  ;;  %v84_v15 = vld [vmem:[%s8660_s26 + $0xd0] sm:$0xff]  ;;  %v4473_v16 = vpack.c.bf16 %v91_v8, %v85_v6  ;;  %v90_v17 = vld [vmem:[%s8660_s26 + $0x100] sm:$0xff]  ;;  %v191_v18 = vld [vmem:[%s8660_s26 + $0x428] sm:$0xff]  ;;  %v4409_v22 = vpack.c.bf16 %v184_v14, %v178_v13 }
  0x27   :  { %4461 = vmatprep.subr.msk.bf16.mxu1 %vm5787_vm2, %v4459_v39  ;;  %v197_v19 = vld [vmem:[%s8660_s26 + $0x458] sm:$0xff]  ;;  %v103_v21 = vld [vmem:[%s8660_s26 + $0x168] sm:$0xff]  ;;  %v4475_v23 = vpack.c.bf16 %v90_v17, %v84_v15  ;;  %v190_v25 = vld [vmem:[%s8660_s26 + $0x420] sm:$0xff] }
  0x28   :  { %v97_v20 = vld [vmem:[%s8660_s26 + $0x138] sm:$0xff]  ;;  %v4411_v24 = vpack.c.bf16 %v197_v19, %v191_v18  ;;  %v196_v26 = vld [vmem:[%s8660_s26 + $0x450] sm:$0xff]  ;;  %v102_v29 = vld [vmem:[%s8660_s26 + $0x160] sm:$0xff] }
  0x29   :  { %4398 = vmatpush1.bf16.msra.mxu0 %v4397_v46  ;;  %v96_v27 = vld [vmem:[%s8660_s26 + $0x130] sm:$0xff]  ;;  %v4477_v28 = vpack.c.bf16 %v103_v21, %v97_v20  ;;  %v203_v30 = vld [vmem:[%s8660_s26 + $0x488] sm:$0xff]  ;;  %v209_v32 = vld [vmem:[%s8660_s26 + $0x4b8] sm:$0xff]  ;;  %v4413_v35 = vpack.c.bf16 %v196_v26, %v190_v25 }
  0x2a   :  { %4464 = vmatpush1.bf16.msk.msra.mxu1 %vm5787_vm2, %v4462_v48  ;;  %4400 = vmatprep.subr.bf16.mxu0 %v4399_v49  ;;  %v109_v33 = vld [vmem:[%s8660_s26 + $0x198] sm:$0xff]  ;;  %v115_v34 = vld [vmem:[%s8660_s26 + $0x1c8] sm:$0xff]  ;;  %v4479_v36 = vpack.c.bf16 %v102_v29, %v96_v27  ;;  %v4415_v37 = vpack.c.bf16 %v209_v32, %v203_v30  ;;  %v202_v39 = vld [vmem:[%s8660_s26 + $0x480] sm:$0xff] }
  0x2b   :  { %4466 = vmatprep.subr.bf16.mxu1 %v4465_v53  ;;  %v208_v40 = vld [vmem:[%s8660_s26 + $0x4b0] sm:$0xff]  ;;  %v4481_v42 = vpack.c.bf16 %v115_v34, %v109_v33  ;;  %v114_v44 = vld [vmem:[%s8660_s26 + $0x1c0] sm:$0xff]  ;;  %v215_v45 = vld [vmem:[%s8660_s26 + $0x4e8] sm:$0xff] }
  0x2c   :  { %v108_v41 = vld [vmem:[%s8660_s26 + $0x190] sm:$0xff]  ;;  %v221_v46 = vld [vmem:[%s8660_s26 + $0x518] sm:$0xff]  ;;  %v127_v48 = vld [vmem:[%s8660_s26 + $0x228] sm:$0xff]  ;;  %v4417_v49 = vpack.c.bf16 %v208_v40, %v202_v39 }
  0x2d   :  { %3869 = vmatmul.mubr.msk.f32.vlgmr.msra.gmra.mrb[0].mxu1 %vm365_vm3, %v5824_v59  ;;  %4402 = vmatpush1.bf16.msra.mxu0 %v4401_v60  ;;  %v121_v47 = vld [vmem:[%s8660_s26 + $0x1f8] sm:$0xff]  ;;  %v4483_v50 = vpack.c.bf16 %v114_v44, %v108_v41  ;;  %v4419_v51 = vpack.c.bf16 %v221_v46, %v215_v45  ;;  %v214_v52 = vld [vmem:[%s8660_s26 + $0x4e0] sm:$0xff]  ;;  %v220_v53 = vld [vmem:[%s8660_s26 + $0x510] sm:$0xff] }
  0x2e   :  { %4468 = vmatpush1.bf16.msra.mxu1 %v4467_v61  ;;  %4404 = vmatprep.subr.bf16.mxu0 %v4403_v62  ;;  %v120_v54 = vld [vmem:[%s8660_s26 + $0x1f0] sm:$0xff]  ;;  %v4485_v55 = vpack.c.bf16 %v127_v48, %v121_v47  ;;  %v126_v56 = vld [vmem:[%s8660_s26 + $0x220] sm:$0xff]  ;;  %v227_v57 = vld [vmem:[%s8660_s26 + $0x548] sm:$0xff]  ;;  %v4421_v62 = vpack.c.bf16 %v220_v53, %v214_v52 }
  0x2f   :  { %4470 = vmatprep.subr.bf16.mxu1 %v4469_v2  ;;  %593 = vmatprep.mubr.f32.mxu1 %v5775_v38  ;;  %v233_v58 = vld [vmem:[%s8660_s26 + $0x578] sm:$0xff]  ;;  %v139_v61 = vld [vmem:[%s8660_s26 + $0x288] sm:$0xff]  ;;  %v4487_v63 = vpack.c.bf16 %v126_v56, %v120_v54  ;;  %v226_v1 = vld [vmem:[%s8660_s26 + $0x540] sm:$0xff] }
  0x30   :  { %v133_v60 = vld [vmem:[%s8660_s26 + $0x258] sm:$0xff]  ;;  %v4423_v0 = vpack.c.bf16 %v233_v58, %v227_v57  ;;  %v232_v2 = vld [vmem:[%s8660_s26 + $0x570] sm:$0xff]  ;;  %v138_v5 = vld [vmem:[%s8660_s26 + $0x280] sm:$0xff] }
  0x31   :  { %4406 = vmatpush1.bf16.msra.mxu0 %v4405_v9  ;;  %v132_v3 = vld [vmem:[%s8660_s26 + $0x250] sm:$0xff]  ;;  %v4489_v4 = vpack.c.bf16 %v139_v61, %v133_v60  ;;  %v239_v6 = vld [vmem:[%s8660_s26 + $0x5a8] sm:$0xff]  ;;  %v245_v8 = vld [vmem:[%s8660_s26 + $0x5d8] sm:$0xff] }
  0x32   :  { %4472 = vmatpush1.bf16.msra.mxu1 %v4471_v11  ;;  %4408 = vmatprep.subr.bf16.mxu0 %v4407_v12  ;;  %v145_v9 = vld [vmem:[%s8660_s26 + $0x2b8] sm:$0xff]  ;;  %v151_v11 = vld [vmem:[%s8660_s26 + $0x2e8] sm:$0xff]  ;;  %v4425_v12 = vpack.c.bf16 %v232_v2, %v226_v1  ;;  %v4491_v13 = vpack.c.bf16 %v138_v5, %v132_v3  ;;  %v4427_v14 = vpack.c.bf16 %v245_v8, %v239_v6  ;;  %v238_v15 = vld [vmem:[%s8660_s26 + $0x5a0] sm:$0xff] }
  0x33   :  { %4474 = vmatprep.subr.bf16.mxu1 %v4473_v16  ;;  %v244_v16 = vld [vmem:[%s8660_s26 + $0x5d0] sm:$0xff]  ;;  %v4493_v18 = vpack.c.bf16 %v151_v11, %v145_v9  ;;  %v150_v19 = vld [vmem:[%s8660_s26 + $0x2e0] sm:$0xff]  ;;  %v63_v20 = vld [vmem:[%s8660_s26 + $0x28] sm:$0xff] }
  0x34   :  { %v144_v17 = vld [vmem:[%s8660_s26 + $0x2b0] sm:$0xff]  ;;  %v69_v21 = vld [vmem:[%s8660_s26 + $0x58] sm:$0xff]  ;;  %v162_v32 = vld [vmem:[%s8660_s26 + $0x340] sm:$0xff] }
  0x35   :  { %4410 = vmatpush1.bf16.msra.mxu0 %v4409_v22  ;;  %v157_v22 = vld [vmem:[%s8660_s26 + $0x318] sm:$0xff]  ;;  %v4495_v25 = vpack.c.bf16 %v150_v19, %v144_v17  ;;  %v4563_v26 = vpack.c.bf16 %v69_v21, %v63_v20  ;;  %v156_v27 = vld [vmem:[%s8660_s26 + $0x310] sm:$0xff]  ;;  %v75_v33 = vld [vmem:[%s8660_s26 + $0x88] sm:$0xff] }
  0x36   :  { %4476 = vmatpush1.bf16.msra.mxu1 %v4475_v23  ;;  %4412 = vmatprep.subr.bf16.mxu0 %v4411_v24  ;;  %v163_v23 = vld [vmem:[%s8660_s26 + $0x348] sm:$0xff]  ;;  %v4429_v24 = vpack.c.bf16 %v244_v16, %v238_v15  ;;  %v68_v29 = vld [vmem:[%s8660_s26 + $0x50] sm:$0xff]  ;;  %v81_v34 = vld [vmem:[%s8660_s26 + $0xb8] sm:$0xff]  ;;  %v4499_v39 = vpack.c.bf16 %v162_v32, %v156_v27 }
  0x37   :  { %4478 = vmatprep.subr.bf16.mxu1 %v4477_v28  ;;  %v62_v28 = vld [vmem:[%s8660_s26 + $0x20] sm:$0xff]  ;;  %v4497_v30 = vpack.c.bf16 %v163_v23, %v157_v22  ;;  %v4567_v40 = vpack.c.bf16 %v81_v34, %v75_v33  ;;  %v168_v41 = vld [vmem:[%s8660_s26 + $0x370] sm:$0xff]  ;;  %v87_v47 = vld [vmem:[%s8660_s26 + $0xe8] sm:$0xff] }
  0x38   :  { %v80_v44 = vld [vmem:[%s8660_s26 + $0xb0] sm:$0xff]  ;;  %v174_v46 = vld [vmem:[%s8660_s26 + $0x3a0] sm:$0xff]  ;;  %v93_v48 = vld [vmem:[%s8660_s26 + $0x118] sm:$0xff] }
  0x39   :  { %4414 = vmatpush1.bf16.msra.mxu0 %v4413_v35  ;;  %v169_v35 = vld [vmem:[%s8660_s26 + $0x378] sm:$0xff]  ;;  %v4503_v52 = vpack.c.bf16 %v174_v46, %v168_v41  ;;  %v4571_v53 = vpack.c.bf16 %v93_v48, %v87_v47  ;;  %v180_v54 = vld [vmem:[%s8660_s26 + $0x3d0] sm:$0xff]  ;;  %v99_v58 = vld [vmem:[%s8660_s26 + $0x148] sm:$0xff] }
  0x3a   :  { %4480 = vmatpush1.bf16.msra.mxu1 %v4479_v36  ;;  %4416 = vmatprep.subr.bf16.mxu0 %v4415_v37  ;;  %v175_v36 = vld [vmem:[%s8660_s26 + $0x3a8] sm:$0xff]  ;;  %v4565_v37 = vpack.c.bf16 %v68_v29, %v62_v28  ;;  %v92_v56 = vld [vmem:[%s8660_s26 + $0x110] sm:$0xff]  ;;  %v105_v60 = vld [vmem:[%s8660_s26 + $0x178] sm:$0xff] }
  0x3b   :  { %4482 = vmatprep.subr.bf16.mxu1 %v4481_v42  ;;  %v74_v42 = vld [vmem:[%s8660_s26 + $0x80] sm:$0xff]  ;;  %v4501_v45 = vpack.c.bf16 %v175_v36, %v169_v35  ;;  %v193_v61 = vld [vmem:[%s8660_s26 + $0x438] sm:$0xff]  ;;  %v4575_v1 = vpack.c.bf16 %v105_v60, %v99_v58  ;;  %v192_v2 = vld [vmem:[%s8660_s26 + $0x430] sm:$0xff] }
  0x3c   :  { %v98_v3 = vld [vmem:[%s8660_s26 + $0x140] sm:$0xff]  ;;  %v111_v8 = vld [vmem:[%s8660_s26 + $0x1a8] sm:$0xff]  ;;  %v117_v9 = vld [vmem:[%s8660_s26 + $0x1d8] sm:$0xff] }
  0x3d   :  { %4418 = vmatpush1.bf16.msra.mxu0 %v4417_v49  ;;  %v181_v49 = vld [vmem:[%s8660_s26 + $0x3d8] sm:$0xff]  ;;  %v198_v6 = vld [vmem:[%s8660_s26 + $0x460] sm:$0xff]  ;;  %v4579_v15 = vpack.c.bf16 %v117_v9, %v111_v8  ;;  %v204_v16 = vld [vmem:[%s8660_s26 + $0x490] sm:$0xff] }
  0x3e   :  { %4484 = vmatpush1.bf16.msra.mxu1 %v4483_v50  ;;  %4420 = vmatprep.subr.bf16.mxu0 %v4419_v51  ;;  %v187_v50 = vld [vmem:[%s8660_s26 + $0x408] sm:$0xff]  ;;  %v4569_v51 = vpack.c.bf16 %v80_v44, %v74_v42  ;;  %v205_v11 = vld [vmem:[%s8660_s26 + $0x498] sm:$0xff]  ;;  %v110_v17 = vld [vmem:[%s8660_s26 + $0x1a0] sm:$0xff] }
  0x3f   :  { %4486 = vmatprep.subr.bf16.mxu1 %v4485_v55  ;;  %v86_v55 = vld [vmem:[%s8660_s26 + $0xe0] sm:$0xff]  ;;  %v4505_v57 = vpack.c.bf16 %v187_v50, %v181_v49  ;;  %v123_v21 = vld [vmem:[%s8660_s26 + $0x208] sm:$0xff]  ;;  %v129_v22 = vld [vmem:[%s8660_s26 + $0x238] sm:$0xff] }
  0x40   :  { %v210_v20 = vld [vmem:[%s8660_s26 + $0x4c0] sm:$0xff]  ;;  %v217_v23 = vld [vmem:[%s8660_s26 + $0x4f8] sm:$0xff]  ;;  %v4583_v27 = vpack.c.bf16 %v129_v22, %v123_v21  ;;  %v216_v28 = vld [vmem:[%s8660_s26 + $0x4f0] sm:$0xff] }
  0x41   :  { %4422 = vmatpush1.bf16.msra.mxu0 %v4421_v62  ;;  %v199_v62 = vld [vmem:[%s8660_s26 + $0x468] sm:$0xff]  ;;  %v122_v29 = vld [vmem:[%s8660_s26 + $0x200] sm:$0xff]  ;;  %v141_v35 = vld [vmem:[%s8660_s26 + $0x298] sm:$0xff] }
  0x42   :  { %4488 = vmatpush1.bf16.msra.mxu1 %v4487_v63  ;;  %4424 = vmatprep.subr.bf16.mxu0 %v4423_v0  ;;  %v4573_v63 = vpack.c.bf16 %v92_v56, %v86_v55  ;;  %v4509_v5 = vpack.c.bf16 %v199_v62, %v193_v61  ;;  %v222_v33 = vld [vmem:[%s8660_s26 + $0x520] sm:$0xff]  ;;  %v135_v34 = vld [vmem:[%s8660_s26 + $0x268] sm:$0xff]  ;;  %v229_v36 = vld [vmem:[%s8660_s26 + $0x558] sm:$0xff] }
  0x43   :  { %4490 = vmatprep.subr.bf16.mxu1 %v4489_v4  ;;  %v104_v4 = vld [vmem:[%s8660_s26 + $0x170] sm:$0xff]  ;;  %v4587_v41 = vpack.c.bf16 %v141_v35, %v135_v34  ;;  %v134_v44 = vld [vmem:[%s8660_s26 + $0x260] sm:$0xff]  ;;  %v147_v48 = vld [vmem:[%s8660_s26 + $0x2c8] sm:$0xff] }
  0x44   :  { %v228_v42 = vld [vmem:[%s8660_s26 + $0x550] sm:$0xff]  ;;  %v234_v47 = vld [vmem:[%s8660_s26 + $0x580] sm:$0xff]  ;;  %v153_v49 = vld [vmem:[%s8660_s26 + $0x2f8] sm:$0xff] }
  0x45   :  { %4426 = vmatpush1.bf16.msra.mxu0 %v4425_v12  ;;  %v211_v12 = vld [vmem:[%s8660_s26 + $0x4c8] sm:$0xff]  ;;  %v241_v50 = vld [vmem:[%s8660_s26 + $0x5b8] sm:$0xff]  ;;  %v240_v55 = vld [vmem:[%s8660_s26 + $0x5b0] sm:$0xff] }
  0x46   :  { %4492 = vmatpush1.bf16.msra.mxu1 %v4491_v13  ;;  %4428 = vmatprep.subr.bf16.mxu0 %v4427_v14  ;;  %v4577_v13 = vpack.c.bf16 %v104_v4, %v98_v3  ;;  %v4511_v14 = vpack.c.bf16 %v198_v6, %v192_v2  ;;  %v4513_v19 = vpack.c.bf16 %v211_v12, %v205_v11  ;;  %v146_v56 = vld [vmem:[%s8660_s26 + $0x2c0] sm:$0xff]  ;;  %v159_v60 = vld [vmem:[%s8660_s26 + $0x328] sm:$0xff]  ;;  %v165_v61 = vld [vmem:[%s8660_s26 + $0x358] sm:$0xff] }
  0x47   :  { %4494 = vmatprep.subr.bf16.mxu1 %v4493_v18  ;;  %v116_v18 = vld [vmem:[%s8660_s26 + $0x1d0] sm:$0xff]  ;;  %v246_v58 = vld [vmem:[%s8660_s26 + $0x5e0] sm:$0xff]  ;;  %v253_v62 = vld [vmem:[%s8660_s26 + $0x618] sm:$0xff]  ;;  %v4595_v2 = vpack.c.bf16 %v165_v61, %v159_v60 }
  0x48   :  { %v252_v3 = vld [vmem:[%s8660_s26 + $0x610] sm:$0xff]  ;;  %v158_v4 = vld [vmem:[%s8660_s26 + $0x320] sm:$0xff]  ;;  %v171_v9 = vld [vmem:[%s8660_s26 + $0x388] sm:$0xff] }
  0x49   :  { %4430 = vmatpush1.bf16.msra.mxu0 %v4429_v24  ;;  %v223_v24 = vld [vmem:[%s8660_s26 + $0x528] sm:$0xff]  ;;  %v258_v8 = vld [vmem:[%s8660_s26 + $0x640] sm:$0xff]  ;;  %v177_v11 = vld [vmem:[%s8660_s26 + $0x3b8] sm:$0xff] }
  0x4a   :  { %4496 = vmatpush1.bf16.msra.mxu1 %v4495_v25  ;;  %4564 = vmatprep.subr.bf16.mxu0 %v4563_v26  ;;  %v4581_v25 = vpack.c.bf16 %v116_v18, %v110_v17  ;;  %v4515_v26 = vpack.c.bf16 %v210_v20, %v204_v16  ;;  %v4517_v32 = vpack.c.bf16 %v223_v24, %v217_v23  ;;  %v265_v12 = vld [vmem:[%s8660_s26 + $0x678] sm:$0xff] }
  0x4b   :  { %4498 = vmatprep.subr.bf16.mxu1 %v4497_v30  ;;  %v128_v30 = vld [vmem:[%s8660_s26 + $0x230] sm:$0xff] }
  0x4c   :  { %452 = vmatmul.mubr.f32.vlgmr.msra.gmra.mrb[0].mxu0 %v5762_v31 }
  0x4d   :  { %4566 = vmatpush1.bf16.msra.mxu0 %v4565_v37  ;;  %735 = vmatprep.mubr.f32.mxu0 %v5775_v38  ;;  %v186_v38 = vld [vmem:[%s8660_s26 + $0x400] sm:$0xff]  ;;  %v235_v37 = vld [vmem:[%s8660_s26 + $0x588] sm:$0xff] }
  0x4e   :  { %4500 = vmatpush1.bf16.msra.mxu1 %v4499_v39  ;;  %4568 = vmatprep.subr.bf16.mxu0 %v4567_v40  ;;  %v4507_v0 = vpack.c.bf16 %v186_v38, %v180_v54  ;;  %v4585_v39 = vpack.c.bf16 %v128_v30, %v122_v29  ;;  %v4519_v40 = vpack.c.bf16 %v222_v33, %v216_v28 }
  0x4f   :  { %4502 = vmatprep.subr.bf16.mxu1 %v4501_v45  ;;  %v140_v45 = vld [vmem:[%s8660_s26 + $0x290] sm:$0xff]  ;;  %v4521_v46 = vpack.c.bf16 %v235_v37, %v229_v36  ;;  %v4591_v54 = vpack.c.bf16 %v153_v49, %v147_v48 }
  0x51   :  { %4570 = vmatpush1.bf16.msra.mxu0 %v4569_v51  ;;  %v247_v51 = vld [vmem:[%s8660_s26 + $0x5e8] sm:$0xff] }
  0x52   :  { %4504 = vmatpush1.bf16.msra.mxu1 %v4503_v52  ;;  %4572 = vmatprep.subr.bf16.mxu0 %v4571_v53  ;;  %v4589_v52 = vpack.c.bf16 %v140_v45, %v134_v44  ;;  %v4523_v53 = vpack.c.bf16 %v234_v47, %v228_v42  ;;  %v4525_v38 = vpack.c.bf16 %v247_v51, %v241_v50 }
  0x53   :  { %4506 = vmatprep.subr.bf16.mxu1 %v4505_v57  ;;  %v152_v57 = vld [vmem:[%s8660_s26 + $0x2f0] sm:$0xff] }
  0x55   :  { %4574 = vmatpush1.bf16.msra.mxu0 %v4573_v63  ;;  %v259_v63 = vld [vmem:[%s8660_s26 + $0x648] sm:$0xff] }
  0x56   :  { %4508 = vmatpush1.bf16.msra.mxu1 %v4507_v0  ;;  %4576 = vmatprep.subr.bf16.mxu0 %v4575_v1  ;;  %v4593_v0 = vpack.c.bf16 %v152_v57, %v146_v56  ;;  %v4527_v1 = vpack.c.bf16 %v246_v58, %v240_v55  ;;  %v4529_v6 = vpack.c.bf16 %v259_v63, %v253_v62 }
  0x57   :  { %4510 = vmatprep.subr.bf16.mxu1 %v4509_v5  ;;  %v164_v5 = vld [vmem:[%s8660_s26 + $0x350] sm:$0xff] }
  0x59   :  { %4578 = vmatpush1.bf16.msra.mxu0 %v4577_v13  ;;  %v271_v13 = vld [vmem:[%s8660_s26 + $0x6a8] sm:$0xff] }
  0x5a   :  { %4512 = vmatpush1.bf16.msra.mxu1 %v4511_v14  ;;  %4580 = vmatprep.subr.bf16.mxu0 %v4579_v15  ;;  %v4597_v14 = vpack.c.bf16 %v164_v5, %v158_v4 }
  0x5b   :  { %4514 = vmatprep.subr.bf16.mxu1 %v4513_v19 }
  0x5d   :  { %4582 = vmatpush1.bf16.msra.mxu0 %v4581_v25 }
  0x5e   :  { %4516 = vmatpush1.bf16.msra.mxu1 %v4515_v26  ;;  %4584 = vmatprep.subr.bf16.mxu0 %v4583_v27 }
  0x5f   :  { %4518 = vmatprep.subr.bf16.mxu1 %v4517_v32 }
  0x61   :  { %4586 = vmatpush1.bf16.msra.mxu0 %v4585_v39 }
  0x62   :  { %4520 = vmatpush1.bf16.msra.mxu1 %v4519_v40  ;;  %4588 = vmatprep.subr.bf16.mxu0 %v4587_v41 }
  0x63   :  { %4522 = vmatprep.subr.bf16.mxu1 %v4521_v46 }
  0x65   :  { %4590 = vmatpush1.bf16.msra.mxu0 %v4589_v52 }
  0x66   :  { %4524 = vmatpush1.bf16.msra.mxu1 %v4523_v53  ;;  %4592 = vmatprep.subr.bf16.mxu0 %v4591_v54 }
  0x67   :  { %4526 = vmatprep.subr.bf16.mxu1 %v4525_v38 }
  0x69   :  { %4594 = vmatpush1.bf16.msra.mxu0 %v4593_v0 }
  0x6a   :  { %22 = vsyncpa [#allocation3], 0  ;;  %4528 = vmatpush1.bf16.msra.mxu1 %v4527_v1  ;;  %4596 = vmatprep.subr.bf16.mxu0 %v4595_v2  ;;  %v4531_v15 = vpack.c.bf16 %v258_v8, %v252_v3  ;;  %v4599_v16 = vpack.c.bf16 %v177_v11, %v171_v9  ;;  %v264_v17 = vld [vmem:[%s8660_s26 + $0x670] sm:$0xff]  ;;  %v170_v18 = vld [vmem:[%s8660_s26 + $0x380] sm:$0xff]  ;;  %v4533_v20 = vpack.c.bf16 %v271_v13, %v265_v12  ;;  %vm813_vm4 = vcmask 1041408  }
  0x6b   :  { %v176_v19 = vld [vmem:[%s8660_s26 + $0x3b0] sm:$0xff]  ;;  %4530 = vmatprep.subr.bf16.mxu1 %v4529_v6  ;;  %v270_v21 = vld [vmem:[%s8660_s26 + $0x6a0] sm:$0xff]  ;;  %v183_v22 = vld [vmem:[%s8660_s26 + $0x3e8] sm:$0xff]  ;;  %vm849_vm5 = vcmask 975872   ;;  %vm1000_vm6 = vcmask 982016   ;;  %vm1447_vm7 = vcmask 31744  }
  0x6c   :  { %v189_v23 = vld [vmem:[%s8660_s26 + $0x418] sm:$0xff]  ;;  %v283_v25 = vld [vmem:[%s8660_s26 + $0x708] sm:$0xff]  ;;  %v4601_v26 = vpack.c.bf16 %v176_v19, %v170_v18  ;;  %v4535_v27 = vpack.c.bf16 %v270_v21, %v264_v17  ;;  %v276_v29 = vld [vmem:[%s8660_s26 + $0x6d0] sm:$0xff]  ;;  %vm5483_vm8 = vmmov 0   ;;  %vm2683_vm9 = vcmask 1008640  }
  0x6d   :  { %v277_v24 = vld [vmem:[%s8660_s26 + $0x6d8] sm:$0xff]  ;;  %594 = vmatmul.mubr.f32.vlgmr.msra.gmra.mrb[2].mxu1 %v5762_v31  ;;  %4598 = vmatpush1.bf16.msra.mxu0 %v4597_v14  ;;  %v4603_v28 = vpack.c.bf16 %v189_v23, %v183_v22  ;;  %v182_v30 = vld [vmem:[%s8660_s26 + $0x3e0] sm:$0xff]  ;;  %v188_v32 = vld [vmem:[%s8660_s26 + $0x410] sm:$0xff]  ;;  %vm3777_vm10 = vcmask 261120   ;;  %vm3851_vm11 = vcmask 123904  }
  0x6e   :  { %4532 = vmatpush1.bf16.msra.mxu1 %v4531_v15  ;;  %4600 = vmatprep.subr.bf16.mxu0 %v4599_v16  ;;  %v4537_v33 = vpack.c.bf16 %v283_v25, %v277_v24  ;;  %v282_v34 = vld [vmem:[%s8660_s26 + $0x700] sm:$0xff]  ;;  %v195_v35 = vld [vmem:[%s8660_s26 + $0x448] sm:$0xff]  ;;  %v201_v36 = vld [vmem:[%s8660_s26 + $0x478] sm:$0xff]  ;;  %v4605_v40 = vpack.c.bf16 %v188_v32, %v182_v30 }
  0x6f   :  { %4534 = vmatprep.subr.bf16.mxu1 %v4533_v20  ;;  %664 = vmatprep.mubr.f32.mxu1 %v5479_v7  ;;  %v289_v37 = vld [vmem:[%s8660_s26 + $0x738] sm:$0xff]  ;;  %v295_v39 = vld [vmem:[%s8660_s26 + $0x768] sm:$0xff]  ;;  %v4539_v41 = vpack.c.bf16 %v282_v34, %v276_v29  ;;  %v4607_v42 = vpack.c.bf16 %v201_v36, %v195_v35  ;;  %v288_v44 = vld [vmem:[%s8660_s26 + $0x730] sm:$0xff] }
  0x70   :  { %v194_v45 = vld [vmem:[%s8660_s26 + $0x440] sm:$0xff]  ;;  %v200_v46 = vld [vmem:[%s8660_s26 + $0x470] sm:$0xff]  ;;  %v4541_v47 = vpack.c.bf16 %v295_v39, %v289_v37  ;;  %v207_v49 = vld [vmem:[%s8660_s26 + $0x4a8] sm:$0xff] }
  0x71   :  { %4602 = vmatpush1.bf16.msra.mxu0 %v4601_v26  ;;  %v294_v48 = vld [vmem:[%s8660_s26 + $0x760] sm:$0xff]  ;;  %v213_v50 = vld [vmem:[%s8660_s26 + $0x4d8] sm:$0xff]  ;;  %v307_v52 = vld [vmem:[%s8660_s26 + $0x7c8] sm:$0xff]  ;;  %v4609_v53 = vpack.c.bf16 %v200_v46, %v194_v45 }
  0x72   :  { %4536 = vmatpush1.bf16.msra.mxu1 %v4535_v27  ;;  %4604 = vmatprep.subr.bf16.mxu0 %v4603_v28  ;;  %v301_v51 = vld [vmem:[%s8660_s26 + $0x798] sm:$0xff]  ;;  %v4543_v54 = vpack.c.bf16 %v294_v48, %v288_v44  ;;  %v4611_v55 = vpack.c.bf16 %v213_v50, %v207_v49  ;;  %v300_v56 = vld [vmem:[%s8660_s26 + $0x790] sm:$0xff]  ;;  %v206_v57 = vld [vmem:[%s8660_s26 + $0x4a0] sm:$0xff] }
  0x73   :  { %4538 = vmatprep.subr.bf16.mxu1 %v4537_v33  ;;  %v212_v38 = vld [vmem:[%s8660_s26 + $0x4d0] sm:$0xff]  ;;  %v4545_v58 = vpack.c.bf16 %v307_v52, %v301_v51  ;;  %v306_v60 = vld [vmem:[%s8660_s26 + $0x7c0] sm:$0xff]  ;;  %v219_v61 = vld [vmem:[%s8660_s26 + $0x508] sm:$0xff] }
  0x74   :  { %v225_v62 = vld [vmem:[%s8660_s26 + $0x538] sm:$0xff]  ;;  %v319_v0 = vld [vmem:[%s8660_s26 + $0x828] sm:$0xff]  ;;  %v4613_v1 = vpack.c.bf16 %v212_v38, %v206_v57  ;;  %v4547_v2 = vpack.c.bf16 %v306_v60, %v300_v56  ;;  %v312_v4 = vld [vmem:[%s8660_s26 + $0x7f0] sm:$0xff] }
  0x75   :  { %4606 = vmatpush1.bf16.msra.mxu0 %v4605_v40  ;;  %v313_v63 = vld [vmem:[%s8660_s26 + $0x7f8] sm:$0xff]  ;;  %v4615_v3 = vpack.c.bf16 %v225_v62, %v219_v61  ;;  %v218_v5 = vld [vmem:[%s8660_s26 + $0x500] sm:$0xff]  ;;  %v224_v6 = vld [vmem:[%s8660_s26 + $0x530] sm:$0xff] }
  0x76   :  { %4540 = vmatpush1.bf16.msra.mxu1 %v4539_v41  ;;  %4608 = vmatprep.subr.bf16.mxu0 %v4607_v42  ;;  %v4549_v8 = vpack.c.bf16 %v319_v0, %v313_v63  ;;  %v318_v9 = vld [vmem:[%s8660_s26 + $0x820] sm:$0xff]  ;;  %v231_v11 = vld [vmem:[%s8660_s26 + $0x568] sm:$0xff]  ;;  %v237_v12 = vld [vmem:[%s8660_s26 + $0x598] sm:$0xff]  ;;  %v4617_v15 = vpack.c.bf16 %v224_v6, %v218_v5 }
  0x77   :  { %4542 = vmatprep.subr.bf16.mxu1 %v4541_v47  ;;  %v325_v13 = vld [vmem:[%s8660_s26 + $0x858] sm:$0xff]  ;;  %v331_v14 = vld [vmem:[%s8660_s26 + $0x888] sm:$0xff]  ;;  %v4551_v16 = vpack.c.bf16 %v318_v9, %v312_v4  ;;  %v4619_v17 = vpack.c.bf16 %v237_v12, %v231_v11  ;;  %v324_v18 = vld [vmem:[%s8660_s26 + $0x850] sm:$0xff] }
  0x78   :  { %v230_v19 = vld [vmem:[%s8660_s26 + $0x560] sm:$0xff]  ;;  %v236_v20 = vld [vmem:[%s8660_s26 + $0x590] sm:$0xff]  ;;  %v4553_v21 = vpack.c.bf16 %v331_v14, %v325_v13  ;;  %v243_v23 = vld [vmem:[%s8660_s26 + $0x5c8] sm:$0xff] }
  0x79   :  { %4610 = vmatpush1.bf16.msra.mxu0 %v4609_v53  ;;  %v330_v22 = vld [vmem:[%s8660_s26 + $0x880] sm:$0xff]  ;;  %v249_v24 = vld [vmem:[%s8660_s26 + $0x5f8] sm:$0xff]  ;;  %v343_v26 = vld [vmem:[%s8660_s26 + $0x8e8] sm:$0xf]  ;;  %v4621_v27 = vpack.c.bf16 %v236_v20, %v230_v19 }
  0x7a   :  { %4544 = vmatpush1.bf16.msra.mxu1 %v4543_v54  ;;  %4612 = vmatprep.subr.bf16.mxu0 %v4611_v55  ;;  %v337_v25 = vld [vmem:[%s8660_s26 + $0x8b8] sm:$0xff]  ;;  %v4555_v28 = vpack.c.bf16 %v330_v22, %v324_v18  ;;  %v4623_v29 = vpack.c.bf16 %v249_v24, %v243_v23  ;;  %v336_v30 = vld [vmem:[%s8660_s26 + $0x8b0] sm:$0xff]  ;;  %v242_v32 = vld [vmem:[%s8660_s26 + $0x5c0] sm:$0xff] }
  0x7b   :  { %4546 = vmatprep.subr.bf16.mxu1 %v4545_v58  ;;  %v248_v33 = vld [vmem:[%s8660_s26 + $0x5f0] sm:$0xff]  ;;  %v4557_v34 = vpack.c.bf16 %v343_v26, %v337_v25  ;;  %v342_v35 = vld [vmem:[%s8660_s26 + $0x8e0] sm:$0xf]  ;;  %v255_v36 = vld [vmem:[%s8660_s26 + $0x628] sm:$0xff] }
  0x7c   :  { %v261_v37 = vld [vmem:[%s8660_s26 + $0x658] sm:$0xff]  ;;  %v921_v39 = vld [vmem:[%s8641_s2 + $0x80] sm:$0xff]  ;;  %v922_v40 = vld [vmem:[%s8641_s2 + $0x88] sm:$0xff]  ;;  %v4625_v41 = vpack.c.bf16 %v248_v33, %v242_v32  ;;  %v4560_v42 = vpack.c.bf16 %v342_v35, %v336_v30 }
  0x7d   :  { %4614 = vmatpush1.bf16.msra.mxu0 %v4613_v1  ;;  %v4627_v44 = vpack.c.bf16 %v261_v37, %v255_v36  ;;  %v254_v45 = vld [vmem:[%s8660_s26 + $0x620] sm:$0xff]  ;;  %v260_v46 = vld [vmem:[%s8660_s26 + $0x650] sm:$0xff]  ;;  %v267_v47 = vld [vmem:[%s8660_s26 + $0x688] sm:$0xff]  ;;  %v6401_v49 = vpack.c.bf16 %v922_v40, %v921_v39 }
  0x7e   :  { %4548 = vmatpush1.bf16.msra.mxu1 %v4547_v2  ;;  %4616 = vmatprep.subr.bf16.mxu0 %v4615_v3  ;;  %v273_v48 = vld [vmem:[%s8660_s26 + $0x6b8] sm:$0xff]  ;;  %v905_v50 = vld [vmem:[%s8641_s2] sm:$0xff]  ;;  %v906_v51 = vld [vmem:[%s8641_s2 + $0x8] sm:$0xff]  ;;  %v4629_v52 = vpack.c.bf16 %v260_v46, %v254_v45 }
  0x7f   :  { %4550 = vmatprep.subr.bf16.mxu1 %v4549_v8  ;;  %v923_v53 = vld [vmem:[%s8641_s2 + $0x90] sm:$0xff]  ;;  %v924_v54 = vld [vmem:[%s8641_s2 + $0x98] sm:$0xff]  ;;  %v4631_v55 = vpack.c.bf16 %v273_v48, %v267_v47  ;;  %v266_v56 = vld [vmem:[%s8660_s26 + $0x680] sm:$0xff]  ;;  %v6430_v60 = vpack.c.bf16 %v906_v51, %v905_v50 }
  0x80   :  { %v272_v57 = vld [vmem:[%s8660_s26 + $0x6b0] sm:$0xff]  ;;  %v279_v38 = vld [vmem:[%s8660_s26 + $0x6e8] sm:$0xff]  ;;  %v285_v58 = vld [vmem:[%s8660_s26 + $0x718] sm:$0xff]  ;;  %v6433_v61 = vpack.c.bf16 %v924_v54, %v923_v53 }
  0x81   :  { %4618 = vmatpush1.bf16.msra.mxu0 %v4617_v15  ;;  %v907_v62 = vld [vmem:[%s8641_s2 + $0x10] sm:$0xff]  ;;  %v908_v63 = vld [vmem:[%s8641_s2 + $0x18] sm:$0xff]  ;;  %v4633_v0 = vpack.c.bf16 %v272_v57, %v266_v56  ;;  %v925_v1 = vld [vmem:[%s8641_s2 + $0xa0] sm:$0xff]  ;;  %v4635_v2 = vpack.c.bf16 %v285_v58, %v279_v38 }
  0x82   :  { %4552 = vmatpush1.bf16.msra.mxu1 %v4551_v16  ;;  %4620 = vmatprep.subr.bf16.mxu0 %v4619_v17  ;;  %v278_v3 = vld [vmem:[%s8660_s26 + $0x6e0] sm:$0xff]  ;;  %v284_v4 = vld [vmem:[%s8660_s26 + $0x710] sm:$0xff]  ;;  %v291_v5 = vld [vmem:[%s8660_s26 + $0x748] sm:$0xff]  ;;  %v6463_v8 = vpack.c.bf16 %v908_v63, %v907_v62 }
  0x83   :  { %4554 = vmatprep.subr.bf16.mxu1 %v4553_v21  ;;  %v297_v6 = vld [vmem:[%s8660_s26 + $0x778] sm:$0xff]  ;;  %v909_v11 = vld [vmem:[%s8641_s2 + $0x20] sm:$0xff]  ;;  %v910_v12 = vld [vmem:[%s8641_s2 + $0x28] sm:$0xff]  ;;  %v4637_v13 = vpack.c.bf16 %v284_v4, %v278_v3 }
  0x84   :  { %v927_v14 = vld [vmem:[%s8641_s2 + $0xb0] sm:$0xff]  ;;  %v928_v15 = vld [vmem:[%s8641_s2 + $0xb8] sm:$0xff]  ;;  %v4639_v16 = vpack.c.bf16 %v297_v6, %v291_v5  ;;  %v290_v17 = vld [vmem:[%s8660_s26 + $0x740] sm:$0xff]  ;;  %v6493_v21 = vpack.c.bf16 %v910_v12, %v909_v11 }
  0x85   :  { %4622 = vmatpush1.bf16.msra.mxu0 %v4621_v27  ;;  %v296_v18 = vld [vmem:[%s8660_s26 + $0x770] sm:$0xff]  ;;  %v303_v19 = vld [vmem:[%s8660_s26 + $0x7a8] sm:$0xff]  ;;  %v309_v20 = vld [vmem:[%s8660_s26 + $0x7d8] sm:$0xff]  ;;  %v6496_v22 = vpack.c.bf16 %v928_v15, %v927_v14 }
  0x86   :  { %4556 = vmatpush1.bf16.msra.mxu1 %v4555_v28  ;;  %4624 = vmatprep.subr.bf16.mxu0 %v4623_v29  ;;  %v911_v23 = vld [vmem:[%s8641_s2 + $0x30] sm:$0xff]  ;;  %v912_v24 = vld [vmem:[%s8641_s2 + $0x38] sm:$0xff]  ;;  %v4641_v25 = vpack.c.bf16 %v296_v18, %v290_v17  ;;  %v4643_v26 = vpack.c.bf16 %v309_v20, %v303_v19  ;;  %v302_v27 = vld [vmem:[%s8660_s26 + $0x7a0] sm:$0xff] }
  0x87   :  { %4559 = vmatprep.subr.msk.bf16.mxu1 %vm5787_vm2, %v4557_v34  ;;  %v308_v28 = vld [vmem:[%s8660_s26 + $0x7d0] sm:$0xff]  ;;  %v315_v29 = vld [vmem:[%s8660_s26 + $0x808] sm:$0xff]  ;;  %v321_v30 = vld [vmem:[%s8660_s26 + $0x838] sm:$0xff]  ;;  %v6517_v32 = vpack.c.bf16 %v912_v24, %v911_v23 }
  0x88   :  { %v4645_v33 = vpack.c.bf16 %v308_v28, %v302_v27  ;;  %v4647_v34 = vpack.c.bf16 %v321_v30, %v315_v29  ;;  %v314_v35 = vld [vmem:[%s8660_s26 + $0x800] sm:$0xff]  ;;  %v320_v36 = vld [vmem:[%s8660_s26 + $0x830] sm:$0xff]  ;;  %v327_v37 = vld [vmem:[%s8660_s26 + $0x868] sm:$0xff] }
  0x89   :  { %4626 = vmatpush1.bf16.msra.mxu0 %v4625_v41  ;;  %v333_v39 = vld [vmem:[%s8660_s26 + $0x898] sm:$0xff]  ;;  %v4649_v40 = vpack.c.bf16 %v320_v36, %v314_v35  ;;  %v339_v45 = vld [vmem:[%s8660_s26 + $0x8c8] sm:$0xff]  ;;  %v929_v47 = vld [vmem:[%s8641_s2 + $0xc0] sm:$0xff] }
  0x8a   :  { %4562 = vmatpush1.bf16.msk.msra.mxu1 %vm5787_vm2, %v4560_v42  ;;  %4628 = vmatprep.subr.bf16.mxu0 %v4627_v44  ;;  %v4651_v41 = vpack.c.bf16 %v333_v39, %v327_v37  ;;  %v326_v42 = vld [vmem:[%s8660_s26 + $0x860] sm:$0xff]  ;;  %v332_v44 = vld [vmem:[%s8660_s26 + $0x890] sm:$0xff]  ;;  %v345_v46 = vld [vmem:[%s8660_s26 + $0x8f8] sm:$0xf] }
  0x8b   :  { %4662 = vmatprep.subr.bf16.mxu1 %v6401_v49  ;;  %v930_v48 = vld [vmem:[%s8641_s2 + $0xc8] sm:$0xff]  ;;  %v913_v51 = vld [vmem:[%s8641_s2 + $0x40] sm:$0xff]  ;;  %v4653_v53 = vpack.c.bf16 %v332_v44, %v326_v42  ;;  %v344_v57 = vld [vmem:[%s8660_s26 + $0x8f0] sm:$0xf] }
  0x8c   :  { %736 = vmatmul.mubr.f32.vlgmr.msra.gmra.mrb[2].mxu0 %v5762_v31  ;;  %v926_v31 = vld [vmem:[%s8641_s2 + $0xa8] sm:$0xff]  ;;  %v4677_v50 = vpack.c.bf16 %v930_v48, %v929_v47  ;;  %v338_v56 = vld [vmem:[%s8660_s26 + $0x8c0] sm:$0xff]  ;;  %v931_v38 = vld [vmem:[%s8641_s2 + $0xd0] sm:$0xff] }
  0x8d   :  { %3872 = vmatmul.mubr.msk.f32.vlgmr.msra.gmra.mrb[2].mxu1 %vm365_vm3, %v5824_v59  ;;  %4630 = vmatpush1.bf16.msra.mxu0 %v4629_v52  ;;  %v6466_v9 = vpack.c.bf16 %v926_v31, %v925_v1  ;;  %v914_v52 = vld [vmem:[%s8641_s2 + $0x48] sm:$0xff]  ;;  %v932_v58 = vld [vmem:[%s8641_s2 + $0xd8] sm:$0xff]  ;;  %v915_v63 = vld [vmem:[%s8641_s2 + $0x50] sm:$0xff]  ;;  %v4658_v1 = vpack.c.bf16 %v344_v57, %v338_v56 }
  0x8e   :  { %4632 = vmatprep.subr.bf16.mxu0 %v4631_v55  ;;  %806 = vmatprep.mubr.f32.mxu0 %v5479_v7  ;;  %v4679_v54 = vpack.c.bf16 %v914_v52, %v913_v51  ;;  %v4655_v55 = vpack.c.bf16 %v345_v46, %v339_v45  ;;  %v4681_v62 = vpack.c.bf16 %v932_v58, %v931_v38  ;;  %v934_v3 = vld [vmem:[%s8641_s2 + $0xe8] sm:$0xff]  ;;  %v917_v5 = vld [vmem:[%s8641_s2 + $0x60] sm:$0xff]  ;;  %v935_v12 = vld [vmem:[%s8641_s2 + $0xf0] sm:$0xff] }
  0x8f   :  { %4664 = vmatpush3.bf16.msra.mxu1 %v6430_v60  ;;  %v918_v6 = vld [vmem:[%s8641_s2 + $0x68] sm:$0xff]  ;;  %v919_v14 = vld [vmem:[%s8641_s2 + $0x70] sm:$0xff]  ;;  %v937_v47 = vld [vmem:[%s8641_s2 + $0x100] sm:$0xff] }
  0x90   :  { %4666 = vmatprep.subr.bf16.mxu1 %v6433_v61  ;;  %v4687_v11 = vpack.c.bf16 %v918_v6, %v917_v5  ;;  %v954_v18 = vld [vmem:[%s8641_s2 + $0x188] sm:$0xff]  ;;  %v955_v52 = vld [vmem:[%s8641_s2 + $0x190] sm:$0xff]  ;;  %v3687_v43 = vld [vmem:[%s8652_s13 + $0xf8] sm:$0xff] }
  0x91   :  { %4634 = vmatpush1.bf16.msra.mxu0 %v4633_v0  ;;  %v916_v0 = vld [vmem:[%s8641_s2 + $0x58] sm:$0xff]  ;;  %v938_v48 = vld [vmem:[%s8641_s2 + $0x108] sm:$0xff]  ;;  %v971_v6 = vld [vmem:[%s8641_s2 + $0x210] sm:$0xff] }
  0x92   :  { %4636 = vmatprep.subr.bf16.mxu0 %v4635_v2  ;;  %v4683_v31 = vpack.c.bf16 %v916_v0, %v915_v63  ;;  %v933_v2 = vld [vmem:[%s8641_s2 + $0xe0] sm:$0xff]  ;;  %v970_v56 = vld [vmem:[%s8641_s2 + $0x208] sm:$0xff]  ;;  %v6655_v58 = vpack.c.bf16 %v938_v48, %v937_v47  ;;  %v939_v0 = vld [vmem:[%s8641_s2 + $0x110] sm:$0xff] }
  0x93   :  { %4668 = vmatpush3.bf16.msra.mxu1 %v6463_v8  ;;  %v4685_v4 = vpack.c.bf16 %v934_v3, %v933_v2  ;;  %v957_v3 = vld [vmem:[%s8641_s2 + $0x1a0] sm:$0xff]  ;;  %v979_v47 = vld [vmem:[%s8641_s2 + $0x250] sm:$0xff]  ;;  %v980_v48 = vld [vmem:[%s8641_s2 + $0x258] sm:$0xff] }
  0x94   :  { %4670 = vmatprep.subr.bf16.mxu1 %v6466_v9 }
  0x95   :  { %4638 = vmatpush1.bf16.msra.mxu0 %v4637_v13  ;;  %v936_v13 = vld [vmem:[%s8641_s2 + $0xf8] sm:$0xff] }
  0x96   :  { %4640 = vmatprep.subr.bf16.mxu0 %v4639_v16  ;;  %v4689_v15 = vpack.c.bf16 %v936_v13, %v935_v12  ;;  %v920_v16 = vld [vmem:[%s8641_s2 + $0x78] sm:$0xff] }
  0x97   :  { %4672 = vmatpush3.bf16.msra.mxu1 %v6493_v21  ;;  %v4691_v17 = vpack.c.bf16 %v920_v16, %v919_v14  ;;  %v941_v14 = vld [vmem:[%s8641_s2 + $0x120] sm:$0xff] }
  0x98   :  { %4674 = vmatprep.subr.bf16.mxu1 %v6496_v22 }
  0x99   :  { %4642 = vmatpush1.bf16.msra.mxu0 %v4641_v25 }
  0x9a   :  { %4644 = vmatprep.subr.bf16.mxu0 %v4643_v26 }
  0x9b   :  { %4676 = vmatpush3.bf16.msra.mxu1 %v6517_v32 }
  0x9c   :  { %4678 = vmatprep.subr.bf16.mxu1 %v4677_v50 }
  0x9d   :  { %4646 = vmatpush1.bf16.msra.mxu0 %v4645_v33 }
  0x9e   :  { %4648 = vmatprep.subr.bf16.mxu0 %v4647_v34 }
  0x9f   :  { %4680 = vmatpush3.bf16.msra.mxu1 %v4679_v54 }
  0xa0   :  { %4682 = vmatprep.subr.bf16.mxu1 %v4681_v62 }
  0xa1   :  { %4650 = vmatpush1.bf16.msra.mxu0 %v4649_v40 }
  0xa2   :  { %4652 = vmatprep.subr.bf16.mxu0 %v4651_v41 }
  0xa3   :  { %4684 = vmatpush3.bf16.msra.mxu1 %v4683_v31 }
  0xa4   :  { %4686 = vmatprep.subr.bf16.mxu1 %v4685_v4 }
  0xa5   :  { %4654 = vmatpush1.bf16.msra.mxu0 %v4653_v53  ;;  %v956_v53 = vld [vmem:[%s8641_s2 + $0x198] sm:$0xff] }
  0xa6   :  { %4657 = vmatprep.subr.msk.bf16.mxu0 %vm5787_vm2, %v4655_v55  ;;  %v969_v55 = vld [vmem:[%s8641_s2 + $0x200] sm:$0xff]  ;;  %v6657_v63 = vpack.c.bf16 %v956_v53, %v955_v52  ;;  %v950_v53 = vld [vmem:[%s8641_s2 + $0x168] sm:$0xff] }
  0xa7   :  { %4688 = vmatpush3.bf16.msra.mxu1 %v4687_v11  ;;  %v6665_v2 = vpack.c.bf16 %v970_v56, %v969_v55  ;;  %v949_v52 = vld [vmem:[%s8641_s2 + $0x160] sm:$0xff]  ;;  %v967_v55 = vld [vmem:[%s8641_s2 + $0x1f0] sm:$0xff]  ;;  %v968_v56 = vld [vmem:[%s8641_s2 + $0x1f8] sm:$0xff] }
  0xa8   :  { %4690 = vmatprep.subr.bf16.mxu1 %v4689_v15 }
  0xa9   :  { %4660 = vmatpush1.bf16.msk.msra.mxu0 %vm5787_vm2, %v4658_v1  ;;  %v940_v1 = vld [vmem:[%s8641_s2 + $0x118] sm:$0xff] }
  0xaa   :  { %4771 = vmatprep.subr.bf16.mxu0 %v6401_v49  ;;  %v953_v49 = vld [vmem:[%s8641_s2 + $0x180] sm:$0xff]  ;;  %v6680_v12 = vpack.c.bf16 %v940_v1, %v939_v0  ;;  %v6823_v0 = vpack.c.bf16 %v968_v56, %v967_v55  ;;  %v951_v1 = vld [vmem:[%s8641_s2 + $0x170] sm:$0xff]  ;;  %v998_v56 = vld [vmem:[%s8641_s2 + $0x2e8] sm:$0xff] }
  0xab   :  { %4692 = vmatpush3.bf16.msra.mxu1 %v4691_v17  ;;  %v6616_v19 = vpack.c.bf16 %v954_v18, %v953_v49  ;;  %v960_v49 = vld [vmem:[%s8641_s2 + $0x1b8] sm:$0xff]  ;;  %v973_v18 = vld [vmem:[%s8641_s2 + $0x220] sm:$0xff] }
  0xac   :  { %3875 = vmatmul.mubr.msk.f32.vlgmr.msra.gmra.mrb[2].mxu0 %vm365_vm3, %v5824_v59  ;;  %v5482_v59 = vmov 0.0|0.0   ;;  %v997_v55 = vld [vmem:[%s8641_s2 + $0x2e0] sm:$0xff] }
  0xad   :  { %4773 = vmatpush3.bf16.msra.mxu0 %v6430_v60  ;;  %4694 = vmatprep.subr.bf16.mxu1 %v6616_v19 }
  0xae   :  { %4775 = vmatprep.subr.bf16.mxu0 %v6433_v61 }
  0xb1   :  { %4777 = vmatpush3.bf16.msra.mxu0 %v6463_v8 }
  0xb2   :  { %4779 = vmatprep.subr.bf16.mxu0 %v6466_v9 }
  0xb5   :  { %4781 = vmatpush3.bf16.msra.mxu0 %v6493_v21 }
  0xb6   :  { %4783 = vmatprep.subr.bf16.mxu0 %v6496_v22 }
  0xb9   :  { %4785 = vmatpush3.bf16.msra.mxu0 %v6517_v32 }
  0xba   :  { %4787 = vmatprep.subr.bf16.mxu0 %v4677_v50 }
  0xbd   :  { %4789 = vmatpush3.bf16.msra.mxu0 %v4679_v54 }
  0xbe   :  { %4791 = vmatprep.subr.bf16.mxu0 %v4681_v62 }
  0xc1   :  { %4793 = vmatpush3.bf16.msra.mxu0 %v4683_v31 }
  0xc2   :  { %4795 = vmatprep.subr.bf16.mxu0 %v4685_v4  ;;  %v958_v4 = vld [vmem:[%s8641_s2 + $0x1a8] sm:$0xff] }
  0xc3   :  { %v6683_v13 = vpack.c.bf16 %v958_v4, %v957_v3  ;;  %v983_v4 = vld [vmem:[%s8641_s2 + $0x270] sm:$0xff] }
  0xc5   :  { %4797 = vmatpush3.bf16.msra.mxu0 %v4687_v11  ;;  %v972_v11 = vld [vmem:[%s8641_s2 + $0x218] sm:$0xff] }
  0xc6   :  { %4799 = vmatprep.subr.bf16.mxu0 %v4689_v15  ;;  %v942_v15 = vld [vmem:[%s8641_s2 + $0x128] sm:$0xff]  ;;  %v6692_v16 = vpack.c.bf16 %v972_v11, %v971_v6 }
  0xc9   :  { %4801 = vmatpush3.bf16.msra.mxu0 %v4691_v17  ;;  %v959_v17 = vld [vmem:[%s8641_s2 + $0x1b0] sm:$0xff] }
  0xca   :  { %4834 = vmatprep.subr.bf16.mxu0 %v5482_v59 }
 0x100   :  { %v524_v60 = vpop.f32.mrb[0].mxu1 }
 0x101   :  { %v526_v61 = vpop.f32.mrb[1].mxu1 }
 0x11f   :  { %v453_v8 = vpop.f32.mrb[0].mxu0 }
 0x120   :  { %v6623_v9 = vadd.f32 %v524_v60, %v453_v8  ;;  %v455_v20 = vpop.f32.mrb[1].mxu0  ;;  %v974_v60 = vld [vmem:[%s8641_s2 + $0x228] sm:$0xff]  ;;  %v6711_v8 = vpack.c.bf16 %v960_v49, %v959_v17  ;;  %v987_v49 = vld [vmem:[%s8641_s2 + $0x290] sm:$0xff] }
 0x121   :  { %v6625_v21 = vadd.f32 %v526_v61, %v455_v20  ;;  %v6708_v61 = vpack.c.bf16 %v942_v15, %v941_v14  ;;  %v943_v20 = vld [vmem:[%s8641_s2 + $0x130] sm:$0xff]  ;;  %v985_v14 = vld [vmem:[%s8641_s2 + $0x280] sm:$0xff]  ;;  %v986_v15 = vld [vmem:[%s8641_s2 + $0x288] sm:$0xff] }
 0x122   :  { %v814_v22 = vsel %vm813_vm4, %v6623_v9, 0.0  ;;  %v857_v23 = vmul.f32 %v6623_v9, %v6623_v9  ;;  %v6858_v17 = vpack.c.bf16 %v986_v15, %v985_v14 }
 0x123   :  { %v815_v24 = vrot.slane %v814_v22, 4  ;;  %v821_v25 = vsel %vm813_vm4, %v6625_v21, 0.0  ;;  %v858_v26 = vmul.f32 %v6625_v21, %v6625_v21 }
 0x124   :  { %v863_v27 = vsel %vm813_vm4, %v857_v23, 0.0  ;;  %v822_v28 = vrot.slane %v821_v25, 4  ;;  %v6720_v23 = vpack.c.bf16 %v974_v60, %v973_v18  ;;  %v988_v18 = vld [vmem:[%s8641_s2 + $0x298] sm:$0xff] }
 0x125   :  { %v816_v29 = vadd.f32 %v815_v24, %v814_v22  ;;  %v864_v30 = vrot.slane %v863_v27, 4  ;;  %v870_v32 = vsel %vm813_vm4, %v858_v26, 0.0  ;;  %v944_v22 = vld [vmem:[%s8641_s2 + $0x138] sm:$0xff]  ;;  %v961_v24 = vld [vmem:[%s8641_s2 + $0x1c0] sm:$0xff]  ;;  %v975_v26 = vld [vmem:[%s8641_s2 + $0x230] sm:$0xff]  ;;  %v6868_v60 = vpack.c.bf16 %v988_v18, %v987_v49 }
 0x126   :  { %v823_v33 = vadd.f32 %v822_v28, %v821_v25  ;;  %v871_v34 = vrot.slane %v870_v32, 4  ;;  %v962_v25 = vld [vmem:[%s8641_s2 + $0x1c8] sm:$0xff]  ;;  %v6736_v28 = vpack.c.bf16 %v944_v22, %v943_v20  ;;  %v989_v20 = vld [vmem:[%s8641_s2 + $0x2a0] sm:$0xff]  ;;  %v6934_v49 = vld [vmem:[%s8641_s2 + $0x2f0] sm:$0xff] }
 0x127   :  { %v817_v35 = vrot.slane %v816_v29, 2  ;;  %v865_v36 = vadd.f32 %v864_v30, %v863_v27  ;;  %v976_v27 = vld [vmem:[%s8641_s2 + $0x238] sm:$0xff]  ;;  %v945_v30 = vld [vmem:[%s8641_s2 + $0x140] sm:$0xff]  ;;  %v990_v22 = vld [vmem:[%s8641_s2 + $0x2a8] sm:$0xff] }
 0x128   :  { %v824_v37 = vrot.slane %v823_v33, 2  ;;  %v872_v39 = vadd.f32 %v871_v34, %v870_v32  ;;  %v946_v32 = vld [vmem:[%s8641_s2 + $0x148] sm:$0xff]  ;;  %v963_v34 = vld [vmem:[%s8641_s2 + $0x1d0] sm:$0xff] }
 0x129   :  { %v818_v40 = vadd.f32 %v817_v35, %v816_v29  ;;  %v866_v41 = vrot.slane %v865_v36, 2  ;;  %v6739_v29 = vpack.c.bf16 %v962_v25, %v961_v24  ;;  %v964_v35 = vld [vmem:[%s8641_s2 + $0x1d8] sm:$0xff]  ;;  %v6878_v24 = vpack.c.bf16 %v990_v22, %v989_v20  ;;  %v991_v25 = vld [vmem:[%s8641_s2 + $0x2b0] sm:$0xff] }
 0x12a   :  { %v825_v42 = vadd.f32 %v824_v37, %v823_v33  ;;  %v873_v44 = vrot.slane %v872_v39, 2  ;;  %v6748_v33 = vpack.c.bf16 %v976_v27, %v975_v26  ;;  %v978_v37 = vld [vmem:[%s8641_s2 + $0x248] sm:$0xff]  ;;  %v992_v26 = vld [vmem:[%s8641_s2 + $0x2b8] sm:$0xff] }
 0x12b   :  { %v819_v45 = vrot.slane %v818_v40, 1  ;;  %v867_v46 = vadd.f32 %v866_v41, %v865_v36  ;;  %v977_v36 = vld [vmem:[%s8641_s2 + $0x240] sm:$0xff]  ;;  %v947_v41 = vld [vmem:[%s8641_s2 + $0x150] sm:$0xff]  ;;  %v6888_v27 = vpack.c.bf16 %v992_v26, %v991_v25 }
 0x12c   :  { %v826_v50 = vrot.slane %v825_v42, 1  ;;  %v874_v51 = vadd.f32 %v873_v44, %v872_v39  ;;  %v6764_v39 = vpack.c.bf16 %v946_v32, %v945_v30  ;;  %v6776_v44 = vpack.c.bf16 %v978_v37, %v977_v36  ;;  %v993_v30 = vld [vmem:[%s8641_s2 + $0x2c0] sm:$0xff]  ;;  %v994_v32 = vld [vmem:[%s8641_s2 + $0x2c8] sm:$0xff] }
 0x12d   :  { %v868_v54 = vrot.slane %v867_v46, 1  ;;  %v820_v62 = vadd.f32 %v819_v45, %v818_v40  ;;  %v6767_v40 = vpack.c.bf16 %v964_v35, %v963_v34  ;;  %v965_v45 = vld [vmem:[%s8641_s2 + $0x1e0] sm:$0xff]  ;;  %v6900_v35 = vpack.c.bf16 %v994_v32, %v993_v30 }
 0x12e   :  { %v827_v57 = vadd.f32 %v826_v50, %v825_v42  ;;  %v875_v38 = vrot.slane %v874_v51, 1  ;;  %v948_v42 = vld [vmem:[%s8641_s2 + $0x158] sm:$0xff] }
 0x12f   :  { %v869_v5 = vadd.f32 %v868_v54, %v867_v46  ;;  %v966_v46 = vld [vmem:[%s8641_s2 + $0x1e8] sm:$0xff]  ;;  %v6792_v50 = vpack.c.bf16 %v948_v42, %v947_v41  ;;  %v6804_v54 = vpack.c.bf16 %v980_v48, %v979_v47  ;;  %v995_v41 = vld [vmem:[%s8641_s2 + $0x2d0] sm:$0xff]  ;;  %v996_v42 = vld [vmem:[%s8641_s2 + $0x2d8] sm:$0xff] }
 0x130   :  { %1068 = vmatprep.mubr.f32.mxu1 %v827_v57  ;;  %v876_v31 = vadd.f32 %v875_v38, %v874_v51  ;;  %v6795_v51 = vpack.c.bf16 %v966_v46, %v965_v45  ;;  %v981_v57 = vld [vmem:[%s8641_s2 + $0x260] sm:$0xff]  ;;  %v982_v38 = vld [vmem:[%s8641_s2 + $0x268] sm:$0xff] }
 0x131   :  { %1069 = vmatmul.mubr.f32.vlgmr.msra.gmra.mrb[4].mxu1 %v820_v62  ;;  %v6820_v62 = vpack.c.bf16 %v950_v53, %v949_v52  ;;  %v6832_v3 = vpack.c.bf16 %v982_v38, %v981_v57  ;;  %v6916_v52 = vpack.c.bf16 %v996_v42, %v995_v41 }
 0x132   :  { %1282 = vmatprep.mubr.f32.mxu0 %v876_v31  ;;  %4696 = vmatpush3.bf16.msra.mxu1 %v6655_v58  ;;  %v952_v31 = vld [vmem:[%s8641_s2 + $0x178] sm:$0xff] }
 0x133   :  { %1283 = vmatmul.mubr.f32.vlgmr.msra.gmra.mrb[4].mxu0 %v869_v5  ;;  %4698 = vmatprep.subr.bf16.mxu1 %v6657_v63  ;;  %v984_v5 = vld [vmem:[%s8641_s2 + $0x278] sm:$0xff]  ;;  %v6842_v6 = vpack.c.bf16 %v952_v31, %v951_v1  ;;  %v6926_v31 = vpack.c.bf16 %v998_v56, %v997_v55  ;;  %s5484_s2 = smov [#allocation2]  }
 0x134   :  { %4836 = vmatpush1.bf16.msra.mxu0 %v6665_v2  ;;  %v6846_v11 = vpack.c.bf16 %v984_v5, %v983_v4  ;;  %s3859_s28 = sshll.u32 %s5484_s2, 4  ;;  %s3860_s28 = int_to_ptr.vmem [resolvable:$true] %s3859_s28 }
 0x135   :  { %4837 = vmatprep.subr.bf16.mxu0 %v5482_v59  ;;  %p5460_p1 = scmp.lt.s32.totalorder %s3860_s28, %s3860_s28 }
 0x136   :  { %4700 = vmatpush3.bf16.msra.mxu1 %v6680_v12 }
 0x137   :  { %4702 = vmatprep.subr.bf16.mxu1 %v6683_v13 }
 0x138   :  { %4839 = vmatpush1.bf16.msra.mxu0 %v6692_v16 }
 0x139   :  { %4840 = vmatprep.subr.bf16.mxu0 %v5482_v59 }
 0x13a   :  { %4704 = vmatpush3.bf16.msra.mxu1 %v6708_v61 }
 0x13b   :  { %4706 = vmatprep.subr.bf16.mxu1 %v6711_v8 }
 0x13c   :  { %4842 = vmatpush1.bf16.msra.mxu0 %v6720_v23 }
 0x13d   :  { %4843 = vmatprep.subr.bf16.mxu0 %v5482_v59 }
 0x13e   :  { %4708 = vmatpush3.bf16.msra.mxu1 %v6736_v28 }
 0x13f   :  { %4710 = vmatprep.subr.bf16.mxu1 %v6739_v29 }
 0x140   :  { %4845 = vmatpush1.bf16.msra.mxu0 %v6748_v33 }
 0x141   :  { %4846 = vmatprep.subr.bf16.mxu0 %v5482_v59 }
 0x142   :  { %4712 = vmatpush3.bf16.msra.mxu1 %v6764_v39 }
 0x143   :  { %4714 = vmatprep.subr.bf16.mxu1 %v6767_v40 }
 0x144   :  { %4848 = vmatpush1.bf16.msra.mxu0 %v6776_v44 }
 0x145   :  { %4849 = vmatprep.subr.bf16.mxu0 %v5482_v59 }
 0x146   :  { %4716 = vmatpush3.bf16.msra.mxu1 %v6792_v50 }
 0x147   :  { %4718 = vmatprep.subr.bf16.mxu1 %v6795_v51 }
 0x148   :  { %4851 = vmatpush1.bf16.msra.mxu0 %v6804_v54 }
 0x149   :  { %4852 = vmatprep.subr.bf16.mxu0 %v5482_v59 }
 0x14a   :  { %4720 = vmatpush3.bf16.msra.mxu1 %v6820_v62 }
 0x14b   :  { %4722 = vmatprep.subr.bf16.mxu1 %v6823_v0 }
 0x14c   :  { %4854 = vmatpush1.bf16.msra.mxu0 %v6832_v3 }
 0x14d   :  { %4855 = vmatprep.subr.bf16.mxu0 %v5482_v59 }
 0x14e   :  { %4724 = vmatpush3.bf16.msra.mxu1 %v6842_v6 }
 0x14f   :  { %4725 = vmatprep.subr.bf16.mxu1 %v5482_v59 }
 0x150   :  { %4857 = vmatpush1.bf16.msra.mxu0 %v6846_v11 }
 0x151   :  { %4858 = vmatprep.subr.bf16.mxu0 %v5482_v59 }
 0x154   :  { %4860 = vmatpush1.bf16.msra.mxu0 %v6858_v17 }
 0x155   :  { %4861 = vmatprep.subr.bf16.mxu0 %v5482_v59 }
 0x158   :  { %4863 = vmatpush1.bf16.msra.mxu0 %v6868_v60 }
 0x159   :  { %4864 = vmatprep.subr.bf16.mxu0 %v5482_v59 }
 0x15c   :  { %4866 = vmatpush1.bf16.msra.mxu0 %v6878_v24 }
 0x15d   :  { %4867 = vmatprep.subr.bf16.mxu0 %v5482_v59 }
 0x160   :  { %v6897_v34 = vpop.f32.mrb[2].mxu1  ;;  %4869 = vmatpush1.bf16.msra.mxu0 %v6888_v27 }
 0x161   :  { %v828_v36 = vsel %vm813_vm4, %v6897_v34, 0.0  ;;  %v6904_v37 = vpop.f32.mrb[3].mxu1  ;;  %4870 = vmatprep.subr.bf16.mxu0 %v5482_v59 }
 0x162   :  { %v829_v45 = vrot.slane %v828_v36, 4  ;;  %v835_v46 = vsel %vm813_vm4, %v6904_v37, 0.0 }
 0x163   :  { %v836_v47 = vrot.slane %v835_v46, 4 }
 0x164   :  { %v830_v48 = vadd.f32 %v829_v45, %v828_v36  ;;  %4872 = vmatpush1.bf16.msra.mxu0 %v6900_v35 }
 0x165   :  { %v837_v53 = vadd.f32 %v836_v47, %v835_v46  ;;  %4873 = vmatprep.subr.bf16.mxu0 %v5482_v59 }
 0x166   :  { %v831_v57 = vrot.slane %v830_v48, 2 }
 0x167   :  { %v838_v38 = vrot.slane %v837_v53, 2 }
 0x168   :  { %v832_v1 = vadd.f32 %v831_v57, %v830_v48  ;;  %4875 = vmatpush1.bf16.msra.mxu0 %v6916_v52 }
 0x169   :  { %v839_v4 = vadd.f32 %v838_v38, %v837_v53  ;;  %4876 = vmatprep.subr.bf16.mxu0 %v5482_v59 }
 0x16a   :  { %v833_v5 = vrot.slane %v832_v1, 1 }
 0x16b   :  { %v840_v14 = vrot.slane %v839_v4, 1 }
 0x16c   :  { %4878 = vmatpush1.bf16.msra.mxu0 %v6926_v31  ;;  %v834_v18 = vadd.f32 %v833_v5, %v832_v1 }
 0x16d   :  { %v841_v15 = vadd.f32 %v840_v14, %v839_v4  ;;  %1418 = vmatprep.subr.mxu0 %v5479_v7 }
 0x16f   :  { %1138 = vmatprep.mubr.f32.mxu1 %v841_v15 }
 0x170   :  { %1139 = vmatmul.mubr.f32.vlgmr.msra.gmra.mrb[6].mxu1 %v834_v18  ;;  %1419 = vmatpush1.msra.mxu0 %v6934_v49 }
 0x171   :  { %4727 = vmatpush1.bf16.msra.mxu1 %v6665_v2 }
 0x172   :  { %4728 = vmatprep.subr.bf16.mxu1 %v5482_v59 }
 0x175   :  { %4730 = vmatpush1.bf16.msra.mxu1 %v6692_v16 }
 0x176   :  { %4731 = vmatprep.subr.bf16.mxu1 %v5482_v59 }
 0x179   :  { %4733 = vmatpush1.bf16.msra.mxu1 %v6720_v23 }
 0x17a   :  { %4734 = vmatprep.subr.bf16.mxu1 %v5482_v59 }
 0x17d   :  { %4736 = vmatpush1.bf16.msra.mxu1 %v6748_v33 }
 0x17e   :  { %4737 = vmatprep.subr.bf16.mxu1 %v5482_v59 }
 0x17f   :  { %v6945_v20 = vpop.f32.mrb[2].mxu0 }
 0x180   :  { %v861_v2 = vmul.f32 %v6945_v20, %v6945_v20  ;;  %v6949_v22 = vpop.f32.mrb[3].mxu0 }
 0x181   :  { %4739 = vmatpush1.bf16.msra.mxu1 %v6776_v44  ;;  %v850_v16 = vsel %vm849_vm5, %v6949_v22, 0.0  ;;  %v862_v23 = vmul.f32 %v6949_v22, %v6949_v22 }
 0x182   :  { %v891_v25 = vsel %vm813_vm4, %v861_v2, 0.0  ;;  %v851_v33 = vrot.slane %v850_v16, 4  ;;  %4740 = vmatprep.subr.bf16.mxu1 %v5482_v59 }
 0x183   :  { %v892_v26 = vrot.slane %v891_v25, 4  ;;  %v898_v30 = vsel %vm849_vm5, %v862_v23, 0.0 }
 0x184   :  { %v852_v32 = vadd.f32 %v851_v33, %v850_v16  ;;  %v899_v36 = vrot.slane %v898_v30, 4 }
 0x185   :  { %v893_v41 = vadd.f32 %v892_v26, %v891_v25  ;;  %4742 = vmatpush1.bf16.msra.mxu1 %v6804_v54 }
 0x186   :  { %v853_v42 = vrot.slane %v852_v32, 2  ;;  %v900_v45 = vadd.f32 %v899_v36, %v898_v30  ;;  %4743 = vmatprep.subr.bf16.mxu1 %v5482_v59 }
 0x187   :  { %v894_v44 = vrot.slane %v893_v41, 2 }
 0x188   :  { %v854_v46 = vadd.f32 %v853_v42, %v852_v32  ;;  %v901_v47 = vrot.slane %v900_v45, 2  ;;  %v2008_v42 = vld [vmem:[%s8645_s6 + $0x190] sm:$0xff] }
 0x189   :  { %v895_v48 = vadd.f32 %v894_v44, %v893_v41  ;;  %4745 = vmatpush1.bf16.msra.mxu1 %v6832_v3  ;;  %v860_v3 = vmul.f32 %v6904_v37, %v6904_v37 }
 0x18a   :  { %v855_v53 = vrot.slane %v854_v46, 1  ;;  %v902_v55 = vadd.f32 %v901_v47, %v900_v45  ;;  %4746 = vmatprep.subr.bf16.mxu1 %v5482_v59  ;;  %v2011_v45 = vld [vmem:[%s8645_s6 + $0x1a8] sm:$0xff] }
 0x18b   :  { %v896_v56 = vrot.slane %v895_v48, 1  ;;  %v884_v4 = vsel %vm813_vm4, %v860_v3, 0.0  ;;  %v5067_v44 = vpack.c.bf16 %v2011_v45, %v2008_v42  ;;  %v1967_v42 = vld [vmem:[%s8645_s6 + $0x48] sm:$0xff] }
 0x18c   :  { %v856_v57 = vadd.f32 %v855_v53, %v854_v46  ;;  %v903_v38 = vrot.slane %v902_v55, 1  ;;  %v885_v14 = vrot.slane %v884_v4, 4  ;;  %v1971_v45 = vld [vmem:[%s8645_s6 + $0x68] sm:$0xff] }
 0x18d   :  { %4748 = vmatpush1.bf16.msra.mxu1 %v6846_v11  ;;  %v897_v1 = vadd.f32 %v896_v56, %v895_v48  ;;  %v842_v11 = vsel %vm813_vm4, %v6945_v20, 0.0 }
 0x18e   :  { %4749 = vmatprep.subr.bf16.mxu1 %v5482_v59  ;;  %3876 = vmatprep.mubr.msk.f32.mxu1 %vm1000_vm6, %v856_v57  ;;  %v904_v54 = vadd.f32 %v903_v38, %v902_v55  ;;  %v843_v5 = vrot.slane %v842_v11, 4  ;;  %v886_v15 = vadd.f32 %v885_v14, %v884_v4  ;;  %v1960_v14 = vld [vmem:[%s8645_s6 + $0x10] sm:$0xff] }
 0x190   :  { %3877 = vmatprep.mubr.msk.f32.mxu0 %vm1000_vm6, %v904_v54 }
 0x191   :  { %4751 = vmatpush1.bf16.msra.mxu1 %v6858_v17  ;;  %1423 = vmatmul.mubr.f32.vlgmr.msra.gmra.mrb[6].mxu0 %v897_v1  ;;  %v844_v17 = vadd.f32 %v843_v5, %v842_v11  ;;  %v1431_v5 = vld [vmem:[%s8643_s4] sm:$0x1] }
 0x192   :  { %4752 = vmatprep.subr.bf16.mxu1 %v5482_v59  ;;  %1527 = vmatprep.mubr.f32.mxu0 %v5479_v7 }
 0x193   :  { %v845_v18 = vrot.slane %v844_v17, 2 }
 0x195   :  { %4754 = vmatpush1.bf16.msra.mxu1 %v6868_v60  ;;  %v887_v60 = vrot.slane %v886_v15, 2  ;;  %v846_v2 = vadd.f32 %v845_v18, %v844_v17  ;;  %v1963_v17 = vld [vmem:[%s8645_s6 + $0x28] sm:$0xff]  ;;  %v2017_v18 = vld [vmem:[%s8645_s6 + $0x1d8] sm:$0xff] }
 0x196   :  { %4755 = vmatprep.subr.bf16.mxu1 %v5482_v59 }
 0x197   :  { %v888_v16 = vadd.f32 %v887_v60, %v886_v15  ;;  %v2014_v15 = vld [vmem:[%s8645_s6 + $0x1c0] sm:$0xff] }
 0x199   :  { %4757 = vmatpush1.bf16.msra.mxu1 %v6878_v24  ;;  %v847_v24 = vrot.slane %v846_v2, 1  ;;  %v889_v23 = vrot.slane %v888_v16, 1 }
 0x19a   :  { %4758 = vmatprep.subr.bf16.mxu1 %v5482_v59 }
 0x19b   :  { %v890_v25 = vadd.f32 %v889_v23, %v888_v16  ;;  %v5069_v16 = vpack.c.bf16 %v1963_v17, %v1960_v14  ;;  %v1966_v23 = vld [vmem:[%s8645_s6 + $0x40] sm:$0xff]  ;;  %v1985_v14 = vld [vmem:[%s8645_s6 + $0xd8] sm:$0xff] }
 0x19c   :  { %v1989_v17 = vld [vmem:[%s8645_s6 + $0xf8] sm:$0xff] }
 0x19d   :  { %4760 = vmatpush1.bf16.msra.mxu1 %v6888_v27  ;;  %v848_v27 = vadd.f32 %v847_v24, %v846_v2  ;;  %v5071_v24 = vpack.c.bf16 %v2017_v18, %v2014_v15  ;;  %v1992_v15 = vld [vmem:[%s8645_s6 + $0x110] sm:$0xff] }
 0x19e   :  { %4761 = vmatprep.subr.bf16.mxu1 %v5482_v59 }
 0x1a1   :  { %4763 = vmatpush1.bf16.msra.mxu1 %v6900_v35  ;;  %v859_v35 = vmul.f32 %v6897_v34, %v6897_v34 }
 0x1a2   :  { %4764 = vmatprep.subr.bf16.mxu1 %v5482_v59 }
 0x1a5   :  { %4766 = vmatpush1.bf16.msra.mxu1 %v6916_v52  ;;  %v877_v52 = vsel %vm813_vm4, %v859_v35, 0.0  ;;  %v2020_v35 = vld [vmem:[%s8645_s6 + $0x1f0] sm:$0xff] }
 0x1a6   :  { %4767 = vmatprep.subr.bf16.mxu1 %v5482_v59 }
 0x1a9   :  { %4769 = vmatpush1.bf16.msra.mxu1 %v6926_v31  ;;  %v878_v31 = vrot.slane %v877_v52, 4 }
 0x1aa   :  { %1204 = vmatprep.subr.mxu1 %v5479_v7 }
 0x1ad   :  { %1205 = vmatpush1.msra.mxu1 %v6934_v49 }
 0x1ae   :  { %1209 = vmatmul.mubr.f32.vlgmr.msra.gmra.mrb[8].mxu1 %v848_v27  ;;  %4803 = vmatprep.subr.bf16.mxu1 %v6616_v19  ;;  %v879_v19 = vadd.f32 %v878_v31, %v877_v52  ;;  %v1969_v27 = vld [vmem:[%s8645_s6 + $0x58] sm:$0xff]  ;;  %v2023_v52 = vld [vmem:[%s8645_s6 + $0x208] sm:$0xff] }
 0x1af   :  { %4805 = vmatpush3.bf16.msra.mxu1 %v6655_v58  ;;  %1352 = vmatprep.mubr.f32.mxu1 %v890_v25  ;;  %v5073_v31 = vpack.c.bf16 %v1969_v27, %v1966_v23  ;;  %v1998_v23 = vld [vmem:[%s8645_s6 + $0x140] sm:$0xff] }
 0x1b0   :  { %4807 = vmatprep.subr.bf16.mxu1 %v6657_v63  ;;  %v880_v58 = vrot.slane %v879_v19, 2 }
 0x1b2   :  { %v881_v63 = vadd.f32 %v880_v58, %v879_v19  ;;  %v1435_v19 = vld [vmem:[%s8644_s5] sm:$0x1]  ;;  %v5075_v58 = vpack.c.bf16 %v2023_v52, %v2020_v35  ;;  %v1997_v52 = vld [vmem:[%s8645_s6 + $0x138] sm:$0xff] }
 0x1b3   :  { %4809 = vmatpush3.bf16.msra.mxu1 %v6680_v12  ;;  %v1994_v35 = vld [vmem:[%s8645_s6 + $0x120] sm:$0xff] }
 0x1b4   :  { %4811 = vmatprep.subr.bf16.mxu1 %v6683_v13  ;;  %v882_v12 = vrot.slane %v881_v63, 1 }
 0x1b6   :  { %v883_v13 = vadd.f32 %v882_v12, %v881_v63  ;;  %v1972_v63 = vld [vmem:[%s8645_s6 + $0x70] sm:$0xff]  ;;  %v1975_v12 = vld [vmem:[%s8645_s6 + $0x88] sm:$0xff] }
 0x1b7   :  { %4813 = vmatpush3.bf16.msra.mxu1 %v6708_v61 }
 0x1b8   :  { %4815 = vmatprep.subr.bf16.mxu1 %v6711_v8 }
 0x1bb   :  { %4817 = vmatpush3.bf16.msra.mxu1 %v6736_v28 }
 0x1bc   :  { %4819 = vmatprep.subr.bf16.mxu1 %v6739_v29 }
 0x1bf   :  { %4821 = vmatpush3.bf16.msra.mxu1 %v6764_v39 }
 0x1c0   :  { %4823 = vmatprep.subr.bf16.mxu1 %v6767_v40 }
 0x1c3   :  { %4825 = vmatpush3.bf16.msra.mxu1 %v6792_v50  ;;  %v7009_v50 = vld [vmem:[%s8642_s3 + $0x8] sm:$0xff] }
 0x1c4   :  { %4827 = vmatprep.subr.bf16.mxu1 %v6795_v51  ;;  %v7014_v51 = vld [vmem:[%s8642_s3] sm:$0xff] }
 0x1c7   :  { %4829 = vmatpush3.bf16.msra.mxu1 %v6820_v62  ;;  %v7019_v62 = vld [vmem:[%s8642_s3 + $0x10] sm:$0xff] }
 0x1c8   :  { %4831 = vmatprep.subr.bf16.mxu1 %v6823_v0  ;;  %v7023_v0 = vcombine.high %v7009_v50, %v7009_v50  ;;  %v7029_v49 = vcombine.high %v7019_v62, %v7019_v62 }
 0x1cb   :  { %4833 = vmatpush3.bf16.msra.mxu1 %v6842_v6  ;;  %v1444_v6 = vcombine.high %v7014_v51, %v7014_v51 }
 0x1cc   :  { %3881 = vmatprep.subr.msk.mxu1 %vm368_vm0, %v7023_v0 }
 0x1cd   :  { %3878 = vmatprep.subr.msk.mxu0 %vm368_vm0, %v1444_v6 }
 0x1ce   :  { %1353 = vmatmul.mubr.f32.vlgmr.msra.gmra.mrb[10].mxu1 %v883_v13  ;;  %3879 = vmatpush1.msk.msra.mxu0 %vm368_vm0, %v7014_v51  ;;  %v2026_v13 = vld [vmem:[%s8645_s6 + $0x220] sm:$0xff] }
 0x1cf   :  { %1598 = vmatprep.mubr.f32.mxu1 %v5479_v7  ;;  %3882 = vmatpush1.msk.msra.mxu1 %vm368_vm0, %v7009_v50 }
 0x1d0   :  { %3884 = vmatprep.subr.msk.mxu1 %vm368_vm0, %v7029_v49  ;;  %5068 = vmatprep.subr.bf16.mxu0 %v5067_v44 }
 0x204   :  { %v3950_v61 = vpop.f32.mrb[4].mxu1 }
 0x205   :  { %v3951_v8 = vpop.f32.mrb[5].mxu1 }
 0x206   :  { %v3952_v28 = vadd.f32 %v3951_v8, %v3950_v61  ;;  %v4020_v29 = vpop.f32.mrb[4].mxu0  ;;  %v2029_v61 = vld [vmem:[%s8645_s6 + $0x238] sm:$0xff] }
 0x207   :  { %v4021_v39 = vpop.f32.mrb[5].mxu0 }
 0x208   :  { %v4022_v40 = vadd.f32 %v4021_v39, %v4020_v29  ;;  %v5077_v29 = vpack.c.bf16 %v1975_v12, %v1972_v63  ;;  %v1962_v39 = vld [vmem:[%s8645_s6 + $0x20] sm:$0xff]  ;;  %v2000_v12 = vld [vmem:[%s8645_s6 + $0x150] sm:$0xff] }
 0x243   :  { %v3985_v33 = vpop.f32.mrb[6].mxu1 }
 0x244   :  { %v3986_v26 = vpop.f32.mrb[7].mxu1 }
 0x245   :  { %v3987_v30 = vadd.f32 %v3986_v26, %v3985_v33  ;;  %v1958_v33 = vld [vmem:[%s8645_s6] sm:$0xff]  ;;  %v1961_v26 = vld [vmem:[%s8645_s6 + $0x18] sm:$0xff] }
 0x247   :  { %v1141_v32 = vadd.f32 %v3987_v30, %v3952_v28  ;;  %v1959_v28 = vld [vmem:[%s8645_s6 + $0x8] sm:$0xff] }
 0x264   :  { %v1424_v36 = vpop.f32.mrb[6].mxu0 }
 0x265   :  { %v1426_v41 = vpop.f32.mrb[7].mxu0 }
 0x266   :  { %v1964_v41 = vld [vmem:[%s8645_s6 + $0x30] sm:$0xff] }
 0x267   :  { %v4885_v44 = vpack.c.bf16 %v1967_v42, %v1964_v41  ;;  %v2018_v41 = vld [vmem:[%s8645_s6 + $0x1e0] sm:$0xff]  ;;  %v2021_v42 = vld [vmem:[%s8645_s6 + $0x1f8] sm:$0xff] }
 0x281   :  { %v1210_v46 = vpop.f32.mrb[8].mxu1 }
 0x282   :  { %v1211_v47 = vadd.f32 %v1210_v46, %v1141_v32  ;;  %v1212_v48 = vpop.f32.mrb[9].mxu1  ;;  %v1968_v32 = vld [vmem:[%s8645_s6 + $0x50] sm:$0xff] }
 0x283   :  { %v1973_v48 = vld [vmem:[%s8645_s6 + $0x78] sm:$0xff] }
 0x284   :  { %v1214_v57 = vmul.f32 0.002631579, %v1211_v47  ;;  %v1970_v47 = vld [vmem:[%s8645_s6 + $0x60] sm:$0xff] }
 0x286   :  { %v1429_v1 = vmul.f32 %v1214_v57, %v1214_v57 }
 0x2a1   :  { %v4055_v53 = vpop.f32.mrb[10].mxu1 }
 0x2a2   :  { %v4056_v55 = vpop.f32.mrb[11].mxu1 }
 0x2a3   :  { %v4057_v56 = vadd.f32 %v4056_v55, %v4055_v53  ;;  %v1977_v53 = vld [vmem:[%s8645_s6 + $0x98] sm:$0xff]  ;;  %v1980_v55 = vld [vmem:[%s8645_s6 + $0xb0] sm:$0xff] }
 0x2a5   :  { %v1355_v38 = vadd.f32 %v4057_v56, %v4022_v40  ;;  %v5079_v40 = vpack.c.bf16 %v2029_v61, %v2026_v13  ;;  %v4889_v56 = vpack.c.bf16 %v1973_v48, %v1970_v47  ;;  %v2003_v13 = vld [vmem:[%s8645_s6 + $0x168] sm:$0xff]  ;;  %v2024_v47 = vld [vmem:[%s8645_s6 + $0x210] sm:$0xff] }
 0x2a6   :  { %v2007_v61 = vld [vmem:[%s8645_s6 + $0x188] sm:$0xff] }
 0x2a7   :  { %v1425_v54 = vadd.f32 %v1424_v36, %v1355_v38  ;;  %v1976_v38 = vld [vmem:[%s8645_s6 + $0x90] sm:$0xff]  ;;  %v2027_v48 = vld [vmem:[%s8645_s6 + $0x228] sm:$0xff] }
 0x2a9   :  { %v1428_v3 = vmul.f32 0.002631579, %v1425_v54  ;;  %v1979_v54 = vld [vmem:[%s8645_s6 + $0xa8] sm:$0xff] }
 0x2ab   :  { %v1430_v11 = vsub.f32 %v1428_v3, %v1429_v1  ;;  %v1983_v1 = vld [vmem:[%s8645_s6 + $0xc8] sm:$0xff]  ;;  %v1986_v3 = vld [vmem:[%s8645_s6 + $0xe0] sm:$0xff] }
 0x2ad   :  { %v1432_v4 = vadd.f32 1e-05, %v1430_v11  ;;  %v4893_v11 = vpack.c.bf16 %v1979_v54, %v1976_v38  ;;  %v2035_v54 = vld [vmem:[%s8645_s6 + $0x268] sm:$0xff] }
 0x2af   :  { %5451 = vrsqrt.f32 %v1432_v4  ;;  %v4895_v4 = vpack.c.bf16 %v1986_v3, %v1983_v1  ;;  %v2030_v1 = vld [vmem:[%s8645_s6 + $0x240] sm:$0xff]  ;;  %v2033_v3 = vld [vmem:[%s8645_s6 + $0x258] sm:$0xff] }
 0x2b9   :  { %v5452_v60 = vpop.eup %5451 }
 0x2ba   :  { %v1434_v2 = vmul.f32 %v5452_v60, %v1431_v5  ;;  %v1982_v5 = vld [vmem:[%s8645_s6 + $0xc0] sm:$0xff]  ;;  %v4899_v60 = vpack.c.bf16 %v1992_v15, %v1989_v17  ;;  %v2037_v15 = vld [vmem:[%s8645_s6 + $0x278] sm:$0xff] }
 0x2bb   :  { %v4897_v18 = vpack.c.bf16 %v1985_v14, %v1982_v5  ;;  %v1984_v5 = vld [vmem:[%s8645_s6 + $0xd0] sm:$0xff]  ;;  %v1987_v14 = vld [vmem:[%s8645_s6 + $0xe8] sm:$0xff] }
 0x2bc   :  { %3880 = vmatmul.mubr.msk.f32.vlgmr.msra.gmra.mrb[8].mxu0 %vm1447_vm7, %v1434_v2  ;;  %3883 = vmatmul.mubr.msk.f32.vlgmr.msra.gmra.mrb[12].mxu1 %vm1447_vm7, %v1434_v2  ;;  %v1436_v25 = vmul.f32 %v1434_v2, %v1214_v57  ;;  %v4891_v57 = vpack.c.bf16 %v1980_v55, %v1977_v53  ;;  %v4925_v53 = vpack.c.bf16 %v2027_v48, %v2024_v47  ;;  %v2031_v55 = vld [vmem:[%s8645_s6 + $0x248] sm:$0xff] }
 0x2bd   :  { %3885 = vmatpush1.msk.msra.mxu1 %vm368_vm0, %v7019_v62  ;;  %1669 = vmatprep.mubr.f32.mxu1 %v5479_v7  ;;  %v5085_v17 = vpack.c.bf16 %v1987_v14, %v1984_v5  ;;  %v2107_v48 = vld [vmem:[%s8645_s6 + $0x4a8] sm:$0xff] }
 0x2be   :  { %3887 = vmatprep.subr.msk.mxu1 %vm368_vm0, %v1444_v6  ;;  %5070 = vmatpush3.bf16.msra.mxu0 %v5069_v16  ;;  %v1437_v8 = vsub.f32 %v1435_v19, %v1436_v25  ;;  %v4879_v6 = vpack.c.bf16 %v1962_v39, %v1959_v28  ;;  %v1991_v16 = vld [vmem:[%s8645_s6 + $0x108] sm:$0xff]  ;;  %v2004_v19 = vld [vmem:[%s8645_s6 + $0x170] sm:$0xff]  ;;  %v4909_v28 = vpack.c.bf16 %v2003_v13, %v2000_v12  ;;  %v2006_v39 = vld [vmem:[%s8645_s6 + $0x180] sm:$0xff] }
 0x2bf   :  { %5072 = vmatprep.subr.bf16.mxu0 %v5071_v24  ;;  %v1995_v24 = vld [vmem:[%s8645_s6 + $0x128] sm:$0xff] }
 0x2c0   :  { %3886 = vmatmul.mubr.msk.f32.vlgmr.msra.gmra.mrb[14].mxu1 %vm1447_vm7, %v1434_v2  ;;  %v1988_v2 = vld [vmem:[%s8645_s6 + $0xf0] sm:$0xff]  ;;  %v4903_v25 = vpack.c.bf16 %v1998_v23, %v1995_v24  ;;  %v2039_v23 = vld [vmem:[%s8645_s6 + $0x288] sm:$0xff] }
 0x2c1   :  { %3888 = vmatpush1.msk.msra.mxu1 %vm368_vm0, %v7014_v51  ;;  %1743 = vmatprep.mubr.f32.mxu1 %v5479_v7  ;;  %v1978_v51 = vld [vmem:[%s8645_s6 + $0xa0] sm:$0xff]  ;;  %v4901_v27 = vpack.c.bf16 %v1991_v16, %v1988_v2  ;;  %v2041_v16 = vld [vmem:[%s8645_s6 + $0x298] sm:$0xff]  ;;  %v2036_v24 = vld [vmem:[%s8645_s6 + $0x270] sm:$0xff] }
 0x2c2   :  { %3890 = vmatprep.subr.msk.mxu1 %vm368_vm0, %v7023_v0  ;;  %5074 = vmatpush3.bf16.msra.mxu0 %v5073_v31  ;;  %v1981_v0 = vld [vmem:[%s8645_s6 + $0xb8] sm:$0xff]  ;;  %v2047_v13 = vld [vmem:[%s8645_s6 + $0x2c8] sm:$0xff] }
 0x2c3   :  { %5076 = vmatprep.subr.bf16.mxu0 %v5075_v58  ;;  %v5081_v30 = vpack.c.bf16 %v1981_v0, %v1978_v51  ;;  %v2001_v31 = vld [vmem:[%s8645_s6 + $0x158] sm:$0xff]  ;;  %v4905_v58 = vpack.c.bf16 %v1997_v52, %v1994_v35  ;;  %v2016_v0 = vld [vmem:[%s8645_s6 + $0x1d0] sm:$0xff]  ;;  %v1990_v35 = vld [vmem:[%s8645_s6 + $0x100] sm:$0xff] }
 0x2c4   :  { %3889 = vmatmul.mubr.msk.f32.vlgmr.msra.gmra.mrb[16].mxu1 %vm1447_vm7, %v1437_v8  ;;  %v4907_v63 = vpack.c.bf16 %v2004_v19, %v2001_v31  ;;  %v2013_v51 = vld [vmem:[%s8645_s6 + $0x1b8] sm:$0xff]  ;;  %v2043_v19 = vld [vmem:[%s8645_s6 + $0x2a8] sm:$0xff] }
 0x2c5   :  { %3891 = vmatpush1.msk.msra.mxu1 %vm368_vm0, %v7009_v50  ;;  %1814 = vmatprep.mubr.f32.mxu1 %v5479_v7  ;;  %v1965_v50 = vld [vmem:[%s8645_s6 + $0x38] sm:$0xff] }
 0x2c6   :  { %3893 = vmatprep.subr.msk.mxu1 %vm368_vm0, %v7029_v49  ;;  %5078 = vmatpush3.bf16.msra.mxu0 %v5077_v29  ;;  %v4881_v49 = vpack.c.bf16 %v1961_v26, %v1958_v33  ;;  %v4883_v36 = vpack.c.bf16 %v1968_v32, %v1965_v50  ;;  %v4915_v33 = vpack.c.bf16 %v2016_v0, %v2013_v51  ;;  %v2012_v26 = vld [vmem:[%s8645_s6 + $0x1b0] sm:$0xff]  ;;  %v2019_v50 = vld [vmem:[%s8645_s6 + $0x1e8] sm:$0xff]  ;;  %v2022_v32 = vld [vmem:[%s8645_s6 + $0x200] sm:$0xff] }
 0x2c7   :  { %5080 = vmatprep.subr.bf16.mxu0 %v5079_v40  ;;  %v2009_v40 = vld [vmem:[%s8645_s6 + $0x198] sm:$0xff] }
 0x2c8   :  { %3892 = vmatmul.mubr.msk.f32.vlgmr.msra.gmra.mrb[18].mxu1 %vm1447_vm7, %v1437_v8  ;;  %v1993_v52 = vld [vmem:[%s8645_s6 + $0x118] sm:$0xff] }
 0x2c9   :  { %3894 = vmatpush1.msk.msra.mxu1 %vm368_vm0, %v7019_v62  ;;  %1885 = vmatprep.mubr.f32.mxu1 %v5479_v7  ;;  %v1974_v62 = vld [vmem:[%s8645_s6 + $0x80] sm:$0xff]  ;;  %v5089_v31 = vpack.c.bf16 %v1993_v52, %v1990_v35  ;;  %v2049_v0 = vld [vmem:[%s8645_s6 + $0x2d8] sm:$0xff] }
 0x2ca   :  { %4880 = vmatprep.subr.bf16.mxu1 %v4879_v6  ;;  %5082 = vmatpush3.bf16.msra.mxu0 %v5081_v30  ;;  %v4887_v46 = vpack.c.bf16 %v1974_v62, %v1971_v45  ;;  %v4913_v6 = vpack.c.bf16 %v2009_v40, %v2006_v39  ;;  %v2015_v30 = vld [vmem:[%s8645_s6 + $0x1c8] sm:$0xff]  ;;  %v2025_v45 = vld [vmem:[%s8645_s6 + $0x218] sm:$0xff]  ;;  %v2028_v62 = vld [vmem:[%s8645_s6 + $0x230] sm:$0xff] }
 0x2cb   :  { %v1996_v39 = vld [vmem:[%s8645_s6 + $0x130] sm:$0xff]  ;;  %v1999_v40 = vld [vmem:[%s8645_s6 + $0x148] sm:$0xff]  ;;  %v2054_v35 = vld [vmem:[%s8645_s6 + $0x300] sm:$0xff] }
 0x2cc   :  { %3895 = vmatmul.mubr.msk.f32.vlgmr.msra.gmra.mrb[20].mxu1 %vm1447_vm7, %v1437_v8  ;;  %v2010_v8 = vld [vmem:[%s8645_s6 + $0x1a0] sm:$0xff]  ;;  %v5093_v51 = vpack.c.bf16 %v1999_v40, %v1996_v39  ;;  %v2060_v40 = vld [vmem:[%s8645_s6 + $0x330] sm:$0xff] }
 0x2cd   :  { %4882 = vmatpush1.bf16.msra.mxu1 %v4881_v49  ;;  %v4911_v29 = vpack.c.bf16 %v2010_v8, %v2007_v61  ;;  %v4917_v49 = vpack.c.bf16 %v2015_v30, %v2012_v26  ;;  %v2042_v61 = vld [vmem:[%s8645_s6 + $0x2a0] sm:$0xff]  ;;  %v2045_v8 = vld [vmem:[%s8645_s6 + $0x2b8] sm:$0xff] }
 0x2ce   :  { %4884 = vmatprep.subr.bf16.mxu1 %v4883_v36  ;;  %v4919_v36 = vpack.c.bf16 %v2022_v32, %v2019_v50  ;;  %v2053_v30 = vld [vmem:[%s8645_s6 + $0x2f8] sm:$0xff]  ;;  %v2048_v50 = vld [vmem:[%s8645_s6 + $0x2d0] sm:$0xff]  ;;  %v2051_v32 = vld [vmem:[%s8645_s6 + $0x2e8] sm:$0xff] }
 0x2d1   :  { %4886 = vmatpush1.bf16.msra.mxu1 %v4885_v44  ;;  %v4921_v44 = vpack.c.bf16 %v2021_v42, %v2018_v41  ;;  %v2002_v41 = vld [vmem:[%s8645_s6 + $0x160] sm:$0xff]  ;;  %v2005_v42 = vld [vmem:[%s8645_s6 + $0x178] sm:$0xff] }
 0x2d2   :  { %4888 = vmatprep.subr.bf16.mxu1 %v4887_v46  ;;  %v4923_v46 = vpack.c.bf16 %v2028_v62, %v2025_v45  ;;  %v5097_v45 = vpack.c.bf16 %v2005_v42, %v2002_v41  ;;  %v2055_v62 = vld [vmem:[%s8645_s6 + $0x308] sm:$0xff]  ;;  %v2070_v41 = vld [vmem:[%s8645_s6 + $0x380] sm:$0xff]  ;;  %v2116_v42 = vld [vmem:[%s8645_s6 + $0x4f0] sm:$0xff] }
 0x2d5   :  { %4890 = vmatpush1.bf16.msra.mxu1 %v4889_v56  ;;  %v2034_v56 = vld [vmem:[%s8645_s6 + $0x260] sm:$0xff] }
 0x2d6   :  { %4892 = vmatprep.subr.bf16.mxu1 %v4891_v57  ;;  %v2032_v57 = vld [vmem:[%s8645_s6 + $0x250] sm:$0xff]  ;;  %v4927_v38 = vpack.c.bf16 %v2034_v56, %v2031_v55  ;;  %v7370_v55 = vsub.s32 0, %v5717_v10 }
 0x2d9   :  { %4894 = vmatpush1.bf16.msra.mxu1 %v4893_v11  ;;  %v5083_v11 = vpack.c.bf16 %v2035_v54, %v2032_v57 }
 0x2da   :  { %4896 = vmatprep.subr.bf16.mxu1 %v4895_v4  ;;  %v4929_v4 = vpack.c.bf16 %v2033_v3, %v2030_v1 }
 0x2db   :  { %5084 = vmatprep.subr.bf16.mxu0 %v5083_v11 }
 0x2dc   :  { %5086 = vmatpush3.bf16.msra.mxu0 %v5085_v17 }
 0x2dd   :  { %4898 = vmatpush1.bf16.msra.mxu1 %v4897_v18  ;;  %v2040_v18 = vld [vmem:[%s8645_s6 + $0x290] sm:$0xff] }
 0x2de   :  { %4900 = vmatprep.subr.bf16.mxu1 %v4899_v60  ;;  %v2038_v60 = vld [vmem:[%s8645_s6 + $0x280] sm:$0xff]  ;;  %v4931_v2 = vpack.c.bf16 %v2040_v18, %v2037_v15 }
 0x2e1   :  { %4902 = vmatpush1.bf16.msra.mxu1 %v4901_v27  ;;  %v5087_v27 = vpack.c.bf16 %v2041_v16, %v2038_v60 }
 0x2e2   :  { %4904 = vmatprep.subr.bf16.mxu1 %v4903_v25  ;;  %v4933_v25 = vpack.c.bf16 %v2039_v23, %v2036_v24 }
 0x2e3   :  { %5088 = vmatprep.subr.bf16.mxu0 %v5087_v27 }
 0x2e4   :  { %5090 = vmatpush3.bf16.msra.mxu0 %v5089_v31 }
 0x2e5   :  { %4906 = vmatpush1.bf16.msra.mxu1 %v4905_v58  ;;  %v2046_v58 = vld [vmem:[%s8645_s6 + $0x2c0] sm:$0xff] }
 0x2e6   :  { %4908 = vmatprep.subr.bf16.mxu1 %v4907_v63  ;;  %v2044_v63 = vld [vmem:[%s8645_s6 + $0x2b0] sm:$0xff]  ;;  %v4935_v12 = vpack.c.bf16 %v2046_v58, %v2043_v19 }
 0x2e7   :  { %v2064_v58 = vld [vmem:[%s8645_s6 + $0x350] sm:$0xff] }
 0x2e9   :  { %4910 = vmatpush1.bf16.msra.mxu1 %v4909_v28  ;;  %v5091_v28 = vpack.c.bf16 %v2047_v13, %v2044_v63  ;;  %v2110_v63 = vld [vmem:[%s8645_s6 + $0x4c0] sm:$0xff] }
 0x2ea   :  { %4912 = vmatprep.subr.bf16.mxu1 %v4911_v29  ;;  %v4937_v29 = vpack.c.bf16 %v2045_v8, %v2042_v61 }
 0x2eb   :  { %5092 = vmatprep.subr.bf16.mxu0 %v5091_v28 }
 0x2ec   :  { %5094 = vmatpush3.bf16.msra.mxu0 %v5093_v51  ;;  %v2063_v51 = vld [vmem:[%s8645_s6 + $0x348] sm:$0xff] }
 0x2ed   :  { %4914 = vmatpush1.bf16.msra.mxu1 %v4913_v6  ;;  %v2052_v6 = vld [vmem:[%s8645_s6 + $0x2f0] sm:$0xff] }
 0x2ee   :  { %4916 = vmatprep.subr.bf16.mxu1 %v4915_v33  ;;  %v2050_v33 = vld [vmem:[%s8645_s6 + $0x2e0] sm:$0xff]  ;;  %v4939_v26 = vpack.c.bf16 %v2052_v6, %v2049_v0 }
 0x2f1   :  { %4918 = vmatpush1.bf16.msra.mxu1 %v4917_v49  ;;  %v5095_v49 = vpack.c.bf16 %v2053_v30, %v2050_v33  ;;  %v2062_v30 = vld [vmem:[%s8645_s6 + $0x340] sm:$0xff] }
 0x2f2   :  { %4920 = vmatprep.subr.bf16.mxu1 %v4919_v36  ;;  %v4941_v36 = vpack.c.bf16 %v2051_v32, %v2048_v50  ;;  %v2065_v50 = vld [vmem:[%s8645_s6 + $0x358] sm:$0xff]  ;;  %v2067_v32 = vld [vmem:[%s8645_s6 + $0x368] sm:$0xff] }
 0x2f3   :  { %5096 = vmatprep.subr.bf16.mxu0 %v5095_v49 }
 0x2f4   :  { %5098 = vmatpush3.bf16.msra.mxu0 %v5097_v45  ;;  %v2119_v45 = vld [vmem:[%s8645_s6 + $0x508] sm:$0xff] }
 0x2f5   :  { %4922 = vmatpush1.bf16.msra.mxu1 %v4921_v44  ;;  %v2058_v44 = vld [vmem:[%s8645_s6 + $0x320] sm:$0xff] }
 0x2f6   :  { %4924 = vmatprep.subr.bf16.mxu1 %v4923_v46  ;;  %v2104_v46 = vld [vmem:[%s8645_s6 + $0x490] sm:$0xff]  ;;  %v4943_v47 = vpack.c.bf16 %v2058_v44, %v2055_v62 }
 0x2f9   :  { %4926 = vmatpush1.bf16.msra.mxu1 %v4925_v53  ;;  %v5099_v53 = vpack.c.bf16 %v2107_v48, %v2104_v46  ;;  %v4949_v48 = vpack.c.bf16 %v2063_v51, %v2060_v40  ;;  %v2087_v40 = vld [vmem:[%s8645_s6 + $0x408] sm:$0xff] }
 0x2fa   :  { %4928 = vmatprep.subr.bf16.mxu1 %v4927_v38 }
 0x2fb   :  { %5100 = vmatprep.subr.bf16.mxu0 %v5099_v53  ;;  %v5105_v53 = vpack.c.bf16 %v2065_v50, %v2062_v30  ;;  %v2091_v30 = vld [vmem:[%s8645_s6 + $0x428] sm:$0xff]  ;;  %v2094_v50 = vld [vmem:[%s8645_s6 + $0x440] sm:$0xff] }
 0x2fd   :  { %4930 = vmatpush1.bf16.msra.mxu1 %v4929_v4 }
 0x2fe   :  { %4932 = vmatprep.subr.bf16.mxu1 %v4931_v2 }
 0x301   :  { %4934 = vmatpush1.bf16.msra.mxu1 %v4933_v25 }
 0x302   :  { %4936 = vmatprep.subr.bf16.mxu1 %v4935_v12  ;;  %v2113_v12 = vld [vmem:[%s8645_s6 + $0x4d8] sm:$0xff] }
 0x305   :  { %4938 = vmatpush1.bf16.msra.mxu1 %v4937_v29 }
 0x306   :  { %4940 = vmatprep.subr.bf16.mxu1 %v4939_v26  ;;  %v5103_v26 = vpack.c.bf16 %v2113_v12, %v2110_v63  ;;  %v2083_v63 = vld [vmem:[%s8645_s6 + $0x3e8] sm:$0xff]  ;;  %v2085_v12 = vld [vmem:[%s8645_s6 + $0x3f8] sm:$0xff] }
 0x309   :  { %4942 = vmatpush1.bf16.msra.mxu1 %v4941_v36 }
 0x30a   :  { %4944 = vmatprep.subr.bf16.mxu1 %v4943_v47 }
 0x38f   :  { %v1529_v56 = vpop.f32.mrb[8].mxu0  ;;  %v1600_v57 = vpop.f32.mrb[12].mxu1 }
 0x390   :  { %v1903_v38 = vrot.slane %v1600_v57, %v7370_v55  ;;  %v1531_v54 = vpop.f32.mrb[9].mxu0  ;;  %v1602_v1 = vpop.f32.mrb[13].mxu1  ;;  %v1895_v14 = vrot.slane %v1529_v56, %v7370_v55  ;;  %v2066_v56 = vld [vmem:[%s8645_s6 + $0x360] sm:$0xff]  ;;  %v2069_v57 = vld [vmem:[%s8645_s6 + $0x378] sm:$0xff] }
 0x391   :  { %v1907_v3 = vrot.slane %v1602_v1, %v7370_v55  ;;  %v1899_v18 = vrot.slane %v1531_v54, %v7370_v55  ;;  %v4951_v54 = vpack.c.bf16 %v2070_v41, %v2067_v32  ;;  %v5107_v1 = vpack.c.bf16 %v2119_v45, %v2116_v42  ;;  %v2140_v32 = vld [vmem:[%s8645_s6 + $0x5b0] sm:$0xff]  ;;  %v2090_v42 = vld [vmem:[%s8645_s6 + $0x420] sm:$0xff]  ;;  %v2093_v45 = vld [vmem:[%s8645_s6 + $0x438] sm:$0xff] }
 0x392   :  { %v1918_v11 = vmul.f32 %v1903_v38, %v6897_v34  ;;  %v1916_v23 = vmul.f32 %v1895_v14, %v6623_v9  ;;  %v2056_v9 = vld [vmem:[%s8645_s6 + $0x310] sm:$0xff] }
 0x393   :  { %v1919_v4 = vmul.f32 %v1907_v3, %v6904_v37  ;;  %v1671_v5 = vpop.f32.mrb[14].mxu1  ;;  %v1917_v27 = vmul.f32 %v1899_v18, %v6625_v21  ;;  %v2061_v21 = vld [vmem:[%s8645_s6 + $0x338] sm:$0xff]  ;;  %v2068_v3 = vld [vmem:[%s8645_s6 + $0x370] sm:$0xff]  ;;  %v4953_v18 = vpack.c.bf16 %v2069_v57, %v2066_v56  ;;  %v2146_v56 = vld [vmem:[%s8645_s6 + $0x5e0] sm:$0xff] }
 0x394   :  { %v1911_v17 = vrot.slane %v1671_v5, %v7370_v55  ;;  %v1673_v15 = vpop.f32.mrb[15].mxu1  ;;  %v4947_v33 = vpack.c.bf16 %v2064_v58, %v2061_v21  ;;  %v2076_v14 = vld [vmem:[%s8645_s6 + $0x3b0] sm:$0xff]  ;;  %v2081_v21 = vld [vmem:[%s8645_s6 + $0x3d8] sm:$0xff] }
 0x395   :  { %v1915_v60 = vrot.slane %v1673_v15, %v7370_v55  ;;  %v2125_v15 = vld [vmem:[%s8645_s6 + $0x538] sm:$0xff]  ;;  %v2080_v58 = vld [vmem:[%s8645_s6 + $0x3d0] sm:$0xff] }
 0x396   :  { %v1920_v2 = vmul.f32 %v1911_v17, %v6945_v20  ;;  %v2057_v20 = vld [vmem:[%s8645_s6 + $0x318] sm:$0xff]  ;;  %v2122_v17 = vld [vmem:[%s8645_s6 + $0x520] sm:$0xff] }
 0x397   :  { %v1921_v16 = vmul.f32 %v1915_v60, %v6949_v22  ;;  %v1745_v24 = vpop.f32.mrb[16].mxu1  ;;  %v2059_v22 = vld [vmem:[%s8645_s6 + $0x328] sm:$0xff]  ;;  %v4945_v29 = vpack.c.bf16 %v2057_v20, %v2054_v35  ;;  %v2128_v35 = vld [vmem:[%s8645_s6 + $0x550] sm:$0xff]  ;;  %v2149_v57 = vld [vmem:[%s8645_s6 + $0x5f8] sm:$0xff] }
 0x398   :  { %v1925_v34 = vrot.slane %v1745_v24, %v7370_v55  ;;  %v1747_v37 = vpop.f32.mrb[17].mxu1  ;;  %v5101_v39 = vpack.c.bf16 %v2059_v22, %v2056_v9  ;;  %v2131_v20 = vld [vmem:[%s8645_s6 + $0x568] sm:$0xff]  ;;  %v2078_v22 = vld [vmem:[%s8645_s6 + $0x3c0] sm:$0xff] }
 0x399   :  { %v1929_v25 = vrot.slane %v1747_v37, %v7370_v55  ;;  %v2077_v37 = vld [vmem:[%s8645_s6 + $0x3b8] sm:$0xff] }
 0x39a   :  { %v1946_v52 = vadd.f32 %v1925_v34, %v1916_v23  ;;  %v5111_v23 = vpack.c.bf16 %v2125_v15, %v2122_v17  ;;  %v2074_v34 = vld [vmem:[%s8645_s6 + $0x3a0] sm:$0xff]  ;;  %v2101_v15 = vld [vmem:[%s8645_s6 + $0x478] sm:$0xff] }
 0x39b   :  { %v1947_v31 = vadd.f32 %v1929_v25, %v1917_v27  ;;  %v1816_v19 = vpop.f32.mrb[18].mxu1  ;;  %v2079_v27 = vld [vmem:[%s8645_s6 + $0x3c8] sm:$0xff]  ;;  %v2082_v25 = vld [vmem:[%s8645_s6 + $0x3e0] sm:$0xff]  ;;  %v5113_v9 = vpack.c.bf16 %v2077_v37, %v2074_v34  ;;  %v2105_v34 = vld [vmem:[%s8645_s6 + $0x498] sm:$0xff] }
 0x39c   :  { %v1933_v13 = vrot.slane %v1816_v19, %v7370_v55  ;;  %v1818_v61 = vpop.f32.mrb[19].mxu1  ;;  %v1952_v0 = vmax.f32 %v1946_v52, 0.0  ;;  %v5115_v19 = vpack.c.bf16 %v2131_v20, %v2128_v35  ;;  %v2098_v17 = vld [vmem:[%s8645_s6 + $0x460] sm:$0xff]  ;;  %v2152_v37 = vld [vmem:[%s8645_s6 + $0x610] sm:$0xff] }
 0x39d   :  { %v1953_v8 = vmax.f32 %v1947_v31, 0.0  ;;  %v1937_v28 = vrot.slane %v1818_v61, %v7370_v55  ;;  %v4959_v31 = vpack.c.bf16 %v2082_v25, %v2079_v27  ;;  %v2134_v61 = vld [vmem:[%s8645_s6 + $0x580] sm:$0xff]  ;;  %v2155_v27 = vld [vmem:[%s8645_s6 + $0x628] sm:$0xff]  ;;  %v2109_v25 = vld [vmem:[%s8645_s6 + $0x4b8] sm:$0xff] }
 0x39e   :  { %v7418_v6 = vadd.f32 %v1933_v13, %v1918_v11  ;;  %v2071_v11 = vld [vmem:[%s8645_s6 + $0x388] sm:$0xff]  ;;  %v2088_v13 = vld [vmem:[%s8645_s6 + $0x410] sm:$0xff] }
 0x39f   :  { %v1949_v49 = vadd.f32 %v1937_v28, %v1919_v4  ;;  %v1887_v36 = vpop.f32.mrb[20].mxu1  ;;  %2310 = vmatprep.mubr.f32.mxu1 %v1953_v8  ;;  %2523 = vmatprep.mubr.f32.mxu0 %v1953_v8  ;;  %v2073_v4 = vld [vmem:[%s8645_s6 + $0x398] sm:$0xff]  ;;  %v5109_v60 = vpack.c.bf16 %v2071_v11, %v2068_v3  ;;  %v4961_v28 = vpack.c.bf16 %v2081_v21, %v2078_v22  ;;  %v2096_v3 = vld [vmem:[%s8645_s6 + $0x450] sm:$0xff] }
 0x3a0   :  { %v1941_v62 = vrot.slane %v1887_v36, %v7370_v55  ;;  %v1889_v44 = vpop.f32.mrb[21].mxu1  ;;  %2311 = vmatmul.mubr.f32.vlgmr.msra.gmra.mrb[22].mxu1 %v1952_v0  ;;  %2524 = vmatmul.mubr.f32.vlgmr.msra.gmra.mrb[10].mxu0 %v1952_v0  ;;  %v4955_v24 = vpack.c.bf16 %v2076_v14, %v2073_v4  ;;  %v2137_v8 = vld [vmem:[%s8645_s6 + $0x598] sm:$0xff]  ;;  %v4963_v51 = vpack.c.bf16 %v2088_v13, %v2085_v12  ;;  %v2099_v14 = vld [vmem:[%s8645_s6 + $0x468] sm:$0xff]  ;;  %v2112_v35 = vld [vmem:[%s8645_s6 + $0x4d0] sm:$0xff]  ;;  %v1954_v22 = vmax.f32 %v7418_v6, 0.0 }
 0x3a1   :  { %v1955_v46 = vmax.f32 %v1949_v49, 0.0  ;;  %v1945_v47 = vrot.slane %v1889_v44, %v7370_v55  ;;  %4946 = vmatpush1.bf16.msra.mxu1 %v4945_v29  ;;  %5102 = vmatpush3.bf16.msra.mxu0 %v5101_v39  ;;  %v5117_v29 = vpack.c.bf16 %v2083_v63, %v2080_v58  ;;  %v2084_v39 = vld [vmem:[%s8645_s6 + $0x3f0] sm:$0xff]  ;;  %v5119_v0 = vpack.c.bf16 %v2137_v8, %v2134_v61  ;;  %v2143_v49 = vld [vmem:[%s8645_s6 + $0x5c8] sm:$0xff]  ;;  %v2161_v58 = vld [vmem:[%s8645_s6 + $0x658] sm:$0xff] }
 0x3a2   :  { %v7446_v38 = vadd.f32 %v1941_v62, %v1920_v2  ;;  %4948 = vmatprep.subr.bf16.mxu1 %v4947_v33  ;;  %5104 = vmatprep.subr.bf16.mxu0 %v5103_v26  ;;  %v2072_v2 = vld [vmem:[%s8645_s6 + $0x390] sm:$0xff]  ;;  %v2086_v33 = vld [vmem:[%s8645_s6 + $0x400] sm:$0xff]  ;;  %v2089_v26 = vld [vmem:[%s8645_s6 + $0x418] sm:$0xff]  ;;  %v4965_v36 = vpack.c.bf16 %v2087_v40, %v2084_v39  ;;  %v4967_v62 = vpack.c.bf16 %v2094_v50, %v2091_v30 }
 0x3a3   :  { %v7457_v5 = vadd.f32 %v1945_v47, %v1921_v16  ;;  %2381 = vmatprep.mubr.f32.mxu1 %v1955_v46  ;;  %2593 = vmatprep.mubr.f32.mxu0 %v1955_v46  ;;  %v2075_v16 = vld [vmem:[%s8645_s6 + $0x3a8] sm:$0xff]  ;;  %v5121_v41 = vpack.c.bf16 %v2089_v26, %v2086_v33  ;;  %v5123_v44 = vpack.c.bf16 %v2143_v49, %v2140_v32  ;;  %v2092_v46 = vld [vmem:[%s8645_s6 + $0x430] sm:$0xff]  ;;  %v2118_v12 = vld [vmem:[%s8645_s6 + $0x500] sm:$0xff] }
 0x3a4   :  { %v4957_v52 = vpack.c.bf16 %v2075_v16, %v2072_v2  ;;  %v2095_v47 = vld [vmem:[%s8645_s6 + $0x448] sm:$0xff]  ;;  %v5127_v4 = vpack.c.bf16 %v2149_v57, %v2146_v56  ;;  %v4973_v2 = vpack.c.bf16 %v2099_v14, %v2096_v3  ;;  %v5129_v16 = vpack.c.bf16 %v2101_v15, %v2098_v17  ;;  %v2117_v39 = vld [vmem:[%s8645_s6 + $0x4f8] sm:$0xff]  ;;  %v2164_v40 = vld [vmem:[%s8645_s6 + $0x670] sm:$0xff] }
 0x3a5   :  { %4950 = vmatpush1.bf16.msra.mxu1 %v4949_v48  ;;  %5106 = vmatpush3.bf16.msra.mxu0 %v5105_v53  ;;  %v2097_v48 = vld [vmem:[%s8645_s6 + $0x458] sm:$0xff]  ;;  %v2100_v53 = vld [vmem:[%s8645_s6 + $0x470] sm:$0xff]  ;;  %v4979_v21 = vpack.c.bf16 %v2112_v35, %v2109_v25  ;;  %v2115_v63 = vld [vmem:[%s8645_s6 + $0x4e8] sm:$0xff]  ;;  %v1957_v13 = vmax.f32 %v7457_v5, 0.0 }
 0x3a6   :  { %4952 = vmatprep.subr.bf16.mxu1 %v4951_v54  ;;  %5108 = vmatprep.subr.bf16.mxu0 %v5107_v1  ;;  %v4969_v54 = vpack.c.bf16 %v2093_v45, %v2090_v42  ;;  %v5125_v1 = vpack.c.bf16 %v2095_v47, %v2092_v46  ;;  %v4971_v11 = vpack.c.bf16 %v2100_v53, %v2097_v48  ;;  %v2124_v33 = vld [vmem:[%s8645_s6 + $0x530] sm:$0xff]  ;;  %v2123_v49 = vld [vmem:[%s8645_s6 + $0x528] sm:$0xff]  ;;  %v2130_v45 = vld [vmem:[%s8645_s6 + $0x560] sm:$0xff] }
 0x3a7   :  { %v2120_v50 = vld [vmem:[%s8645_s6 + $0x510] sm:$0xff]  ;;  %v2127_v42 = vld [vmem:[%s8645_s6 + $0x548] sm:$0xff]  ;;  %v2126_v46 = vld [vmem:[%s8645_s6 + $0x540] sm:$0xff] }
 0x3a8   :  { %v4991_v47 = vpack.c.bf16 %v2130_v45, %v2127_v42  ;;  %v2129_v48 = vld [vmem:[%s8645_s6 + $0x558] sm:$0xff]  ;;  %v2176_v53 = vld [vmem:[%s8645_s6 + $0x6d0] sm:$0xff]  ;;  %v2179_v56 = vld [vmem:[%s8645_s6 + $0x6e8] sm:$0xff] }
 0x3a9   :  { %4954 = vmatpush1.bf16.msra.mxu1 %v4953_v18  ;;  %5110 = vmatpush3.bf16.msra.mxu0 %v5109_v60  ;;  %v2103_v18 = vld [vmem:[%s8645_s6 + $0x488] sm:$0xff]  ;;  %v2106_v60 = vld [vmem:[%s8645_s6 + $0x4a0] sm:$0xff]  ;;  %v2133_v57 = vld [vmem:[%s8645_s6 + $0x578] sm:$0xff]  ;;  %v5144_v3 = vpack.c.bf16 %v2179_v56, %v2176_v53 }
 0x3aa   :  { %4956 = vmatprep.subr.bf16.mxu1 %v4955_v24  ;;  %5112 = vmatprep.subr.bf16.mxu0 %v5111_v23  ;;  %v2102_v24 = vld [vmem:[%s8645_s6 + $0x480] sm:$0xff]  ;;  %v4975_v23 = vpack.c.bf16 %v2106_v60, %v2103_v18  ;;  %v2135_v14 = vld [vmem:[%s8645_s6 + $0x588] sm:$0xff]  ;;  %v2185_v15 = vld [vmem:[%s8645_s6 + $0x718] sm:$0xff] }
 0x3ab   :  { %v4977_v20 = vpack.c.bf16 %v2105_v34, %v2102_v24  ;;  %v2182_v17 = vld [vmem:[%s8645_s6 + $0x700] sm:$0xff]  ;;  %v2139_v18 = vld [vmem:[%s8645_s6 + $0x5a8] sm:$0xff]  ;;  %v2141_v34 = vld [vmem:[%s8645_s6 + $0x5b8] sm:$0xff] }
 0x3ac   :  { %v2142_v60 = vld [vmem:[%s8645_s6 + $0x5c0] sm:$0xff]  ;;  %v2145_v25 = vld [vmem:[%s8645_s6 + $0x5d8] sm:$0xff]  ;;  %v2148_v35 = vld [vmem:[%s8645_s6 + $0x5f0] sm:$0xff] }
 0x3ad   :  { %4958 = vmatpush1.bf16.msra.mxu1 %v4957_v52  ;;  %5114 = vmatpush3.bf16.msra.mxu0 %v5113_v9  ;;  %v5132_v52 = vpack.c.bf16 %v2155_v27, %v2152_v37  ;;  %v2108_v9 = vld [vmem:[%s8645_s6 + $0x4b0] sm:$0xff]  ;;  %v2138_v24 = vld [vmem:[%s8645_s6 + $0x5a0] sm:$0xff]  ;;  %v2191_v27 = vld [vmem:[%s8645_s6 + $0x748] sm:$0xff] }
 0x3ae   :  { %4960 = vmatprep.subr.bf16.mxu1 %v4959_v31  ;;  %5116 = vmatprep.subr.bf16.mxu0 %v5115_v19  ;;  %v2111_v31 = vld [vmem:[%s8645_s6 + $0x4c8] sm:$0xff]  ;;  %v2158_v19 = vld [vmem:[%s8645_s6 + $0x640] sm:$0xff]  ;;  %v2188_v37 = vld [vmem:[%s8645_s6 + $0x730] sm:$0xff] }
 0x3af   :  { %v4981_v61 = vpack.c.bf16 %v2111_v31, %v2108_v9  ;;  %v5135_v8 = vpack.c.bf16 %v2161_v58, %v2158_v19  ;;  %v2144_v9 = vld [vmem:[%s8645_s6 + $0x5d0] sm:$0xff]  ;;  %v2147_v31 = vld [vmem:[%s8645_s6 + $0x5e8] sm:$0xff]  ;;  %v2194_v19 = vld [vmem:[%s8645_s6 + $0x760] sm:$0xff] }
 0x3b0   :  { %v2197_v58 = vld [vmem:[%s8645_s6 + $0x778] sm:$0xff]  ;;  %v2163_v42 = vld [vmem:[%s8645_s6 + $0x668] sm:$0xff]  ;;  %v2166_v45 = vld [vmem:[%s8645_s6 + $0x680] sm:$0xff] }
 0x3b1   :  { %4962 = vmatpush1.bf16.msra.mxu1 %v4961_v28  ;;  %5118 = vmatpush3.bf16.msra.mxu0 %v5117_v29  ;;  %v2114_v28 = vld [vmem:[%s8645_s6 + $0x4e0] sm:$0xff]  ;;  %v4983_v29 = vpack.c.bf16 %v2118_v12, %v2115_v63  ;;  %v2151_v63 = vld [vmem:[%s8645_s6 + $0x608] sm:$0xff]  ;;  %v2212_v6 = vld [vmem:[%s8645_s6 + $0x7f0] sm:$0xff] }
 0x3b2   :  { %4964 = vmatprep.subr.bf16.mxu1 %v4963_v51  ;;  %5120 = vmatprep.subr.bf16.mxu0 %v5119_v0  ;;  %v2167_v51 = vld [vmem:[%s8645_s6 + $0x688] sm:$0xff]  ;;  %v2121_v0 = vld [vmem:[%s8645_s6 + $0x518] sm:$0xff]  ;;  %v4985_v26 = vpack.c.bf16 %v2117_v39, %v2114_v28  ;;  %v2154_v12 = vld [vmem:[%s8645_s6 + $0x620] sm:$0xff] }
 0x3b3   :  { %v5138_v30 = vpack.c.bf16 %v2167_v51, %v2164_v40  ;;  %v4987_v32 = vpack.c.bf16 %v2124_v33, %v2121_v0  ;;  %v5007_v28 = vpack.c.bf16 %v2154_v12, %v2151_v63  ;;  %v2153_v39 = vld [vmem:[%s8645_s6 + $0x618] sm:$0xff]  ;;  %v2200_v40 = vld [vmem:[%s8645_s6 + $0x790] sm:$0xff]  ;;  %v2203_v51 = vld [vmem:[%s8645_s6 + $0x7a8] sm:$0xff] }
 0x3b4   :  { %v2157_v0 = vld [vmem:[%s8645_s6 + $0x638] sm:$0xff]  ;;  %v2160_v33 = vld [vmem:[%s8645_s6 + $0x650] sm:$0xff]  ;;  %v2215_v5 = vld [vmem:[%s8645_s6 + $0x808] sm:$0xff] }
 0x3b5   :  { %4966 = vmatpush1.bf16.msra.mxu1 %v4965_v36  ;;  %5122 = vmatpush3.bf16.msra.mxu0 %v5121_v41  ;;  %v2170_v36 = vld [vmem:[%s8645_s6 + $0x6a0] sm:$0xff]  ;;  %v2173_v41 = vld [vmem:[%s8645_s6 + $0x6b8] sm:$0xff]  ;;  %v5162_v56 = vpack.c.bf16 %v2215_v5, %v2212_v6  ;;  %v2207_v6 = vld [vmem:[%s8645_s6 + $0x7c8] sm:$0xff] }
 0x3b6   :  { %4968 = vmatprep.subr.bf16.mxu1 %v4967_v62  ;;  %5124 = vmatprep.subr.bf16.mxu0 %v5123_v44  ;;  %v4989_v62 = vpack.c.bf16 %v2123_v49, %v2120_v50  ;;  %v5141_v44 = vpack.c.bf16 %v2173_v41, %v2170_v36  ;;  %v5011_v50 = vpack.c.bf16 %v2160_v33, %v2157_v0  ;;  %v2159_v49 = vld [vmem:[%s8645_s6 + $0x648] sm:$0xff]  ;;  %v2206_v36 = vld [vmem:[%s8645_s6 + $0x7c0] sm:$0xff]  ;;  %v2209_v41 = vld [vmem:[%s8645_s6 + $0x7d8] sm:$0xff] }
 0x3b7   :  { %v2186_v12 = vld [vmem:[%s8645_s6 + $0x720] sm:$0xff]  ;;  %v2192_v33 = vld [vmem:[%s8645_s6 + $0x750] sm:$0xff]  ;;  %v2211_v5 = vld [vmem:[%s8645_s6 + $0x7e8] sm:$0xff] }
 0x3b9   :  { %4970 = vmatpush1.bf16.msra.mxu1 %v4969_v54  ;;  %5126 = vmatpush3.bf16.msra.mxu0 %v5125_v1  ;;  %v2136_v54 = vld [vmem:[%s8645_s6 + $0x590] sm:$0xff]  ;;  %v4993_v1 = vpack.c.bf16 %v2129_v48, %v2126_v46  ;;  %v5015_v46 = vpack.c.bf16 %v2166_v45, %v2163_v42  ;;  %v2165_v48 = vld [vmem:[%s8645_s6 + $0x678] sm:$0xff]  ;;  %v2242_v42 = vld [vmem:[%s8645_s6 + $0x8e0] sm:$0xff] }
 0x3ba   :  { %4972 = vmatprep.subr.bf16.mxu1 %v4971_v11  ;;  %5128 = vmatprep.subr.bf16.mxu0 %v5127_v4  ;;  %v2132_v11 = vld [vmem:[%s8645_s6 + $0x570] sm:$0xff]  ;;  %v4995_v4 = vpack.c.bf16 %v2136_v54, %v2133_v57  ;;  %v2205_v45 = vld [vmem:[%s8645_s6 + $0x7b8] sm:$0xff] }
 0x3bb   :  { %v2168_v54 = vld [vmem:[%s8645_s6 + $0x690] sm:$0xff] }
 0x3bd   :  { %4974 = vmatpush1.bf16.msra.mxu1 %v4973_v2  ;;  %5130 = vmatpush3.bf16.msra.mxu0 %v5129_v16  ;;  %v4997_v2 = vpack.c.bf16 %v2135_v14, %v2132_v11  ;;  %v5147_v16 = vpack.c.bf16 %v2185_v15, %v2182_v17  ;;  %v2221_v11 = vld [vmem:[%s8645_s6 + $0x838] sm:$0xff]  ;;  %v2178_v14 = vld [vmem:[%s8645_s6 + $0x6e0] sm:$0xff] }
 0x3be   :  { %4976 = vmatprep.subr.bf16.mxu1 %v4975_v23  ;;  %5131 = vmatprep.subr.bf16.mxu0 %v5482_v59  ;;  %v4999_v23 = vpack.c.bf16 %v2142_v60, %v2139_v18  ;;  %v2174_v60 = vld [vmem:[%s8645_s6 + $0x6c0] sm:$0xff] }
 0x3c0   :  { %2594 = vmatmul.mubr.f32.vlgmr.msra.gmra.mrb[12].mxu0 %v1954_v22 }
 0x3c1   :  { %4978 = vmatpush1.bf16.msra.mxu1 %v4977_v20  ;;  %5133 = vmatpush1.bf16.msra.mxu0 %v5132_v52  ;;  %v5001_v20 = vpack.c.bf16 %v2141_v34, %v2138_v24  ;;  %v5150_v52 = vpack.c.bf16 %v2191_v27, %v2188_v37  ;;  %v2227_v24 = vld [vmem:[%s8645_s6 + $0x868] sm:$0xff]  ;;  %v2184_v34 = vld [vmem:[%s8645_s6 + $0x710] sm:$0xff] }
 0x3c2   :  { %3897 = vmatprep.mubr.msk.f32.mxu0 %vm1000_vm6, %v1957_v13  ;;  %4980 = vmatprep.subr.bf16.mxu1 %v4979_v21  ;;  %v5003_v21 = vpack.c.bf16 %v2148_v35, %v2145_v25  ;;  %v2180_v35 = vld [vmem:[%s8645_s6 + $0x6f0] sm:$0xff] }
 0x3c3   :  { %5134 = vmatprep.subr.bf16.mxu0 %v5482_v59 }
 0x3c5   :  { %4982 = vmatpush1.bf16.msra.mxu1 %v4981_v61  ;;  %5136 = vmatpush1.bf16.msra.mxu0 %v5135_v8  ;;  %v5005_v61 = vpack.c.bf16 %v2147_v31, %v2144_v9  ;;  %v5153_v8 = vpack.c.bf16 %v2197_v58, %v2194_v19  ;;  %v2233_v9 = vld [vmem:[%s8645_s6 + $0x898] sm:$0xff]  ;;  %v2190_v31 = vld [vmem:[%s8645_s6 + $0x740] sm:$0xff] }
 0x3c6   :  { %4984 = vmatprep.subr.bf16.mxu1 %v4983_v29  ;;  %5137 = vmatprep.subr.bf16.mxu0 %v5482_v59  ;;  %v2150_v29 = vld [vmem:[%s8645_s6 + $0x600] sm:$0xff] }
 0x3c9   :  { %4986 = vmatpush1.bf16.msra.mxu1 %v4985_v26  ;;  %5139 = vmatpush1.bf16.msra.mxu0 %v5138_v30  ;;  %v5009_v26 = vpack.c.bf16 %v2153_v39, %v2150_v29  ;;  %v5156_v30 = vpack.c.bf16 %v2203_v51, %v2200_v40  ;;  %v2193_v29 = vld [vmem:[%s8645_s6 + $0x758] sm:$0xff]  ;;  %v2196_v39 = vld [vmem:[%s8645_s6 + $0x770] sm:$0xff] }
 0x3ca   :  { %4988 = vmatprep.subr.bf16.mxu1 %v4987_v32  ;;  %5140 = vmatprep.subr.bf16.mxu0 %v5482_v59  ;;  %v2156_v32 = vld [vmem:[%s8645_s6 + $0x630] sm:$0xff]  ;;  %v5035_v0 = vpack.c.bf16 %v2196_v39, %v2193_v29 }
 0x3cb   :  { %v2733_v39 = vld [vmem:[%s8646_s7 + $0x90] sm:$0xff] }
 0x3cd   :  { %4990 = vmatpush1.bf16.msra.mxu1 %v4989_v62  ;;  %5142 = vmatpush1.bf16.msra.mxu0 %v5141_v44  ;;  %v5013_v62 = vpack.c.bf16 %v2159_v49, %v2156_v32  ;;  %v5159_v44 = vpack.c.bf16 %v2209_v41, %v2206_v36  ;;  %v2198_v36 = vld [vmem:[%s8645_s6 + $0x780] sm:$0xff]  ;;  %v2201_v41 = vld [vmem:[%s8645_s6 + $0x798] sm:$0xff] }
 0x3ce   :  { %4992 = vmatprep.subr.bf16.mxu1 %v4991_v47  ;;  %5143 = vmatprep.subr.bf16.mxu0 %v5482_v59  ;;  %v2162_v47 = vld [vmem:[%s8645_s6 + $0x660] sm:$0xff] }
 0x3cf   :  { %v5017_v53 = vpack.c.bf16 %v2165_v48, %v2162_v47  ;;  %v2204_v48 = vld [vmem:[%s8645_s6 + $0x7b0] sm:$0xff] }
 0x3d1   :  { %4994 = vmatpush1.bf16.msra.mxu1 %v4993_v1  ;;  %5145 = vmatpush1.bf16.msra.mxu0 %v5144_v3  ;;  %v2171_v1 = vld [vmem:[%s8645_s6 + $0x6a8] sm:$0xff]  ;;  %v2218_v3 = vld [vmem:[%s8645_s6 + $0x820] sm:$0xff] }
 0x3d2   :  { %4996 = vmatprep.subr.bf16.mxu1 %v4995_v4  ;;  %5146 = vmatprep.subr.bf16.mxu0 %v5482_v59  ;;  %v2175_v4 = vld [vmem:[%s8645_s6 + $0x6c8] sm:$0xff]  ;;  %v5021_v17 = vpack.c.bf16 %v2171_v1, %v2168_v54  ;;  %v5165_v15 = vpack.c.bf16 %v2221_v11, %v2218_v3  ;;  %v2220_v54 = vld [vmem:[%s8645_s6 + $0x830] sm:$0xff] }
 0x3d3   :  { %v5023_v18 = vpack.c.bf16 %v2178_v14, %v2175_v4  ;;  %v2216_v11 = vld [vmem:[%s8645_s6 + $0x810] sm:$0xff]  ;;  %v2219_v4 = vld [vmem:[%s8645_s6 + $0x828] sm:$0xff] }
 0x3d4   :  { %v2223_v14 = vld [vmem:[%s8645_s6 + $0x848] sm:$0xff] }
 0x3d5   :  { %4998 = vmatpush1.bf16.msra.mxu1 %v4997_v2  ;;  %5148 = vmatpush1.bf16.msra.mxu0 %v5147_v16  ;;  %v2177_v2 = vld [vmem:[%s8645_s6 + $0x6d8] sm:$0xff]  ;;  %v2224_v16 = vld [vmem:[%s8645_s6 + $0x850] sm:$0xff] }
 0x3d6   :  { %5000 = vmatprep.subr.bf16.mxu1 %v4999_v23  ;;  %5149 = vmatprep.subr.bf16.mxu0 %v5482_v59  ;;  %v2181_v23 = vld [vmem:[%s8645_s6 + $0x6f8] sm:$0xff]  ;;  %v5025_v37 = vpack.c.bf16 %v2177_v2, %v2174_v60  ;;  %v5168_v27 = vpack.c.bf16 %v2227_v24, %v2224_v16  ;;  %v2222_v60 = vld [vmem:[%s8645_s6 + $0x840] sm:$0xff]  ;;  %v2232_v24 = vld [vmem:[%s8645_s6 + $0x890] sm:$0xff] }
 0x3d7   :  { %v5027_v25 = vpack.c.bf16 %v2184_v34, %v2181_v23  ;;  %v2225_v2 = vld [vmem:[%s8645_s6 + $0x858] sm:$0xff] }
 0x3d8   :  { %v2229_v16 = vld [vmem:[%s8645_s6 + $0x878] sm:$0xff]  ;;  %v5057_v23 = vpack.c.bf16 %v2225_v2, %v2222_v60  ;;  %v2727_v60 = vld [vmem:[%s8646_s7 + $0x60] sm:$0xff]  ;;  %v2728_v2 = vld [vmem:[%s8646_s7 + $0x68] sm:$0xff] }
 0x3d9   :  { %5002 = vmatpush1.bf16.msra.mxu1 %v5001_v20  ;;  %5151 = vmatpush1.bf16.msra.mxu0 %v5150_v52  ;;  %v2183_v20 = vld [vmem:[%s8645_s6 + $0x708] sm:$0xff]  ;;  %v2230_v52 = vld [vmem:[%s8645_s6 + $0x880] sm:$0xff]  ;;  %v5059_v34 = vpack.c.bf16 %v2232_v24, %v2229_v16  ;;  %v5202_v16 = vpack.c.bf16 %v2728_v2, %v2727_v60  ;;  %v2745_v24 = vld [vmem:[%s8646_s7 + $0xf0] sm:$0xff] }
 0x3da   :  { %5004 = vmatprep.subr.bf16.mxu1 %v5003_v21  ;;  %5152 = vmatprep.subr.bf16.mxu0 %v5482_v59  ;;  %v2187_v21 = vld [vmem:[%s8645_s6 + $0x728] sm:$0xff]  ;;  %v5029_v19 = vpack.c.bf16 %v2183_v20, %v2180_v35  ;;  %v5171_v58 = vpack.c.bf16 %v2233_v9, %v2230_v52  ;;  %v2238_v35 = vld [vmem:[%s8645_s6 + $0x8c0] sm:$0xff] }
 0x3db   :  { %v5031_v63 = vpack.c.bf16 %v2190_v31, %v2187_v21  ;;  %v2234_v9 = vld [vmem:[%s8645_s6 + $0x8a0] sm:$0xff]  ;;  %v2237_v21 = vld [vmem:[%s8645_s6 + $0x8b8] sm:$0xff] }
 0x3dc   :  { %v5065_v31 = vpack.c.bf16 %v2237_v21, %v2234_v9 }
 0x3dd   :  { %5006 = vmatpush1.bf16.msra.mxu1 %v5005_v61  ;;  %5154 = vmatpush1.bf16.msra.mxu0 %v5153_v8  ;;  %v2189_v61 = vld [vmem:[%s8645_s6 + $0x738] sm:$0xff]  ;;  %v2236_v8 = vld [vmem:[%s8645_s6 + $0x8b0] sm:$0xff] }
 0x3de   :  { %5008 = vmatprep.subr.bf16.mxu1 %v5007_v28  ;;  %5155 = vmatprep.subr.bf16.mxu0 %v5482_v59  ;;  %v2239_v28 = vld [vmem:[%s8645_s6 + $0x8c8] sm:$0xff]  ;;  %v5033_v40 = vpack.c.bf16 %v2189_v61, %v2186_v12 }
 0x3df   :  { %v5174_v51 = vpack.c.bf16 %v2239_v28, %v2236_v8  ;;  %v2732_v12 = vld [vmem:[%s8646_s7 + $0x88] sm:$0xff]  ;;  %v2715_v8 = vld [vmem:[%s8646_s7] sm:$0xff] }
 0x3e0   :  { %2382 = vmatmul.mubr.f32.vlgmr.msra.gmra.mrb[22].mxu1 %v1954_v22  ;;  %v2169_v22 = vld [vmem:[%s8645_s6 + $0x698] sm:$0xff]  ;;  %v2716_v28 = vld [vmem:[%s8646_s7 + $0x8] sm:$0xff] }
 0x3e1   :  { %5010 = vmatpush1.bf16.msra.mxu1 %v5009_v26  ;;  %3896 = vmatprep.mubr.msk.f32.mxu1 %vm1000_vm6, %v1957_v13  ;;  %v2172_v13 = vld [vmem:[%s8645_s6 + $0x6b0] sm:$0xff]  ;;  %v2195_v26 = vld [vmem:[%s8645_s6 + $0x768] sm:$0xff]  ;;  %v5178_v29 = vpack.c.bf16 %v2716_v28, %v2715_v8 }
 0x3e2   :  { %5157 = vmatpush1.bf16.msra.mxu0 %v5156_v30  ;;  %5012 = vmatprep.subr.bf16.mxu1 %v5011_v50  ;;  %v5019_v57 = vpack.c.bf16 %v2172_v13, %v2169_v22  ;;  %v2199_v30 = vld [vmem:[%s8645_s6 + $0x788] sm:$0xff]  ;;  %v2202_v50 = vld [vmem:[%s8645_s6 + $0x7a0] sm:$0xff]  ;;  %v5037_v32 = vpack.c.bf16 %v2195_v26, %v2192_v33  ;;  %v5045_v22 = vpack.c.bf16 %v2207_v6, %v2204_v48  ;;  %v2718_v33 = vld [vmem:[%s8646_s7 + $0x18] sm:$0xff] }
 0x3e3   :  { %5158 = vmatprep.subr.bf16.mxu0 %v5482_v59  ;;  %v5039_v49 = vpack.c.bf16 %v2202_v50, %v2199_v30  ;;  %v2735_v26 = vld [vmem:[%s8646_s7 + $0xa0] sm:$0xff]  ;;  %v2736_v30 = vld [vmem:[%s8646_s7 + $0xa8] sm:$0xff] }
 0x3e4   :  { %v2740_v48 = vld [vmem:[%s8646_s7 + $0xc8] sm:$0xff] }
 0x3e5   :  { %5014 = vmatpush1.bf16.msra.mxu1 %v5013_v62  ;;  %v2208_v62 = vld [vmem:[%s8645_s6 + $0x7d0] sm:$0xff] }
 0x3e6   :  { %5160 = vmatpush1.bf16.msra.mxu0 %v5159_v44  ;;  %5016 = vmatprep.subr.bf16.mxu1 %v5015_v46  ;;  %v1956_v44 = vmax.f32 %v7446_v38, 0.0  ;;  %v5041_v46 = vpack.c.bf16 %v2201_v41, %v2198_v36  ;;  %v5043_v47 = vpack.c.bf16 %v2208_v62, %v2205_v45  ;;  %v2214_v38 = vld [vmem:[%s8645_s6 + $0x800] sm:$0xff]  ;;  %v2720_v36 = vld [vmem:[%s8646_s7 + $0x28] sm:$0xff]  ;;  %v2737_v41 = vld [vmem:[%s8646_s7 + $0xb0] sm:$0xff] }
 0x3e7   :  { %5161 = vmatprep.subr.bf16.mxu0 %v5482_v59  ;;  %v5047_v13 = vpack.c.bf16 %v2214_v38, %v2211_v5  ;;  %v2723_v38 = vld [vmem:[%s8646_s7 + $0x40] sm:$0xff] }
 0x3e9   :  { %5018 = vmatpush1.bf16.msra.mxu1 %v5017_v53  ;;  %v2210_v53 = vld [vmem:[%s8645_s6 + $0x7e0] sm:$0xff] }
 0x3ea   :  { %5163 = vmatpush1.bf16.msra.mxu0 %v5162_v56  ;;  %5020 = vmatprep.subr.bf16.mxu1 %v5019_v57  ;;  %v2213_v56 = vld [vmem:[%s8645_s6 + $0x7f8] sm:$0xff] }
 0x3eb   :  { %5164 = vmatprep.subr.bf16.mxu0 %v5482_v59  ;;  %v2217_v57 = vld [vmem:[%s8645_s6 + $0x818] sm:$0xff]  ;;  %v5049_v1 = vpack.c.bf16 %v2213_v56, %v2210_v53  ;;  %v2741_v53 = vld [vmem:[%s8646_s7 + $0xd0] sm:$0xff] }
 0x3ec   :  { %v5051_v3 = vpack.c.bf16 %v2220_v54, %v2217_v57  ;;  %v2742_v56 = vld [vmem:[%s8646_s7 + $0xd8] sm:$0xff] }
 0x3ed   :  { %5022 = vmatpush1.bf16.msra.mxu1 %v5021_v17  ;;  %v2226_v17 = vld [vmem:[%s8645_s6 + $0x860] sm:$0xff]  ;;  %v5196_v54 = vpack.c.bf16 %v2742_v56, %v2741_v53 }
 0x3ee   :  { %5166 = vmatpush1.bf16.msra.mxu0 %v5165_v15  ;;  %5024 = vmatprep.subr.bf16.mxu1 %v5023_v18  ;;  %v5053_v15 = vpack.c.bf16 %v2219_v4, %v2216_v11  ;;  %v5055_v18 = vpack.c.bf16 %v2226_v17, %v2223_v14  ;;  %v2743_v17 = vld [vmem:[%s8646_s7 + $0xe0] sm:$0xff] }
 0x3ef   :  { %5167 = vmatprep.subr.bf16.mxu0 %v5482_v59 }
 0x3f1   :  { %5026 = vmatpush1.bf16.msra.mxu1 %v5025_v37  ;;  %v2228_v37 = vld [vmem:[%s8645_s6 + $0x870] sm:$0xff] }
 0x3f2   :  { %5169 = vmatpush1.bf16.msra.mxu0 %v5168_v27  ;;  %5028 = vmatprep.subr.bf16.mxu1 %v5027_v25  ;;  %v2231_v27 = vld [vmem:[%s8645_s6 + $0x888] sm:$0xff] }
 0x3f3   :  { %5170 = vmatprep.subr.bf16.mxu0 %v5482_v59  ;;  %v2235_v25 = vld [vmem:[%s8645_s6 + $0x8a8] sm:$0xff]  ;;  %v5061_v20 = vpack.c.bf16 %v2231_v27, %v2228_v37  ;;  %v2729_v37 = vld [vmem:[%s8646_s7 + $0x70] sm:$0xff]  ;;  %v2730_v27 = vld [vmem:[%s8646_s7 + $0x78] sm:$0xff] }
 0x3f4   :  { %v5063_v52 = vpack.c.bf16 %v2238_v35, %v2235_v25  ;;  %v5206_v25 = vpack.c.bf16 %v2730_v27, %v2729_v37  ;;  %v2757_v27 = vld [vmem:[%s8646_s7 + $0x150] sm:$0xff] }
 0x3f5   :  { %5030 = vmatpush1.bf16.msra.mxu1 %v5029_v19  ;;  %v2241_v19 = vld [vmem:[%s8645_s6 + $0x8d8] sm:$0xff] }
 0x3f6   :  { %5172 = vmatpush1.bf16.msra.mxu0 %v5171_v58  ;;  %5032 = vmatprep.subr.bf16.mxu1 %v5031_v63  ;;  %v2240_v58 = vld [vmem:[%s8645_s6 + $0x8d0] sm:$0xff]  ;;  %v2731_v63 = vld [vmem:[%s8646_s7 + $0x80] sm:$0xff] }
 0x3f7   :  { %5173 = vmatprep.subr.bf16.mxu0 %v5482_v59  ;;  %v5176_v61 = vpack.c.bf16 %v2732_v12, %v2731_v63 }
 0x3f9   :  { %5034 = vmatpush1.bf16.msra.mxu1 %v5033_v40  ;;  %v2734_v40 = vld [vmem:[%s8646_s7 + $0x98] sm:$0xff] }
 0x3fa   :  { %5175 = vmatpush1.bf16.msra.mxu0 %v5174_v51  ;;  %5036 = vmatprep.subr.bf16.mxu1 %v5035_v0  ;;  %v2717_v51 = vld [vmem:[%s8646_s7 + $0x10] sm:$0xff]  ;;  %v5180_v0 = vpack.c.bf16 %v2734_v40, %v2733_v39 }
 0x3fb   :  { %2659 = vmatprep.subr.mxu0 %v5479_v7  ;;  %v5182_v50 = vpack.c.bf16 %v2718_v33, %v2717_v51 }
 0x3fd   :  { %5038 = vmatpush1.bf16.msra.mxu1 %v5037_v32  ;;  %v5184_v32 = vpack.c.bf16 %v2736_v30, %v2735_v26 }
 0x3fe   :  { %2660 = vmatpush1.msra.mxu0 %v2242_v42  ;;  %5040 = vmatprep.subr.bf16.mxu1 %v5039_v49  ;;  %v2719_v49 = vld [vmem:[%s8646_s7 + $0x20] sm:$0xff]  ;;  %v2738_v42 = vld [vmem:[%s8646_s7 + $0xb8] sm:$0xff] }
 0x3ff   :  { %2664 = vmatmul.mubr.f32.vlgmr.msra.gmra.mrb[14].mxu0 %v1956_v44  ;;  %5177 = vmatprep.subr.bf16.mxu0 %v5176_v61  ;;  %v5186_v45 = vpack.c.bf16 %v2720_v36, %v2719_v49  ;;  %v5188_v62 = vpack.c.bf16 %v2738_v42, %v2737_v41 }
 0x400   :  { %5179 = vmatpush3.bf16.msra.mxu0 %v5178_v29 }
 0x401   :  { %5042 = vmatpush1.bf16.msra.mxu1 %v5041_v46  ;;  %5181 = vmatprep.subr.bf16.mxu0 %v5180_v0  ;;  %v2722_v46 = vld [vmem:[%s8646_s7 + $0x38] sm:$0xff] }
 0x402   :  { %5044 = vmatprep.subr.bf16.mxu1 %v5043_v47  ;;  %v2739_v47 = vld [vmem:[%s8646_s7 + $0xc0] sm:$0xff] }
 0x403   :  { %v5192_v5 = vpack.c.bf16 %v2740_v48, %v2739_v47  ;;  %v2747_v47 = vld [vmem:[%s8646_s7 + $0x100] sm:$0xff]  ;;  %v2748_v48 = vld [vmem:[%s8646_s7 + $0x108] sm:$0xff] }
 0x404   :  { %5183 = vmatpush3.bf16.msra.mxu0 %v5182_v50 }
 0x405   :  { %5046 = vmatpush1.bf16.msra.mxu1 %v5045_v22  ;;  %5185 = vmatprep.subr.bf16.mxu0 %v5184_v32  ;;  %v2724_v22 = vld [vmem:[%s8646_s7 + $0x48] sm:$0xff] }
 0x406   :  { %5048 = vmatprep.subr.bf16.mxu1 %v5047_v13  ;;  %v5194_v13 = vpack.c.bf16 %v2724_v22, %v2723_v38 }
 0x408   :  { %5187 = vmatpush3.bf16.msra.mxu0 %v5186_v45 }
 0x409   :  { %5050 = vmatpush1.bf16.msra.mxu1 %v5049_v1  ;;  %5189 = vmatprep.subr.bf16.mxu0 %v5188_v62  ;;  %v2725_v1 = vld [vmem:[%s8646_s7 + $0x50] sm:$0xff] }
 0x40a   :  { %5052 = vmatprep.subr.bf16.mxu1 %v5051_v3  ;;  %v2726_v3 = vld [vmem:[%s8646_s7 + $0x58] sm:$0xff] }
 0x40b   :  { %v5198_v4 = vpack.c.bf16 %v2726_v3, %v2725_v1 }
 0x40d   :  { %5054 = vmatpush1.bf16.msra.mxu1 %v5053_v15  ;;  %v2744_v15 = vld [vmem:[%s8646_s7 + $0xe8] sm:$0xff] }
 0x40e   :  { %5056 = vmatprep.subr.bf16.mxu1 %v5055_v18  ;;  %v5200_v18 = vpack.c.bf16 %v2744_v15, %v2743_v17  ;;  %v2753_v15 = vld [vmem:[%s8646_s7 + $0x130] sm:$0xff] }
 0x411   :  { %5058 = vmatpush1.bf16.msra.mxu1 %v5057_v23  ;;  %v2746_v23 = vld [vmem:[%s8646_s7 + $0xf8] sm:$0xff] }
 0x412   :  { %5060 = vmatprep.subr.bf16.mxu1 %v5059_v34  ;;  %v5204_v34 = vpack.c.bf16 %v2746_v23, %v2745_v24  ;;  %v2755_v24 = vld [vmem:[%s8646_s7 + $0x140] sm:$0xff]  ;;  %v2756_v23 = vld [vmem:[%s8646_s7 + $0x148] sm:$0xff] }
 0x415   :  { %5062 = vmatpush1.bf16.msra.mxu1 %v5061_v20 }
 0x416   :  { %5064 = vmatprep.subr.bf16.mxu1 %v5063_v52 }
 0x419   :  { %5066 = vmatpush1.bf16.msra.mxu1 %v5065_v31 }
 0x41a   :  { %2448 = vmatprep.subr.mxu1 %v2241_v19 }
 0x41d   :  { %2449 = vmatpush1.msra.mxu1 %v2240_v58 }
 0x41e   :  { %2453 = vmatmul.mubr.f32.vlgmr.msra.gmra.mrb[22].mxu1 %v1956_v44  ;;  %5234 = vmatprep.subr.bf16.mxu1 %v5176_v61  ;;  %v2721_v44 = vld [vmem:[%s8646_s7 + $0x30] sm:$0xff] }
 0x41f   :  { %5236 = vmatpush3.bf16.msra.mxu1 %v5178_v29  ;;  %v5190_v6 = vpack.c.bf16 %v2722_v46, %v2721_v44 }
 0x420   :  { %5238 = vmatprep.subr.bf16.mxu1 %v5180_v0 }
 0x421   :  { %5191 = vmatpush3.bf16.msra.mxu0 %v5190_v6 }
 0x422   :  { %5193 = vmatprep.subr.bf16.mxu0 %v5192_v5 }
 0x423   :  { %5240 = vmatpush3.bf16.msra.mxu1 %v5182_v50 }
 0x424   :  { %5242 = vmatprep.subr.bf16.mxu1 %v5184_v32 }
 0x425   :  { %5195 = vmatpush3.bf16.msra.mxu0 %v5194_v13 }
 0x426   :  { %5197 = vmatprep.subr.bf16.mxu0 %v5196_v54 }
 0x427   :  { %5244 = vmatpush3.bf16.msra.mxu1 %v5186_v45 }
 0x428   :  { %5246 = vmatprep.subr.bf16.mxu1 %v5188_v62 }
 0x429   :  { %5199 = vmatpush3.bf16.msra.mxu0 %v5198_v4 }
 0x42a   :  { %5201 = vmatprep.subr.bf16.mxu0 %v5200_v18 }
 0x42b   :  { %5248 = vmatpush3.bf16.msra.mxu1 %v5190_v6 }
 0x42c   :  { %5250 = vmatprep.subr.bf16.mxu1 %v5192_v5 }
 0x42d   :  { %5203 = vmatpush3.bf16.msra.mxu0 %v5202_v16 }
 0x42e   :  { %5205 = vmatprep.subr.bf16.mxu0 %v5204_v34 }
 0x42f   :  { %5252 = vmatpush3.bf16.msra.mxu1 %v5194_v13  ;;  %v5209_v13 = vpack.c.bf16 %v2748_v48, %v2747_v47 }
 0x430   :  { %5254 = vmatprep.subr.bf16.mxu1 %v5196_v54  ;;  %v2750_v54 = vld [vmem:[%s8646_s7 + $0x118] sm:$0xff] }
 0x431   :  { %5207 = vmatpush3.bf16.msra.mxu0 %v5206_v25 }
 0x432   :  { %5208 = vmatprep.subr.bf16.mxu0 %v5482_v59 }
 0x433   :  { %5256 = vmatpush3.bf16.msra.mxu1 %v5198_v4  ;;  %v2751_v4 = vld [vmem:[%s8646_s7 + $0x120] sm:$0xff] }
 0x434   :  { %5258 = vmatprep.subr.bf16.mxu1 %v5200_v18  ;;  %v2754_v18 = vld [vmem:[%s8646_s7 + $0x138] sm:$0xff] }
 0x435   :  { %v5218_v2 = vpack.c.bf16 %v2754_v18, %v2753_v15  ;;  %v3060_v15 = vld [vmem:[%s8649_s10] sm:$0x1] }
 0x436   :  { %v3395_v18 = vld [vmem:[%s8650_s11] sm:$0xff] }
 0x437   :  { %5260 = vmatpush3.bf16.msra.mxu1 %v5202_v16 }
 0x438   :  { %5262 = vmatprep.subr.bf16.mxu1 %v5204_v34  ;;  %v5221_v34 = vpack.c.bf16 %v2756_v23, %v2755_v24  ;;  %v3402_v24 = vld [vmem:[%s8650_s11 + $0x38] sm:$0xff] }
 0x43b   :  { %5264 = vmatpush3.bf16.msra.mxu1 %v5206_v25  ;;  %v2758_v25 = vld [vmem:[%s8646_s7 + $0x158] sm:$0xff] }
 0x473   :  { %v4090_v57 = vpop.f32.mrb[10].mxu0 }
 0x474   :  { %v4091_v11 = vpop.f32.mrb[11].mxu0 }
 0x475   :  { %v4092_v14 = vadd.f32 %v4091_v11, %v4090_v57  ;;  %v2749_v57 = vld [vmem:[%s8646_s7 + $0x110] sm:$0xff] }
 0x476   :  { %v5212_v11 = vpack.c.bf16 %v2750_v54, %v2749_v57 }
 0x493   :  { %v4125_v35 = vpop.f32.mrb[12].mxu0 }
 0x494   :  { %v4126_v20 = vpop.f32.mrb[13].mxu0 }
 0x495   :  { %v4127_v52 = vadd.f32 %v4126_v20, %v4125_v35  ;;  %v5224_v35 = vpack.c.bf16 %v2758_v25, %v2757_v27  ;;  %v3399_v27 = vld [vmem:[%s8650_s11 + $0x20] sm:$0xff]  ;;  %v3401_v25 = vld [vmem:[%s8650_s11 + $0x30] sm:$0xff] }
 0x497   :  { %v2596_v9 = vadd.f32 %v4127_v52, %v4092_v14  ;;  %v2752_v14 = vld [vmem:[%s8646_s7 + $0x128] sm:$0xff]  ;;  %v2759_v52 = vld [vmem:[%s8646_s7 + $0x160] sm:$0xff] }
 0x498   :  { %v5215_v17 = vpack.c.bf16 %v2752_v14, %v2751_v4 }
 0x4d2   :  { %v2665_v21 = vpop.f32.mrb[14].mxu0 }
 0x4d3   :  { %v8077_v31 = vadd.f32 %v2665_v21, %v2596_v9  ;;  %v2667_v19 = vpop.f32.mrb[15].mxu0  ;;  %v2760_v9 = vld [vmem:[%s8646_s7 + $0x168] sm:$0xff] }
 0x4d4   :  { %v5227_v21 = vpack.c.bf16 %v2760_v9, %v2759_v52  ;;  %v5296_v52 = vpack.c.bf16 %v3401_v25, %v3399_v27  ;;  %v3440_v27 = vld [vmem:[%s8650_s11 + $0x168] sm:$0xff]  ;;  %v3442_v25 = vld [vmem:[%s8650_s11 + $0x178] sm:$0xff] }
 0x4d5   :  { %v2684_v60 = vsel %vm2683_vm9, %v8077_v31, 0.0 }
 0x4d6   :  { %v2685_v16 = vrot.slane %v2684_v60, 4 }
 0x4d8   :  { %v2686_v37 = vadd.f32 %v2685_v16, %v2684_v60  ;;  %v3397_v60 = vld [vmem:[%s8650_s11 + $0x10] sm:$0xff]  ;;  %v3400_v16 = vld [vmem:[%s8650_s11 + $0x28] sm:$0xff] }
 0x4da   :  { %v2687_v20 = vrot.slane %v2686_v37, 2 }
 0x4dc   :  { %v2688_v19 = vadd.f32 %v2687_v20, %v2686_v37  ;;  %v5294_v37 = vpack.c.bf16 %v3402_v24, %v3400_v16  ;;  %v3406_v20 = vld [vmem:[%s8650_s11 + $0x58] sm:$0xff] }
 0x4dd   :  { %v3438_v16 = vld [vmem:[%s8650_s11 + $0x158] sm:$0xff] }
 0x4f1   :  { %v8079_v58 = vpop.f32.mrb[22].mxu1 }
 0x4f2   :  { %v2669_v63 = vsel %vm813_vm4, %v8079_v58, 0.0  ;;  %v2691_v12 = vmul.f32 %v8079_v58, %v8079_v58  ;;  %v8085_v61 = vpop.f32.mrb[23].mxu1 }
 0x4f3   :  { %v2670_v8 = vrot.slane %v2669_v63, 4  ;;  %v2676_v28 = vsel %vm813_vm4, %v8085_v61, 0.0  ;;  %v2692_v29 = vmul.f32 %v8085_v61, %v8085_v61 }
 0x4f4   :  { %v2694_v39 = vsel %vm813_vm4, %v2691_v12, 0.0  ;;  %v2677_v40 = vrot.slane %v2676_v28, 4  ;;  %v2762_v12 = vld [vmem:[%s8646_s7 + $0x178] sm:$0xf] }
 0x4f5   :  { %v2671_v51 = vadd.f32 %v2670_v8, %v2669_v63  ;;  %v2695_v0 = vrot.slane %v2694_v39, 4  ;;  %v2701_v33 = vsel %vm813_vm4, %v2692_v29, 0.0  ;;  %v2761_v63 = vld [vmem:[%s8646_s7 + $0x170] sm:$0xff] }
 0x4f6   :  { %v2678_v26 = vadd.f32 %v2677_v40, %v2676_v28  ;;  %v2702_v30 = vrot.slane %v2701_v33, 4  ;;  %v5230_v8 = vpack.c.bf16 %v2762_v12, %v2761_v63  ;;  %v2689_v28 = vrot.slane %v2688_v19, 1  ;;  %v3408_v63 = vld [vmem:[%s8650_s11 + $0x68] sm:$0xff]  ;;  %v3410_v12 = vld [vmem:[%s8650_s11 + $0x78] sm:$0xff] }
 0x4f7   :  { %v2672_v50 = vrot.slane %v2671_v51, 2  ;;  %v2696_v32 = vadd.f32 %v2695_v0, %v2694_v39  ;;  %v2693_v39 = vmul.f32 %v8077_v31, %v8077_v31 }
 0x4f8   :  { %v2679_v49 = vrot.slane %v2678_v26, 2  ;;  %v2703_v36 = vadd.f32 %v2702_v30, %v2701_v33  ;;  %v2690_v29 = vadd.f32 %v2689_v28, %v2688_v19  ;;  %v3405_v19 = vld [vmem:[%s8650_s11 + $0x50] sm:$0xff]  ;;  %v5302_v28 = vpack.c.bf16 %v3410_v12, %v3408_v63 }
 0x4f9   :  { %v2673_v41 = vadd.f32 %v2672_v50, %v2671_v51  ;;  %v2697_v42 = vrot.slane %v2696_v32, 2  ;;  %v2708_v40 = vsel %vm2683_vm9, %v2693_v39, 0.0  ;;  %v3409_v39 = vld [vmem:[%s8650_s11 + $0x70] sm:$0xff] }
 0x4fa   :  { %v2680_v45 = vadd.f32 %v2679_v49, %v2678_v26  ;;  %v2704_v62 = vrot.slane %v2703_v36, 2  ;;  %v2709_v51 = vrot.slane %v2708_v40, 4 }
 0x4fb   :  { %v2674_v44 = vrot.slane %v2673_v41, 1  ;;  %v2698_v46 = vadd.f32 %v2697_v42, %v2696_v32  ;;  %v3063_v32 = vld [vmem:[%s8647_s8] sm:$0xff] }
 0x4fc   :  { %v2681_v6 = vrot.slane %v2680_v45, 1  ;;  %v2705_v5 = vadd.f32 %v2704_v62, %v2703_v36  ;;  %v2710_v0 = vadd.f32 %v2709_v51, %v2708_v40  ;;  %v3067_v49 = vcombine.high %v3063_v32, %v3063_v32  ;;  %v3396_v36 = vld [vmem:[%s8650_s11 + $0x8] sm:$0xff]  ;;  %v3414_v51 = vld [vmem:[%s8650_s11 + $0x98] sm:$0xff] }
 0x4fd   :  { %v2699_v38 = vrot.slane %v2698_v46, 1  ;;  %v2675_v56 = vadd.f32 %v2674_v44, %v2673_v41  ;;  %v3398_v41 = vld [vmem:[%s8650_s11 + $0x18] sm:$0xff]  ;;  %v3412_v40 = vld [vmem:[%s8650_s11 + $0x88] sm:$0xff] }
 0x4fe   :  { %v2682_v22 = vadd.f32 %v2681_v6, %v2680_v45  ;;  %v2706_v53 = vrot.slane %v2705_v5, 1  ;;  %v2711_v33 = vrot.slane %v2710_v0, 2  ;;  %3902 = vmatprep.subr.msk.mxu1 %vm368_vm0, %v3067_v49  ;;  %v5290_v42 = vpack.c.bf16 %v3398_v41, %v3396_v36  ;;  %v3415_v41 = vld [vmem:[%s8650_s11 + $0xa0] sm:$0xff] }
 0x4ff   :  { %v2700_v3 = vadd.f32 %v2699_v38, %v2698_v46 }
 0x500   :  { %2833 = vmatprep.mubr.f32.mxu0 %v2682_v22  ;;  %v2707_v1 = vadd.f32 %v2706_v53, %v2705_v5  ;;  %v2712_v26 = vadd.f32 %v2711_v33, %v2710_v0  ;;  %v5306_v33 = vpack.c.bf16 %v3414_v51, %v3412_v40  ;;  %v3450_v40 = vld [vmem:[%s8650_s11 + $0x1b8] sm:$0xff] }
 0x501   :  { %2834 = vmatmul.mubr.f32.vlgmr.msra.gmra.mrb[16].mxu0 %v2675_v56 }
 0x502   :  { %5210 = vmatpush3.bf16.msra.mxu0 %v5209_v13  ;;  %2977 = vmatprep.mubr.f32.mxu1 %v2707_v1  ;;  %v2713_v30 = vrot.slane %v2712_v26, 1 }
 0x503   :  { %2978 = vmatmul.mubr.f32.vlgmr.msra.gmra.mrb[24].mxu1 %v2700_v3  ;;  %5211 = vmatprep.subr.bf16.mxu0 %v5482_v59 }
 0x504   :  { %4308 = vmatprep.mubr.msk.f32.mxu0 %vm5483_vm8, %v5479_v7  ;;  %3141 = vmatprep.mubr.f32.mxu1 %v5479_v7  ;;  %v2714_v50 = vadd.f32 %v2713_v30, %v2712_v26  ;;  %v3411_v26 = vld [vmem:[%s8650_s11 + $0x80] sm:$0xff]  ;;  %v3413_v30 = vld [vmem:[%s8650_s11 + $0x90] sm:$0xff] }
 0x505   :  { %3903 = vmatpush1.msk.msra.mxu1 %vm368_vm0, %v3063_v32 }
 0x506   :  { %5213 = vmatpush3.bf16.msra.mxu0 %v5212_v11  ;;  %4346 = vmatprep.subr.mxu1 %v5479_v7 }
 0x507   :  { %5214 = vmatprep.subr.bf16.mxu0 %v5482_v59 }
 0x50a   :  { %5216 = vmatpush3.bf16.msra.mxu0 %v5215_v17 }
 0x50b   :  { %5217 = vmatprep.subr.bf16.mxu0 %v5482_v59 }
 0x50e   :  { %5219 = vmatpush3.bf16.msra.mxu0 %v5218_v2 }
 0x50f   :  { %5220 = vmatprep.subr.bf16.mxu0 %v5482_v59 }
 0x512   :  { %5222 = vmatpush3.bf16.msra.mxu0 %v5221_v34 }
 0x513   :  { %5223 = vmatprep.subr.bf16.mxu0 %v5482_v59 }
 0x516   :  { %5225 = vmatpush3.bf16.msra.mxu0 %v5224_v35 }
 0x517   :  { %5226 = vmatprep.subr.bf16.mxu0 %v5482_v59 }
 0x51a   :  { %5228 = vmatpush3.bf16.msra.mxu0 %v5227_v21 }
 0x51b   :  { %5229 = vmatprep.subr.bf16.mxu0 %v5482_v59 }
 0x51e   :  { %5232 = vmatpush3.bf16.msk.msra.mxu0 %vm5787_vm2, %v5230_v8 }
 0x51f   :  { %5265 = vmatprep.subr.bf16.mxu0 %v5482_v59 }
 0x521   :  { %4309 = vmatmul.mubr.msk.f32.vlgmr.msra.gmra.mrb[18].mxu0 %vm365_vm3, %v2690_v29  ;;  %v3407_v29 = vld [vmem:[%s8650_s11 + $0x60] sm:$0xff] }
 0x522   :  { %5267 = vmatpush3.bf16.msra.mxu0 %v5209_v13  ;;  %4343 = vmatprep.mubr.msk.f32.mxu0 %vm5483_vm8, %v5479_v7  ;;  %v5304_v0 = vpack.c.bf16 %v3409_v39, %v3407_v29  ;;  %v3448_v39 = vld [vmem:[%s8650_s11 + $0x1a8] sm:$0xff] }
 0x523   :  { %5268 = vmatprep.subr.bf16.mxu0 %v5482_v59  ;;  %v5342_v51 = vpack.c.bf16 %v3450_v40, %v3448_v39  ;;  %v3684_v39 = vld [vmem:[%s8652_s13 + $0xe0] sm:$0xff]  ;;  %v3685_v40 = vld [vmem:[%s8652_s13 + $0xe8] sm:$0xff] }
 0x526   :  { %5270 = vmatpush3.bf16.msra.mxu0 %v5212_v11  ;;  %v3056_v11 = vld [vmem:[%s8648_s9] sm:$0x1] }
 0x527   :  { %5271 = vmatprep.subr.bf16.mxu0 %v5482_v59 }
 0x52a   :  { %5273 = vmatpush3.bf16.msra.mxu0 %v5215_v17  ;;  %v3064_v17 = vld [vmem:[%s8647_s8 + $0x8] sm:$0xf] }
 0x52b   :  { %5274 = vmatprep.subr.bf16.mxu0 %v5482_v59 }
 0x52e   :  { %5276 = vmatpush3.bf16.msra.mxu0 %v5218_v2 }
 0x52f   :  { %5277 = vmatprep.subr.bf16.mxu0 %v5482_v59 }
 0x532   :  { %5279 = vmatpush3.bf16.msra.mxu0 %v5221_v34  ;;  %v5292_v34 = vpack.c.bf16 %v3397_v60, %v3395_v18  ;;  %v3431_v18 = vld [vmem:[%s8650_s11 + $0x120] sm:$0xff]  ;;  %v3433_v60 = vld [vmem:[%s8650_s11 + $0x130] sm:$0xff] }
 0x533   :  { %5280 = vmatprep.subr.bf16.mxu0 %v5482_v59  ;;  %v5328_v24 = vpack.c.bf16 %v3433_v60, %v3431_v18  ;;  %v3660_v60 = vld [vmem:[%s8652_s13 + $0x20] sm:$0xff] }
 0x536   :  { %5282 = vmatpush3.bf16.msra.mxu0 %v5224_v35  ;;  %v3404_v35 = vld [vmem:[%s8650_s11 + $0x48] sm:$0xff] }
 0x537   :  { %5283 = vmatprep.subr.bf16.mxu0 %v5482_v59  ;;  %v5298_v9 = vpack.c.bf16 %v3406_v20, %v3404_v35  ;;  %v5334_v20 = vpack.c.bf16 %v3442_v25, %v3440_v27  ;;  %v3663_v27 = vld [vmem:[%s8652_s13 + $0x38] sm:$0xff]  ;;  %v3680_v25 = vld [vmem:[%s8652_s13 + $0xc0] sm:$0xff] }
 0x53a   :  { %5285 = vmatpush3.bf16.msra.mxu0 %v5227_v21  ;;  %v3403_v21 = vld [vmem:[%s8650_s11 + $0x40] sm:$0xff] }
 0x53b   :  { %5286 = vmatprep.subr.bf16.mxu0 %v5482_v59 }
 0x53e   :  { %5289 = vmatpush3.bf16.msk.msra.mxu0 %vm5787_vm2, %v5230_v8  ;;  %v5300_v8 = vpack.c.bf16 %v3405_v19, %v3403_v21  ;;  %v3444_v21 = vld [vmem:[%s8650_s11 + $0x188] sm:$0xff]  ;;  %v3446_v19 = vld [vmem:[%s8650_s11 + $0x198] sm:$0xff] }
 0x53f   :  { %3907 = vmatprep.subr.msk.mxu0 %vm368_vm0, %v3067_v49  ;;  %v5308_v49 = vpack.c.bf16 %v3413_v30, %v3411_v26  ;;  %v5338_v12 = vpack.c.bf16 %v3446_v19, %v3444_v21  ;;  %v3452_v30 = vld [vmem:[%s8650_s11 + $0x1c8] sm:$0xff]  ;;  %v3682_v19 = vld [vmem:[%s8652_s13 + $0xd0] sm:$0xff] }
 0x540   :  { %v3665_v21 = vld [vmem:[%s8652_s13 + $0x48] sm:$0xff] }
 0x541   :  { %4344 = vmatmul.mubr.msk.f32.vlgmr.msra.gmra.mrb[20].mxu0 %vm365_vm3, %v2714_v50  ;;  %v3416_v50 = vld [vmem:[%s8650_s11 + $0xa8] sm:$0xff] }
 0x542   :  { %3285 = vmatprep.mubr.f32.mxu0 %v5479_v7  ;;  %3908 = vmatpush1.msk.msra.mxu0 %vm368_vm0, %v3063_v32  ;;  %v3418_v32 = vld [vmem:[%s8650_s11 + $0xb8] sm:$0xff] }
 0x543   :  { %5291 = vmatprep.subr.bf16.mxu0 %v5290_v42  ;;  %v5310_v36 = vpack.c.bf16 %v3418_v32, %v3416_v50  ;;  %v3417_v42 = vld [vmem:[%s8650_s11 + $0xb0] sm:$0xff]  ;;  %v3454_v50 = vld [vmem:[%s8650_s11 + $0x1d8] sm:$0xff] }
 0x544   :  { %v5346_v32 = vpack.c.bf16 %v3454_v50, %v3452_v30 }
 0x5d4   :  { %v4160_v45 = vpop.f32.mrb[16].mxu0 }
 0x5d5   :  { %v4161_v62 = vpop.f32.mrb[17].mxu0 }
 0x5d6   :  { %v4162_v44 = vadd.f32 %v4161_v62, %v4160_v45  ;;  %v4212_v46 = vpop.f32.mrb[24].mxu1  ;;  %v3420_v45 = vld [vmem:[%s8650_s11 + $0xc8] sm:$0xff]  ;;  %v3422_v62 = vld [vmem:[%s8650_s11 + $0xd8] sm:$0xff] }
 0x5d7   :  { %v4213_v47 = vpop.f32.mrb[25].mxu1 }
 0x5d8   :  { %v4214_v48 = vadd.f32 %v4213_v47, %v4212_v46  ;;  %v5314_v46 = vpack.c.bf16 %v3422_v62, %v3420_v45  ;;  %v3419_v47 = vld [vmem:[%s8650_s11 + $0xc0] sm:$0xff]  ;;  %v3458_v45 = vld [vmem:[%s8650_s11 + $0x1f8] sm:$0xff] }
 0x5f4   :  { %v2905_v6 = vpop.f32.mrb[18].mxu0 }
 0x5f5   :  { %v2906_v5 = vadd.f32 %v4162_v44, %v2905_v6  ;;  %v4310_v38 = vpop.f32.mrb[19].mxu0  ;;  %v5312_v44 = vpack.c.bf16 %v3417_v42, %v3415_v41  ;;  %v3424_v6 = vld [vmem:[%s8650_s11 + $0xe8] sm:$0xff] }
 0x5f6   :  { %v3456_v42 = vld [vmem:[%s8650_s11 + $0x1e8] sm:$0xff] }
 0x5f7   :  { %v2909_v22 = vmul.f32 0.005263158, %v2906_v5  ;;  %v3426_v5 = vld [vmem:[%s8650_s11 + $0xf8] sm:$0xff]  ;;  %v5350_v62 = vpack.c.bf16 %v3458_v45, %v3456_v42 }
 0x5f9   :  { %v3054_v57 = vmul.f32 %v2909_v22, %v2909_v22 }
 0x614   :  { %v3049_v13 = vpop.f32.mrb[20].mxu0 }
 0x615   :  { %v3050_v53 = vadd.f32 %v4214_v48, %v3049_v13  ;;  %v4345_v56 = vpop.f32.mrb[21].mxu0  ;;  %v3421_v48 = vld [vmem:[%s8650_s11 + $0xd0] sm:$0xff]  ;;  %v3423_v13 = vld [vmem:[%s8650_s11 + $0xe0] sm:$0xff] }
 0x616   :  { %v5316_v38 = vpack.c.bf16 %v3421_v48, %v3419_v47  ;;  %v3428_v56 = vld [vmem:[%s8650_s11 + $0x108] sm:$0xff] }
 0x617   :  { %v3053_v54 = vmul.f32 0.005263158, %v3050_v53  ;;  %v3425_v53 = vld [vmem:[%s8650_s11 + $0xf0] sm:$0xff]  ;;  %v3460_v48 = vld [vmem:[%s8650_s11 + $0x208] sm:$0xff] }
 0x619   :  { %v3055_v1 = vsub.f32 %v3053_v54, %v3054_v57  ;;  %v3430_v57 = vld [vmem:[%s8650_s11 + $0x118] sm:$0xff]  ;;  %v5320_v54 = vpack.c.bf16 %v3425_v53, %v3423_v13  ;;  %v3656_v13 = vld [vmem:[%s8652_s13] sm:$0xff] }
 0x61b   :  { %v3057_v3 = vadd.f32 1e-05, %v3055_v1  ;;  %v5322_v1 = vpack.c.bf16 %v3430_v57, %v3428_v56  ;;  %v3657_v56 = vld [vmem:[%s8652_s13 + $0x8] sm:$0xff]  ;;  %v3674_v57 = vld [vmem:[%s8652_s13 + $0x90] sm:$0xff] }
 0x61d   :  { %5453 = vrsqrt.f32 %v3057_v3  ;;  %v3427_v3 = vld [vmem:[%s8650_s11 + $0x100] sm:$0xff] }
 0x627   :  { %v5454_v4 = vpop.eup %5453 }
 0x628   :  { %v3059_v14 = vmul.f32 %v5454_v4, %v3056_v11  ;;  %v3429_v11 = vld [vmem:[%s8650_s11 + $0x110] sm:$0xff]  ;;  %v3432_v4 = vld [vmem:[%s8650_s11 + $0x128] sm:$0xff] }
 0x62a   :  { %3904 = vmatmul.mubr.msk.f32.vlgmr.msra.gmra.mrb[26].mxu1 %vm1447_vm7, %v3059_v14  ;;  %v3061_v2 = vmul.f32 %v3059_v14, %v2909_v22  ;;  %v5318_v22 = vpack.c.bf16 %v3426_v5, %v3424_v6  ;;  %v3462_v6 = vld [vmem:[%s8650_s11 + $0x218] sm:$0xff] }
 0x62b   :  { %4347 = vmatpush3.msk.msra.mxu1 %vm368_vm0, %v3064_v17  ;;  %4348 = vmatprep.mubr.msk.f32.mxu1 %vm5483_vm8, %v5479_v7  ;;  %v5354_v5 = vpack.c.bf16 %v3462_v6, %v3460_v48  ;;  %v3459_v48 = vld [vmem:[%s8650_s11 + $0x200] sm:$0xff] }
 0x62c   :  { %v3062_v23 = vsub.f32 %v3060_v15, %v3061_v2  ;;  %4351 = vmatprep.subr.mxu1 %v5479_v7  ;;  %v3436_v2 = vld [vmem:[%s8650_s11 + $0x148] sm:$0xff] }
 0x62e   :  { %4349 = vmatmul.mubr.msk.f32.vlgmr.msra.gmra.mrb[28].mxu1 %vm1447_vm7, %v3059_v14  ;;  %3909 = vmatmul.mubr.msk.f32.vlgmr.msra.gmra.mrb[22].mxu0 %vm1447_vm7, %v3062_v23  ;;  %v3434_v14 = vld [vmem:[%s8650_s11 + $0x138] sm:$0xff] }
 0x62f   :  { %4352 = vmatpush3.msk.msra.mxu1 %vm368_vm0, %v3064_v17  ;;  %4353 = vmatprep.mubr.msk.f32.mxu1 %vm5483_vm8, %v5479_v7  ;;  %v5324_v17 = vpack.c.bf16 %v3429_v11, %v3427_v3  ;;  %v5326_v15 = vpack.c.bf16 %v3434_v14, %v3432_v4  ;;  %v3658_v11 = vld [vmem:[%s8652_s13 + $0x10] sm:$0xff]  ;;  %v3659_v4 = vld [vmem:[%s8652_s13 + $0x18] sm:$0xff]  ;;  %v3676_v14 = vld [vmem:[%s8652_s13 + $0xa0] sm:$0xff] }
 0x630   :  { %5293 = vmatpush1.bf16.msra.mxu0 %v5292_v34  ;;  %v3435_v34 = vld [vmem:[%s8650_s11 + $0x140] sm:$0xff] }
 0x631   :  { %5295 = vmatprep.subr.bf16.mxu0 %v5294_v37  ;;  %v3437_v37 = vld [vmem:[%s8650_s11 + $0x150] sm:$0xff] }
 0x632   :  { %4354 = vmatmul.mubr.msk.f32.vlgmr.msra.gmra.mrb[30].mxu1 %vm1447_vm7, %v3062_v23  ;;  %v5330_v23 = vpack.c.bf16 %v3438_v16, %v3436_v2  ;;  %v5332_v35 = vpack.c.bf16 %v3437_v37, %v3435_v34  ;;  %v3661_v2 = vld [vmem:[%s8652_s13 + $0x28] sm:$0xff]  ;;  %v3678_v16 = vld [vmem:[%s8652_s13 + $0xb0] sm:$0xff] }
 0x633   :  { %v3662_v37 = vld [vmem:[%s8652_s13 + $0x30] sm:$0xff] }
 0x634   :  { %5297 = vmatpush1.bf16.msra.mxu0 %v5296_v52  ;;  %v3439_v52 = vld [vmem:[%s8650_s11 + $0x160] sm:$0xff] }
 0x635   :  { %5299 = vmatprep.subr.bf16.mxu0 %v5298_v9  ;;  %v3441_v9 = vld [vmem:[%s8650_s11 + $0x170] sm:$0xff] }
 0x636   :  { %v5336_v63 = vpack.c.bf16 %v3441_v9, %v3439_v52  ;;  %v3664_v9 = vld [vmem:[%s8652_s13 + $0x40] sm:$0xff] }
 0x638   :  { %5301 = vmatpush1.bf16.msra.mxu0 %v5300_v8  ;;  %v3443_v8 = vld [vmem:[%s8650_s11 + $0x180] sm:$0xff] }
 0x639   :  { %5303 = vmatprep.subr.bf16.mxu0 %v5302_v28  ;;  %v3445_v28 = vld [vmem:[%s8650_s11 + $0x190] sm:$0xff] }
 0x63a   :  { %v5340_v29 = vpack.c.bf16 %v3445_v28, %v3443_v8  ;;  %v3666_v28 = vld [vmem:[%s8652_s13 + $0x50] sm:$0xff] }
 0x63c   :  { %5305 = vmatpush1.bf16.msra.mxu0 %v5304_v0  ;;  %v3447_v0 = vld [vmem:[%s8650_s11 + $0x1a0] sm:$0xff] }
 0x63d   :  { %5307 = vmatprep.subr.bf16.mxu0 %v5306_v33  ;;  %v3449_v33 = vld [vmem:[%s8650_s11 + $0x1b0] sm:$0xff] }
 0x63e   :  { %v5344_v26 = vpack.c.bf16 %v3449_v33, %v3447_v0  ;;  %v5412_v0 = vpack.c.bf16 %v3685_v40, %v3684_v39  ;;  %v3486_v39 = vld [vmem:[%s8650_s11 + $0x2d8] sm:$0xff] }
 0x640   :  { %5309 = vmatpush1.bf16.msra.mxu0 %v5308_v49  ;;  %v3451_v49 = vld [vmem:[%s8650_s11 + $0x1c0] sm:$0xff] }
 0x641   :  { %5311 = vmatprep.subr.bf16.mxu0 %v5310_v36  ;;  %v3453_v36 = vld [vmem:[%s8650_s11 + $0x1d0] sm:$0xff] }
 0x642   :  { %v5348_v41 = vpack.c.bf16 %v3453_v36, %v3451_v49 }
 0x644   :  { %5313 = vmatpush1.bf16.msra.mxu0 %v5312_v44  ;;  %v3455_v44 = vld [vmem:[%s8650_s11 + $0x1e0] sm:$0xff] }
 0x645   :  { %5315 = vmatprep.subr.bf16.mxu0 %v5314_v46  ;;  %v3457_v46 = vld [vmem:[%s8650_s11 + $0x1f0] sm:$0xff] }
 0x646   :  { %v5352_v47 = vpack.c.bf16 %v3457_v46, %v3455_v44 }
 0x648   :  { %5317 = vmatpush1.bf16.msra.mxu0 %v5316_v38  ;;  %v3672_v38 = vld [vmem:[%s8652_s13 + $0x80] sm:$0xff] }
 0x649   :  { %5319 = vmatprep.subr.bf16.mxu0 %v5318_v22  ;;  %v3673_v22 = vld [vmem:[%s8652_s13 + $0x88] sm:$0xff] }
 0x64a   :  { %v5388_v53 = vpack.c.bf16 %v3673_v22, %v3672_v38  ;;  %v3466_v38 = vld [vmem:[%s8650_s11 + $0x238] sm:$0xff] }
 0x64c   :  { %5321 = vmatpush1.bf16.msra.mxu0 %v5320_v54  ;;  %v3675_v54 = vld [vmem:[%s8652_s13 + $0x98] sm:$0xff]  ;;  %5389 = vmatprep.subr.bf16.mxu1 %v5388_v53 }
 0x64d   :  { %5323 = vmatprep.subr.bf16.mxu0 %v5322_v1  ;;  %v5390_v1 = vpack.c.bf16 %v3657_v56, %v3656_v13  ;;  %v5392_v3 = vpack.c.bf16 %v3675_v54, %v3674_v57 }
 0x64f   :  { %5391 = vmatpush3.bf16.msra.mxu1 %v5390_v1 }
 0x650   :  { %5325 = vmatpush1.bf16.msra.mxu0 %v5324_v17  ;;  %v3677_v17 = vld [vmem:[%s8652_s13 + $0xa8] sm:$0xff]  ;;  %5393 = vmatprep.subr.bf16.mxu1 %v5392_v3 }
 0x651   :  { %5327 = vmatprep.subr.bf16.mxu0 %v5326_v15  ;;  %v5394_v15 = vpack.c.bf16 %v3659_v4, %v3658_v11  ;;  %v5396_v18 = vpack.c.bf16 %v3677_v17, %v3676_v14  ;;  %v3463_v11 = vld [vmem:[%s8650_s11 + $0x220] sm:$0xff]  ;;  %v3465_v4 = vld [vmem:[%s8650_s11 + $0x230] sm:$0xff]  ;;  %v3470_v14 = vld [vmem:[%s8650_s11 + $0x258] sm:$0xff] }
 0x652   :  { %v5360_v17 = vpack.c.bf16 %v3465_v4, %v3463_v11  ;;  %v3768_v11 = vld [vmem:[%s8654_s15 + $0x10] sm:$0xff] }
 0x653   :  { %5395 = vmatpush3.bf16.msra.mxu1 %v5394_v15 }
 0x654   :  { %5329 = vmatpush1.bf16.msra.mxu0 %v5328_v24  ;;  %v3679_v24 = vld [vmem:[%s8652_s13 + $0xb8] sm:$0xff]  ;;  %5397 = vmatprep.subr.bf16.mxu1 %v5396_v18  ;;  %v3467_v18 = vld [vmem:[%s8650_s11 + $0x240] sm:$0xff] }
 0x655   :  { %5331 = vmatprep.subr.bf16.mxu0 %v5330_v23  ;;  %v5398_v23 = vpack.c.bf16 %v3661_v2, %v3660_v60  ;;  %v5400_v34 = vpack.c.bf16 %v3679_v24, %v3678_v16  ;;  %v3469_v60 = vld [vmem:[%s8650_s11 + $0x250] sm:$0xff]  ;;  %v3472_v2 = vld [vmem:[%s8650_s11 + $0x268] sm:$0xff]  ;;  %v3474_v16 = vld [vmem:[%s8650_s11 + $0x278] sm:$0xff] }
 0x656   :  { %v5364_v24 = vpack.c.bf16 %v3469_v60, %v3467_v18  ;;  %v3916_v60 = vld [vmem:[%s8655_s16] ss:$0 sm:$0xff] }
 0x657   :  { %5399 = vmatpush3.bf16.msra.mxu1 %v5398_v23  ;;  %v5366_v23 = vpack.c.bf16 %v3474_v16, %v3472_v2 }
 0x658   :  { %5333 = vmatpush1.bf16.msra.mxu0 %v5332_v35  ;;  %v3681_v35 = vld [vmem:[%s8652_s13 + $0xc8] sm:$0xff]  ;;  %5401 = vmatprep.subr.bf16.mxu1 %v5400_v34  ;;  %v3471_v34 = vld [vmem:[%s8650_s11 + $0x260] sm:$0xff] }
 0x659   :  { %5335 = vmatprep.subr.bf16.mxu0 %v5334_v20  ;;  %v5402_v20 = vpack.c.bf16 %v3663_v27, %v3662_v37  ;;  %v5404_v52 = vpack.c.bf16 %v3681_v35, %v3680_v25  ;;  %v3473_v37 = vld [vmem:[%s8650_s11 + $0x270] sm:$0xff]  ;;  %v3476_v27 = vld [vmem:[%s8650_s11 + $0x288] sm:$0xff]  ;;  %v3478_v25 = vld [vmem:[%s8650_s11 + $0x298] sm:$0xff] }
 0x65a   :  { %v5368_v35 = vpack.c.bf16 %v3473_v37, %v3471_v34 }
 0x65b   :  { %5403 = vmatpush3.bf16.msra.mxu1 %v5402_v20  ;;  %v5370_v20 = vpack.c.bf16 %v3478_v25, %v3476_v27 }
 0x65c   :  { %5337 = vmatpush1.bf16.msra.mxu0 %v5336_v63  ;;  %v3683_v63 = vld [vmem:[%s8652_s13 + $0xd8] sm:$0xff]  ;;  %5405 = vmatprep.subr.bf16.mxu1 %v5404_v52  ;;  %v3475_v52 = vld [vmem:[%s8650_s11 + $0x280] sm:$0xff] }
 0x65d   :  { %5339 = vmatprep.subr.bf16.mxu0 %v5338_v12  ;;  %v5406_v12 = vpack.c.bf16 %v3665_v21, %v3664_v9  ;;  %v5408_v8 = vpack.c.bf16 %v3683_v63, %v3682_v19  ;;  %v3477_v9 = vld [vmem:[%s8650_s11 + $0x290] sm:$0xff]  ;;  %v3480_v21 = vld [vmem:[%s8650_s11 + $0x2a8] sm:$0xff]  ;;  %v3482_v19 = vld [vmem:[%s8650_s11 + $0x2b8] sm:$0xff] }
 0x65e   :  { %v5372_v63 = vpack.c.bf16 %v3477_v9, %v3475_v52 }
 0x65f   :  { %5407 = vmatpush3.bf16.msra.mxu1 %v5406_v12  ;;  %v5374_v12 = vpack.c.bf16 %v3482_v19, %v3480_v21 }
 0x660   :  { %5341 = vmatpush1.bf16.msra.mxu0 %v5340_v29  ;;  %v3667_v29 = vld [vmem:[%s8652_s13 + $0x58] sm:$0xff]  ;;  %5409 = vmatprep.subr.bf16.mxu1 %v5408_v8  ;;  %v3479_v8 = vld [vmem:[%s8650_s11 + $0x2a0] sm:$0xff] }
 0x661   :  { %5343 = vmatprep.subr.bf16.mxu0 %v5342_v51  ;;  %v5410_v51 = vpack.c.bf16 %v3667_v29, %v3666_v28  ;;  %v3481_v28 = vld [vmem:[%s8650_s11 + $0x2b0] sm:$0xff]  ;;  %v3484_v29 = vld [vmem:[%s8650_s11 + $0x2c8] sm:$0xff] }
 0x662   :  { %v5376_v40 = vpack.c.bf16 %v3481_v28, %v3479_v8 }
 0x663   :  { %5411 = vmatpush3.bf16.msra.mxu1 %v5410_v51  ;;  %v5378_v51 = vpack.c.bf16 %v3486_v39, %v3484_v29 }
 0x664   :  { %5345 = vmatpush1.bf16.msra.mxu0 %v5344_v26  ;;  %5413 = vmatprep.subr.bf16.mxu1 %v5412_v0  ;;  %v3483_v0 = vld [vmem:[%s8650_s11 + $0x2c0] sm:$0xff] }
 0x665   :  { %5347 = vmatprep.subr.bf16.mxu0 %v5346_v32 }
 0x668   :  { %5349 = vmatpush1.bf16.msra.mxu0 %v5348_v41 }
 0x669   :  { %5351 = vmatprep.subr.bf16.mxu0 %v5350_v62 }
 0x66c   :  { %5353 = vmatpush1.bf16.msra.mxu0 %v5352_v47 }
 0x66d   :  { %5355 = vmatprep.subr.bf16.mxu0 %v5354_v5  ;;  %v3464_v5 = vld [vmem:[%s8650_s11 + $0x228] sm:$0xff] }
 0x66e   :  { %v5358_v3 = vpack.c.bf16 %v3466_v38, %v3464_v5  ;;  %v3499_v5 = vsub.s32 1, %v5717_v10  ;;  %v3767_v10 = vld [vmem:[%s8654_s15 + $0x8] sm:$0xff] }
 0x6fd   :  { %v3143_v33 = vpop.f32.mrb[26].mxu1 }
 0x6fe   :  { %v3365_v26 = vrot.slane %v3143_v33, %v7370_v55  ;;  %v3145_v30 = vpop.f32.mrb[27].mxu1  ;;  %v3485_v33 = vld [vmem:[%s8650_s11 + $0x2d0] sm:$0xff] }
 0x6ff   :  { %v3369_v50 = vrot.slane %v3145_v30, %v7370_v55  ;;  %v3490_v30 = vld [vmem:[%s8650_s11 + $0x2f8] sm:$0xf] }
 0x700   :  { %v3374_v32 = vmul.f32 %v3365_v26, %v8079_v58  ;;  %v3461_v58 = vld [vmem:[%s8650_s11 + $0x210] sm:$0xff]  ;;  %v3488_v26 = vld [vmem:[%s8650_s11 + $0x2e8] sm:$0xff] }
 0x701   :  { %v3375_v49 = vmul.f32 %v3369_v50, %v8085_v61  ;;  %v3214_v36 = vpop.f32.mrb[28].mxu1  ;;  %v3287_v41 = vpop.f32.mrb[22].mxu0  ;;  %v5356_v57 = vpack.c.bf16 %v3461_v58, %v3459_v48  ;;  %v5380_v50 = vpack.c.bf16 %v3485_v33, %v3483_v0  ;;  %v3670_v48 = vld [vmem:[%s8652_s13 + $0x70] sm:$0xff]  ;;  %v3671_v58 = vld [vmem:[%s8652_s13 + $0x78] sm:$0xff] }
 0x702   :  { %v3373_v42 = vrot.slane %v3214_v36, %v7370_v55  ;;  %v3380_v45 = vrot.slane %v3287_v41, %v7370_v55  ;;  %v4350_v62 = vpop.f32.mrb[29].mxu1  ;;  %v3289_v44 = vpop.f32.mrb[23].mxu0  ;;  %v3489_v36 = vld [vmem:[%s8650_s11 + $0x2f0] sm:$0xf] }
 0x703   :  { %v3384_v46 = vrot.slane %v3289_v44, %v7370_v55  ;;  %v3669_v62 = vld [vmem:[%s8652_s13 + $0x68] sm:$0xff] }
 0x704   :  { %v3389_v47 = vadd.f32 %v3380_v45, %v3374_v32  ;;  %v3376_v22 = vmul.f32 %v3373_v42, %v8077_v31  ;;  %v3468_v31 = vld [vmem:[%s8650_s11 + $0x248] sm:$0xff]  ;;  %v5382_v32 = vpack.c.bf16 %v3490_v30, %v3488_v26  ;;  %v3668_v45 = vld [vmem:[%s8652_s13 + $0x60] sm:$0xff] }
 0x705   :  { %v3390_v61 = vadd.f32 %v3384_v46, %v3375_v49  ;;  %v3358_v6 = vpop.f32.mrb[30].mxu1  ;;  %v5362_v15 = vpack.c.bf16 %v3470_v14, %v3468_v31  ;;  %v3487_v49 = vld [vmem:[%s8650_s11 + $0x2e0] sm:$0xff]  ;;  %v5414_v44 = vpack.c.bf16 %v3669_v62, %v3668_v45  ;;  %v3686_v46 = vld [vmem:[%s8652_s13 + $0xf0] sm:$0xff] }
 0x706   :  { %v3388_v13 = vrot.slane %v3358_v6, %v7370_v55  ;;  %v4355_v53 = vpop.f32.mrb[31].mxu1  ;;  %v3392_v54 = vmax.f32 %v3389_v47, 0.0  ;;  %v5385_v41 = vpack.c.bf16 %v3489_v36, %v3487_v49  ;;  %v5416_v47 = vpack.c.bf16 %v3687_v43, %v3686_v46  ;;  %v3491_v6 = vld [vmem:[%s8651_s12] sm:$0x3] }
 0x707   :  { %v3393_v56 = vmax.f32 %v3390_v61, 0.0  ;;  %5415 = vmatpush3.bf16.msra.mxu1 %v5414_v44  ;;  %v5418_v61 = vpack.c.bf16 %v3671_v58, %v3670_v48  ;;  %v3496_v38 = vrot.slane %v3491_v6, %v7370_v55  ;;  %v3915_v14 = vld [vmem:[%s8653_s14] ss:$0 sm:$0xff] }
 0x708   :  { %v3391_v1 = vadd.f32 %v3388_v13, %v3376_v22  ;;  %5417 = vmatprep.subr.bf16.mxu1 %v5416_v47  ;;  %v3500_v22 = vrot.slane %v3491_v6, %v3499_v5 }
 0x709   :  { %3576 = vmatprep.mubr.f32.mxu0 %v3393_v56 }
 0x70a   :  { %3577 = vmatmul.mubr.f32.vlgmr.msra.gmra.mrb[24].mxu0 %v3392_v54  ;;  %v3394_v42 = vmax.f32 %v3391_v1, 0.0 }
 0x70b   :  { %5357 = vmatpush1.bf16.msra.mxu0 %v5356_v57  ;;  %3647 = vmatprep.mubr.f32.mxu0 %v5479_v7 }
 0x70c   :  { %5359 = vmatprep.subr.bf16.mxu0 %v5358_v3  ;;  %5419 = vmatpush3.bf16.msra.mxu1 %v5418_v61  ;;  %v3766_v3 = vld [vmem:[%s8654_s15] sm:$0xff] }
 0x70d   :  { %5420 = vmatprep.subr.bf16.mxu1 %v5482_v59  ;;  %v5421_v55 = vpack.c.bf16 %v3767_v10, %v3766_v3 }
 0x70f   :  { %5361 = vmatpush1.bf16.msra.mxu0 %v5360_v17 }
 0x710   :  { %5363 = vmatprep.subr.bf16.mxu0 %v5362_v15 }
 0x713   :  { %5365 = vmatpush1.bf16.msra.mxu0 %v5364_v24 }
 0x714   :  { %5367 = vmatprep.subr.bf16.mxu0 %v5366_v23 }
 0x717   :  { %5369 = vmatpush1.bf16.msra.mxu0 %v5368_v35 }
 0x718   :  { %5371 = vmatprep.subr.bf16.mxu0 %v5370_v20 }
 0x71b   :  { %5373 = vmatpush1.bf16.msra.mxu0 %v5372_v63 }
 0x71c   :  { %5375 = vmatprep.subr.bf16.mxu0 %v5374_v12 }
 0x71f   :  { %5377 = vmatpush1.bf16.msra.mxu0 %v5376_v40 }
 0x720   :  { %5379 = vmatprep.subr.bf16.mxu0 %v5378_v51 }
 0x723   :  { %5381 = vmatpush1.bf16.msra.mxu0 %v5380_v50 }
 0x724   :  { %5384 = vmatprep.subr.msk.bf16.mxu0 %vm5787_vm2, %v5382_v32 }
 0x727   :  { %5387 = vmatpush1.bf16.msk.msra.mxu0 %vm5787_vm2, %v5385_v41 }
 0x72a   :  { %3914 = vmatmul.mubr.msk.f32.vlgmr.msra.gmra.mrb[24].mxu0 %vm365_vm3, %v3394_v42 }
 0x7fd   :  { %v3649_v13 = vpop.f32.mrb[24].mxu0 }
 0x7fe   :  { %v5428_v53 = vadd.f32 %v3649_v13, %v3496_v38  ;;  %v3651_v56 = vpop.f32.mrb[25].mxu0 }
 0x7ff   :  { %v5429_v57 = vadd.f32 %v3651_v56, %v3500_v22 }
 0x800   :  { %v3654_v1 = vmax.f32 %v5428_v53, 0.0 }
 0x801   :  { %v3655_v54 = vmax.f32 %v5429_v57, 0.0 }
 0x803   :  { %3759 = vmatprep.mubr.f32.mxu1 %v3655_v54 }
 0x804   :  { %3760 = vmatmul.mubr.f32.vlgmr.msra.gmra.mrb[32].mxu1 %v3654_v1 }
 0x805   :  { %4364 = vmatprep.mubr.msk.f32.mxu1 %vm5483_vm8, %v5479_v7  ;;  %5422 = vmatpush3.bf16.msra.mxu1 %v5421_v55  ;;  %v3769_v7 = vld [vmem:[%s8654_s15 + $0x18] sm:$0xff]  ;;  %s5455_s15 = scalar_lea.vmem %s3860_s28, 32 }
 0x806   :  { %5423 = vmatprep.subr.bf16.mxu1 %v5482_v59  ;;  %v5424_v4 = vpack.c.bf16 %v3769_v7, %v3768_v11  ;;  %p5456_p0 = scmp.ne.s32.totalorder %s3860_s28, %s5455_s15  ;;  %p5461_p2 = scmp.lt.s32.totalorder %s5455_s15, %s5455_s15 }
 0x808   :  { %p5462_p3 = por %p5461_p2, %p5460_p1 }
 0x809   :  { %5425 = vmatpush3.bf16.msra.mxu1 %v5424_v4 }
 0x80a   :  { %p5463_p4 = pnand %p5462_p3, %p5456_p0 }
 0x8d7   :  { %v4268_v31 = vpop.f32.mrb[32].mxu1 }
 0x8d8   :  { %v4269_v17 = vpop.f32.mrb[33].mxu1 }
 0x8d9   :  { %v4270_v15 = vadd.f32 %v4269_v17, %v4268_v31 }
 0x8db   :  { %v3762_v18 = vadd.f32 %v4270_v15, %v3915_v14 }
 0x8dd   :  { %v3765_v59 = vmax.f32 %v3762_v18, 0.0 }
 0x8df   :  { %4365 = vmatmul.mubr.msk.f32.vlgmr.msra.gmra.mrb[34].mxu1 %vm3777_vm10, %v3765_v59 }
 0x9b2   :  { %v3847_v2 = vpop.f32.mrb[34].mxu1 }
 0x9b3   :  { %v3848_v16 = vadd.f32 %v3916_v60, %v3847_v2  ;;  %v4366_v24 = vpop.f32.mrb[35].mxu1 }
 0x9b5   :  { %3852 = vst.msk [vmem:[#allocation2] sm:$0x3] %vm3851_vm11, %v3848_v16 }
 0x9b6   :  { %5466 = shalt.err (!%p5463_p4)
}
 0x9b7   :  { %s5467_s29 = scalar_lea.hbm %s8656_s17, 32 }
 0x9b8   :  { %p5468_p5 = scmp.ne.s32.totalorder %s8656_s17, %s5467_s29  ;;  %p5471_p6 = scmp.lt.u32.totalorder %s5467_s29, %s8656_s17 }
 0x9ba   :  { %p5473_p7 = pnand %p5471_p6, %p5468_p5 }
 0x9bc   :  { %5476 = shalt.err (!%p5473_p7)
}
 0x9bd   :  { %3862 = dma.vmem_to_hbm [thread:$0]  %s3860_s28, 32, %s8656_s17, [#allocation3]  }
 0x9be   :  { %5477 = dma.done.wait [#allocation3], 32  }
 0x9bf   :  { %5478 = vsyncadd [#allocation3], 4294967264 }
 0x9c0   :  { %3866 = vsyncpa [#allocation3], 1 }

</bundles_post_ra>
